<compile_context>
chip_gen: v7x
topology: tpu7x:2x2x1
jax: 0.10.0
libtpu: 0.0.40
codegen_flags: <defaults>
</compile_context>

<pallas_src>
import functools

import jax
import jax.numpy as jnp
from jax.experimental import pallas as pl
from jax.experimental.pallas import tpu as pltpu

EPS = 1e-5                      # PyTorch BatchNorm2d default
MXU_DTYPE = jnp.bfloat16        # MXU operand dtype (accumulate in f32)
VMEM_LIMIT = 32 * 1024 * 1024   # safe on v5e/v6e/v7x; tiles are far smaller


def _round_up(x, m):
    return (x + m - 1) // m * m


def _apply_act(x, act):
    if act is None:
        return x
    if act == "relu":
        return jnp.maximum(x, 0).astype(x.dtype)
    if act == "lrelu":                       # LeakyReLU(0.2)
        return jnp.where(x > 0, x, x * jnp.asarray(0.2, x.dtype))
    if act == "tanh":
        return jnp.tanh(x)
    raise ValueError(act)


# --------------------------------------------------------------------------- #
# Tiled matmul kernel with fused prologue activation + bias/activation epilogue
# --------------------------------------------------------------------------- #
def _make_matmul_kernel(pre_act, post_act, has_bias):
    def kernel(*refs):
        if has_bias:
            x_ref, w_ref, b_ref, o_ref, acc_ref = refs
        else:
            x_ref, w_ref, o_ref, acc_ref = refs
            b_ref = None
        k = pl.program_id(2)

        @pl.when(k == 0)
        def _init():
            acc_ref[...] = jnp.zeros_like(acc_ref)

        x = _apply_act(x_ref[...], pre_act)          # fused prologue (VPU)
        acc_ref[...] += jnp.dot(x, w_ref[...],
                                preferred_element_type=jnp.float32)

        @pl.when(k == pl.num_programs(2) - 1)
        def _finish():
            acc = acc_ref[...]
            if has_bias:
                acc = acc + b_ref[...]
            acc = _apply_act(acc, post_act)          # fused epilogue
            o_ref[...] = acc.astype(o_ref.dtype)

    return kernel


def pallas_matmul(x, w, bias=None, pre_act=None, post_act=None,
                  out_dtype=jnp.float32):
    """(M, K) @ (K, N) [+ bias] with fused activations, bf16 MXU operands."""
    M, K = x.shape
    K2, N = w.shape
    assert K == K2

    tm = min(256, _round_up(M, 8))
    tn = min(256, _round_up(N, 128))
    tk = min(512, _round_up(K, 128))
    Mp, Np, Kp = _round_up(M, tm), _round_up(N, tn), _round_up(K, tk)

    xp = x.astype(MXU_DTYPE)
    if (Mp, Kp) != (M, K):
        xp = jnp.pad(xp, ((0, Mp - M), (0, Kp - K)))
    wp = w.astype(MXU_DTYPE)
    if (Kp, Np) != (K, N):
        wp = jnp.pad(wp, ((0, Kp - K), (0, Np - N)))

    grid = (Mp // tm, Np // tn, Kp // tk)
    in_specs = [
        pl.BlockSpec((tm, tk), lambda i, j, k: (i, k)),
        pl.BlockSpec((tk, tn), lambda i, j, k: (k, j)),
    ]
    args = [xp, wp]
    has_bias = bias is not None
    if has_bias:
        bp = bias.reshape(1, N).astype(jnp.float32)
        if Np != N:
            bp = jnp.pad(bp, ((0, 0), (0, Np - N)))
        in_specs.append(pl.BlockSpec((1, tn), lambda i, j, k: (0, j)))
        args.append(bp)

    out = pl.pallas_call(
        _make_matmul_kernel(pre_act, post_act, has_bias),
        out_shape=jax.ShapeDtypeStruct((Mp, Np), out_dtype),
        grid=grid,
        in_specs=in_specs,
        out_specs=pl.BlockSpec((tm, tn), lambda i, j, k: (i, j)),
        scratch_shapes=[pltpu.VMEM((tm, tn), jnp.float32)],
        compiler_params=pltpu.CompilerParams(
            dimension_semantics=("parallel", "parallel", "arbitrary"),
            vmem_limit_bytes=VMEM_LIMIT),
    )(*args)
    if (Mp, Np) != (M, N):
        out = out[:M, :N]
    return out


# --------------------------------------------------------------------------- #
# Two-pass tiled BatchNorm (training-mode batch statistics, biased variance)
# --------------------------------------------------------------------------- #
def _bn_stats_kernel(x_ref, s_ref):
    @pl.when(pl.program_id(0) == 0)
    def _init():
        s_ref[...] = jnp.zeros_like(s_ref)

    x = x_ref[...]
    s_ref[...] += jnp.concatenate(
        [jnp.sum(x, axis=0, keepdims=True),
         jnp.sum(x * x, axis=0, keepdims=True)], axis=0)


def _bn_apply_kernel(x_ref, sc_ref, sh_ref, o_ref):
    o_ref[...] = x_ref[...] * sc_ref[...] + sh_ref[...]


def batchnorm(x_nhwc, gamma, beta):
    N, H, W, C = x_nhwc.shape
    M = N * H * W
    Cp = _round_up(C, 128)
    tm = min(512, _round_up(M, 8))
    Mp = _round_up(M, tm)

    x2 = x_nhwc.reshape(M, C)
    if (Mp, Cp) != (M, C):
        x2 = jnp.pad(x2, ((0, Mp - M), (0, Cp - C)))

    grid_m = Mp // tm
    # Pass 1: per-channel sum / sum-of-squares (grid-resident accumulator).
    stats = pl.pallas_call(
        _bn_stats_kernel,
        out_shape=jax.ShapeDtypeStruct((2, Cp), jnp.float32),
        grid=(grid_m,),
        in_specs=[pl.BlockSpec((tm, Cp), lambda i: (i, 0))],
        out_specs=pl.BlockSpec((2, Cp), lambda i: (0, 0)),
        compiler_params=pltpu.CompilerParams(
            dimension_semantics=("arbitrary",),
            vmem_limit_bytes=VMEM_LIMIT),
    )(x2)

    mean = stats[0:1] / M
    var = jnp.maximum(stats[1:2] / M - mean * mean, 0.0)   # biased variance
    inv = jax.lax.rsqrt(var + EPS)
    gamma_p = jnp.pad(gamma.reshape(1, C), ((0, 0), (0, Cp - C)))
    beta_p = jnp.pad(beta.reshape(1, C), ((0, 0), (0, Cp - C)))
    scale = gamma_p * inv
    shift = beta_p - mean * scale

    # Pass 2: tiled affine apply.
    y = pl.pallas_call(
        _bn_apply_kernel,
        out_shape=jax.ShapeDtypeStruct((Mp, Cp), jnp.float32),
        grid=(grid_m,),
        in_specs=[
            pl.BlockSpec((tm, Cp), lambda i: (i, 0)),
            pl.BlockSpec((1, Cp), lambda i: (0, 0)),
            pl.BlockSpec((1, Cp), lambda i: (0, 0)),
        ],
        out_specs=pl.BlockSpec((tm, Cp), lambda i: (i, 0)),
        compiler_params=pltpu.CompilerParams(
            dimension_semantics=("parallel",),
            vmem_limit_bytes=VMEM_LIMIT),
    )(x2, scale, shift)
    return y[:M, :C].reshape(N, H, W, C)


# --------------------------------------------------------------------------- #
# Convolutions
# --------------------------------------------------------------------------- #
def _im2col(x, kh, kw, stride):
    """x: [N, H, W, C] (already padded) -> [N*OH*OW, kh*kw*C], (kh,kw,C) order."""
    N, H, W, C = x.shape
    OH = (H - kh) // stride + 1
    OW = (W - kw) // stride + 1
    cols = []
    for i in range(kh):
        for j in range(kw):
            cols.append(x[:, i:i + stride * OH:stride, j:j + stride * OW:stride, :])
    patches = jnp.concatenate(cols, axis=-1)
    return patches.reshape(N * OH * OW, kh * kw * C), (N, OH, OW)


def conv4x4_s2_p1(x, w_pt, pre_act=None):
    """Conv2d(k=4, s=2, p=1, bias=False), optional fused input activation.
    x: NHWC, w_pt: [Cout, Cin, 4, 4]."""
    cout, cin = w_pt.shape[0], w_pt.shape[1]
    xp = jnp.pad(x.astype(MXU_DTYPE), ((0, 0), (1, 1), (1, 1), (0, 0)))
    # TODO(synk): drive the 16 (kh,kw) taps as an in-kernel K loop to avoid
    # materializing the im2col slab in HBM.
    cols, (N, OH, OW) = _im2col(xp, 4, 4, 2)
    wmat = jnp.transpose(w_pt, (2, 3, 1, 0)).reshape(16 * cin, cout)
    out = pallas_matmul(cols, wmat, bias=None, pre_act=pre_act)
    return out.reshape(N, OH, OW, cout)


def convT4x4_s2_p1(x, w_pt, bias=None, pre_act=None, post_act=None):
    """ConvTranspose2d(k=4, s=2, p=1) via 4 per-output-parity phase matmuls.
    x: NHWC [N,H,W,Cin], w_pt: [Cin, Cout, 4, 4] -> [N, 2H, 2W, Cout]."""
    N, H, W, cin = x.shape
    cout = w_pt.shape[1]
    xp = jnp.pad(x.astype(MXU_DTYPE), ((0, 0), (1, 1), (1, 1), (0, 0)))
    phase_outs = []
    for eh in range(2):
        for ew in range(2):
            taps, wtaps = [], []
            for dh in range(2):
                for dw in range(2):
                    taps.append(xp[:, eh + dh:eh + dh + H,
                                   ew + dw:ew + dw + W, :])
                    wtaps.append(w_pt[:, :, 3 - eh - 2 * dh, 3 - ew - 2 * dw])
            cols = jnp.concatenate(taps, axis=-1).reshape(N * H * W, 4 * cin)
            wmat = jnp.concatenate(wtaps, axis=0)            # [4*Cin, Cout]
            out = pallas_matmul(cols, wmat, bias=bias,
                                pre_act=pre_act, post_act=post_act)
            phase_outs.append(out.reshape(N, H, W, cout))
    ph = jnp.stack(phase_outs, axis=0).reshape(2, 2, N, H, W, cout)
    # interleave parities: y[n, 2h+eh, 2w+ew, c] = ph[eh, ew, n, h, w, c]
    return jnp.transpose(ph, (2, 3, 0, 4, 1, 5)).reshape(N, 2 * H, 2 * W, cout)


# --------------------------------------------------------------------------- #
# UnetGenerator structure (blocks listed innermost -> outermost)
# --------------------------------------------------------------------------- #
def make_block_cfgs(input_nc, output_nc, num_downs, ngf):
    cfgs = [dict(outer=ngf * 8, inner=ngf * 8, inp=ngf * 8,
                 innermost=True, outermost=False)]
    for _ in range(num_downs - 5):
        cfgs.append(dict(outer=ngf * 8, inner=ngf * 8, inp=ngf * 8,
                         innermost=False, outermost=False))
    cfgs.append(dict(outer=ngf * 4, inner=ngf * 8, inp=ngf * 4,
                     innermost=False, outermost=False))
    cfgs.append(dict(outer=ngf * 2, inner=ngf * 4, inp=ngf * 2,
                     innermost=False, outermost=False))
    cfgs.append(dict(outer=ngf, inner=ngf * 2, inp=ngf,
                     innermost=False, outermost=False))
    cfgs.append(dict(outer=output_nc, inner=ngf, inp=input_nc,
                     innermost=False, outermost=True))
    return cfgs


def init_params(key, cfgs):
    # Deterministic synthetic init (shapes match the PyTorch module; BatchNorm
    # layers use only batch statistics so no running buffers are needed).
    params = []
    for cfg in cfgs:
        key, k1, k2, k3, k4, k5, k6, k7 = jax.random.split(key, 8)
        inner, outer, inp = cfg["inner"], cfg["outer"], cfg["inp"]
        up_in = inner if cfg["innermost"] else inner * 2
        p = {
            "down_w": 0.05 * jax.random.normal(k1, (inner, inp, 4, 4), jnp.float32),
            "up_w": 0.05 * jax.random.normal(k2, (up_in, outer, 4, 4), jnp.float32),
        }
        if cfg["outermost"]:
            # only the outermost ConvTranspose2d carries a bias
            p["up_b"] = 0.05 * jax.random.normal(k3, (outer,), jnp.float32)
        else:
            p["up_gamma"] = 1.0 + 0.1 * jax.random.normal(k4, (outer,), jnp.float32)
            p["up_beta"] = 0.1 * jax.random.normal(k5, (outer,), jnp.float32)
            if not cfg["innermost"]:
                p["down_gamma"] = 1.0 + 0.1 * jax.random.normal(k6, (inner,), jnp.float32)
                p["down_beta"] = 0.1 * jax.random.normal(k7, (inner,), jnp.float32)
        params.append(p)
    return params


def _block_forward(idx, x, cfgs, params):
    cfg, p = cfgs[idx], params[idx]
    if cfg["outermost"]:
        # downconv -> submodule -> [ReLU + upconv + bias + Tanh] (all fused)
        h = conv4x4_s2_p1(x, p["down_w"], pre_act=None)
        s = _block_forward(idx - 1, h, cfgs, params)
        return convT4x4_s2_p1(s, p["up_w"], bias=p["up_b"],
                              pre_act="relu", post_act="tanh")
    elif cfg["innermost"]:
        # [LeakyReLU + downconv] -> [ReLU + upconv] -> BN -> skip concat
        h = conv4x4_s2_p1(x, p["down_w"], pre_act="lrelu")
        u = convT4x4_s2_p1(h, p["up_w"], pre_act="relu")
        u = batchnorm(u, p["up_gamma"], p["up_beta"])
        return jnp.concatenate([x, u], axis=-1)
    else:
        # [LeakyReLU + downconv] -> BN -> sub -> [ReLU + upconv] -> BN -> concat
        h = conv4x4_s2_p1(x, p["down_w"], pre_act="lrelu")
        h = batchnorm(h, p["down_gamma"], p["down_beta"])
        s = _block_forward(idx - 1, h, cfgs, params)
        u = convT4x4_s2_p1(s, p["up_w"], pre_act="relu")
        u = batchnorm(u, p["up_gamma"], p["up_beta"])
        return jnp.concatenate([x, u], axis=-1)


def unet_generator_forward(x_nchw, cfgs, params):
    x = jnp.transpose(x_nchw, (0, 2, 3, 1))            # NCHW -> NHWC
    y = _block_forward(len(cfgs) - 1, x, cfgs, params)
    return jnp.transpose(y, (0, 3, 1, 2))               # NHWC -> NCHW


# --------------------------------------------------------------------------- #
if __name__ == "__main__":
    # Small config: UnetGenerator(input_nc=3, output_nc=3, num_downs=5, ngf=8)
    # Spatial size must be divisible by 2**num_downs -> 32x32.
    input_nc, output_nc, num_downs, ngf = 3, 3, 5, 8
    N, H, W = 2, 32, 32

    key = jax.random.PRNGKey(0)
    kx, kp = jax.random.split(key)
    x = jax.random.normal(kx, (N, input_nc, H, W), jnp.float32)

    cfgs = make_block_cfgs(input_nc, output_nc, num_downs, ngf)
    params = init_params(kp, cfgs)

    fwd = jax.jit(lambda xx: unet_generator_forward(xx, cfgs, params))
    out = jax.block_until_ready(fwd(x))

    assert out.shape == (N, output_nc, H, W), out.shape
    assert bool(jnp.all(jnp.isfinite(out)))
    assert bool(jnp.all(jnp.abs(out) <= 1.0 + 1e-6))  # Tanh output range
    print("KERNEL_OK")
</pallas_src>

<mosaic_0001>
module attributes {stable_mosaic.version = 11 : i64} {
  func.func @kernel(%arg0: i32, %arg1: i32, %arg2: i32, %arg3: memref<256x128xbf16, #tpu.memory_space<vmem>>, %arg4: memref<128x128xbf16, #tpu.memory_space<vmem>>, %arg5: memref<256x128xf32, #tpu.memory_space<vmem>>, %arg6: memref<256x128xf32, #tpu.memory_space<vmem>>) attributes {dimension_semantics = [#tpu.dimension_semantics<parallel>, #tpu.dimension_semantics<parallel>, #tpu.dimension_semantics<arbitrary>], iteration_bounds = array<i64: 2, 1, 1>, scalar_prefetch = 0 : i64, scratch_operands = 1 : i64, tpu.core_type = #tpu.core_type<tc>, window_params = [{transform_indices = @transform_0, window_bounds = array<i64: 256, 128>}, {transform_indices = @transform_1, window_bounds = array<i64: 128, 128>}, {transform_indices = @transform_2, window_bounds = array<i64: 256, 128>}]} {
    %c0_i32 = arith.constant 0 : i32
    %0 = arith.cmpi eq, %arg2, %c0_i32 : i32
    %1 = arith.extui %0 : i1 to i32
    %c0_i32_0 = arith.constant 0 : i32
    %2 = arith.cmpi ne, %1, %c0_i32_0 : i32
    scf.if %2 {
      %cst_10 = arith.constant 0.000000e+00 : f32
      %12 = vector.broadcast %cst_10 : f32 to vector<256x128xf32>
      %c0_11 = arith.constant 0 : index
      %c0_12 = arith.constant 0 : index
      %13 = vector.load %arg6[%c0_11, %c0_12] : memref<256x128xf32, #tpu.memory_space<vmem>>, vector<256x128xf32>
      tpu.vector_store %arg6[%c0_11, %c0_12], %12 {strides = array<i32>} : memref<256x128xf32, #tpu.memory_space<vmem>>, vector<256x128xf32>,
    } else {
    }
    %c0 = arith.constant 0 : index
    %c0_1 = arith.constant 0 : index
    %3 = vector.load %arg3[%c0, %c0_1] : memref<256x128xbf16, #tpu.memory_space<vmem>>, vector<256x128xbf16>
    %c0_2 = arith.constant 0 : index
    %c0_3 = arith.constant 0 : index
    %4 = vector.load %arg6[%c0_2, %c0_3] : memref<256x128xf32, #tpu.memory_space<vmem>>, vector<256x128xf32>
    %c0_4 = arith.constant 0 : index
    %c0_5 = arith.constant 0 : index
    %5 = vector.load %arg4[%c0_4, %c0_5] : memref<128x128xbf16, #tpu.memory_space<vmem>>, vector<128x128xbf16>
    %cst = arith.constant dense<0.000000e+00> : vector<256x128xf32>
    %6 = tpu.matmul %3, %5, %cst {dimension_numbers = #tpu.dot_dimension_numbers<[1], [0], [0], [1], [0, 0, 1, 1], [], []>} : vector<256x128xbf16>, vector<128x128xbf16>, vector<256x128xf32> -> vector<256x128xf32>
    %7 = arith.addf %4, %6 : vector<256x128xf32>
    %c0_6 = arith.constant 0 : index
    %c0_7 = arith.constant 0 : index
    %8 = vector.load %arg6[%c0_6, %c0_7] : memref<256x128xf32, #tpu.memory_space<vmem>>, vector<256x128xf32>
    tpu.vector_store %arg6[%c0_6, %c0_7], %7 {strides = array<i32>} : memref<256x128xf32, #tpu.memory_space<vmem>>, vector<256x128xf32>,
    %c0_i32_8 = arith.constant 0 : i32
    %9 = arith.cmpi eq, %arg2, %c0_i32_8 : i32
    %10 = arith.extui %9 : i1 to i32
    %c0_i32_9 = arith.constant 0 : i32
    %11 = arith.cmpi ne, %10, %c0_i32_9 : i32
    scf.if %11 {
      %c0_10 = arith.constant 0 : index
      %c0_11 = arith.constant 0 : index
      %12 = vector.load %arg6[%c0_10, %c0_11] : memref<256x128xf32, #tpu.memory_space<vmem>>, vector<256x128xf32>
      %c0_12 = arith.constant 0 : index
      %c0_13 = arith.constant 0 : index
      %13 = vector.load %arg5[%c0_12, %c0_13] : memref<256x128xf32, #tpu.memory_space<vmem>>, vector<256x128xf32>
      tpu.vector_store %arg5[%c0_12, %c0_13], %12 {strides = array<i32>} : memref<256x128xf32, #tpu.memory_space<vmem>>, vector<256x128xf32>,
    } else {
    }
    return
  }
  func.func @transform_0(%arg0: i32, %arg1: i32, %arg2: i32) -> (i32, i32) {
    %c0_i32 = arith.constant 0 : i32
    return %arg0, %arg2 : i32, i32
  }
  func.func @transform_1(%arg0: i32, %arg1: i32, %arg2: i32) -> (i32, i32) {
    %c0_i32 = arith.constant 0 : i32
    return %arg2, %arg1 : i32, i32
  }
  func.func @transform_2(%arg0: i32, %arg1: i32, %arg2: i32) -> (i32, i32) {
    %c0_i32 = arith.constant 0 : i32
    return %arg0, %arg1 : i32, i32
  }
}

module attributes {stable_mosaic.version = 11 : i64} {
  func.func @_bn_stats_kernel(%arg0: i32, %arg1: memref<128x128xf32, #tpu.memory_space<vmem>>, %arg2: memref<2x128xf32, #tpu.memory_space<vmem>>) attributes {dimension_semantics = [#tpu.dimension_semantics<arbitrary>], iteration_bounds = array<i64: 1>, scalar_prefetch = 0 : i64, scratch_operands = 0 : i64, tpu.core_type = #tpu.core_type<tc>, window_params = [{transform_indices = @transform_0, window_bounds = array<i64: 128, 128>}, {pipeline_mode = #tpu.pipeline_mode<synchronous>, transform_indices = @transform_1, window_bounds = array<i64: 2, 128>}]} {
    %c0_i32 = arith.constant 0 : i32
    %0 = arith.cmpi eq, %arg0, %c0_i32 : i32
    %1 = arith.extui %0 : i1 to i32
    %c0_i32_0 = arith.constant 0 : i32
    %2 = arith.cmpi ne, %1, %c0_i32_0 : i32
    scf.if %2 {
      %cst_7 = arith.constant 0.000000e+00 : f32
      %13 = vector.broadcast %cst_7 : f32 to vector<2x128xf32>
      %c0_8 = arith.constant 0 : index
      %c0_9 = arith.constant 0 : index
      %14 = vector.load %arg2[%c0_8, %c0_9] : memref<2x128xf32, #tpu.memory_space<vmem>>, vector<2x128xf32>
      tpu.vector_store %arg2[%c0_8, %c0_9], %13 {strides = array<i32>} : memref<2x128xf32, #tpu.memory_space<vmem>>, vector<2x128xf32>,
    } else {
    }
    %c0 = arith.constant 0 : index
    %c0_1 = arith.constant 0 : index
    %3 = vector.load %arg1[%c0, %c0_1] : memref<128x128xf32, #tpu.memory_space<vmem>>, vector<128x128xf32>
    %c0_2 = arith.constant 0 : index
    %c0_3 = arith.constant 0 : index
    %4 = vector.load %arg2[%c0_2, %c0_3] : memref<2x128xf32, #tpu.memory_space<vmem>>, vector<2x128xf32>
    %cst = arith.constant dense<0.000000e+00> : vector<128xf32>
    %5 = vector.multi_reduction <add>, %3, %cst [0] : vector<128x128xf32> to vector<128xf32>
    %6 = vector.shape_cast %5 : vector<128xf32> to vector<1x128xf32>
    %7 = arith.mulf %3, %3 : vector<128x128xf32>
    %cst_4 = arith.constant dense<0.000000e+00> : vector<128xf32>
    %8 = vector.multi_reduction <add>, %7, %cst_4 [0] : vector<128x128xf32> to vector<128xf32>
    %9 = vector.shape_cast %8 : vector<128xf32> to vector<1x128xf32>
    %10 = tpu.concatenate %6, %9 in 0 : vector<1x128xf32>, vector<1x128xf32> -> vector<2x128xf32>
    %11 = arith.addf %4, %10 : vector<2x128xf32>
    %c0_5 = arith.constant 0 : index
    %c0_6 = arith.constant 0 : index
    %12 = vector.load %arg2[%c0_5, %c0_6] : memref<2x128xf32, #tpu.memory_space<vmem>>, vector<2x128xf32>
    tpu.vector_store %arg2[%c0_5, %c0_6], %11 {strides = array<i32>} : memref<2x128xf32, #tpu.memory_space<vmem>>, vector<2x128xf32>,
    return
  }
  func.func @transform_0(%arg0: i32) -> (i32, i32) {
    %c0_i32 = arith.constant 0 : i32
    %c0_i32_0 = arith.constant 0 : i32
    return %arg0, %c0_i32 : i32, i32
  }
  func.func @transform_1(%arg0: i32) -> (i32, i32) {
    %c0_i32 = arith.constant 0 : i32
    %c0_i32_0 = arith.constant 0 : i32
    %c0_i32_1 = arith.constant 0 : i32
    return %c0_i32, %c0_i32_0 : i32, i32
  }
}

module attributes {stable_mosaic.version = 11 : i64} {
  func.func @kernel(%arg0: i32, %arg1: i32, %arg2: i32, %arg3: memref<128x128xbf16, #tpu.memory_space<vmem>>, %arg4: memref<128x128xbf16, #tpu.memory_space<vmem>>, %arg5: memref<128x128xf32, #tpu.memory_space<vmem>>, %arg6: memref<128x128xf32, #tpu.memory_space<vmem>>) attributes {dimension_semantics = [#tpu.dimension_semantics<parallel>, #tpu.dimension_semantics<parallel>, #tpu.dimension_semantics<arbitrary>], iteration_bounds = array<i64: 1, 1, 1>, scalar_prefetch = 0 : i64, scratch_operands = 1 : i64, tpu.core_type = #tpu.core_type<tc>, window_params = [{transform_indices = @transform_0, window_bounds = array<i64: 128, 128>}, {transform_indices = @transform_1, window_bounds = array<i64: 128, 128>}, {transform_indices = @transform_2, window_bounds = array<i64: 128, 128>}]} {
    %c0_i32 = arith.constant 0 : i32
    %0 = arith.cmpi eq, %arg2, %c0_i32 : i32
    %1 = arith.extui %0 : i1 to i32
    %c0_i32_0 = arith.constant 0 : i32
    %2 = arith.cmpi ne, %1, %c0_i32_0 : i32
    scf.if %2 {
      %cst_12 = arith.constant 0.000000e+00 : f32
      %17 = vector.broadcast %cst_12 : f32 to vector<128x128xf32>
      %c0_13 = arith.constant 0 : index
      %c0_14 = arith.constant 0 : index
      %18 = vector.load %arg6[%c0_13, %c0_14] : memref<128x128xf32, #tpu.memory_space<vmem>>, vector<128x128xf32>
      tpu.vector_store %arg6[%c0_13, %c0_14], %17 {strides = array<i32>} : memref<128x128xf32, #tpu.memory_space<vmem>>, vector<128x128xf32>,
    } else {
    }
    %c0 = arith.constant 0 : index
    %c0_1 = arith.constant 0 : index
    %3 = vector.load %arg3[%c0, %c0_1] : memref<128x128xbf16, #tpu.memory_space<vmem>>, vector<128x128xbf16>
    %cst = arith.constant 0.000000e+00 : bf16
    %4 = vector.broadcast %cst : bf16 to vector<128x128xbf16>
    %5 = arith.cmpf ogt, %3, %4 : vector<128x128xbf16>
    %cst_2 = arith.constant 2.001950e-01 : bf16
    %6 = vector.broadcast %cst_2 : bf16 to vector<128x128xbf16>
    %7 = arith.mulf %3, %6 : vector<128x128xbf16>
    %8 = arith.select %5, %3, %7 : vector<128x128xi1>, vector<128x128xbf16>
    %c0_3 = arith.constant 0 : index
    %c0_4 = arith.constant 0 : index
    %9 = vector.load %arg6[%c0_3, %c0_4] : memref<128x128xf32, #tpu.memory_space<vmem>>, vector<128x128xf32>
    %c0_5 = arith.constant 0 : index
    %c0_6 = arith.constant 0 : index
    %10 = vector.load %arg4[%c0_5, %c0_6] : memref<128x128xbf16, #tpu.memory_space<vmem>>, vector<128x128xbf16>
    %cst_7 = arith.constant dense<0.000000e+00> : vector<128x128xf32>
    %11 = tpu.matmul %8, %10, %cst_7 {dimension_numbers = #tpu.dot_dimension_numbers<[1], [0], [0], [1], [0, 0, 1, 1], [], []>} : vector<128x128xbf16>, vector<128x128xbf16>, vector<128x128xf32> -> vector<128x128xf32>
    %12 = arith.addf %9, %11 : vector<128x128xf32>
    %c0_8 = arith.constant 0 : index
    %c0_9 = arith.constant 0 : index
    %13 = vector.load %arg6[%c0_8, %c0_9] : memref<128x128xf32, #tpu.memory_space<vmem>>, vector<128x128xf32>
    tpu.vector_store %arg6[%c0_8, %c0_9], %12 {strides = array<i32>} : memref<128x128xf32, #tpu.memory_space<vmem>>, vector<128x128xf32>,
    %c0_i32_10 = arith.constant 0 : i32
    %14 = arith.cmpi eq, %arg2, %c0_i32_10 : i32
    %15 = arith.extui %14 : i1 to i32
    %c0_i32_11 = arith.constant 0 : i32
    %16 = arith.cmpi ne, %15, %c0_i32_11 : i32
    scf.if %16 {
      %c0_12 = arith.constant 0 : index
      %c0_13 = arith.constant 0 : index
      %17 = vector.load %arg6[%c0_12, %c0_13] : memref<128x128xf32, #tpu.memory_space<vmem>>, vector<128x128xf32>
      %c0_14 = arith.constant 0 : index
      %c0_15 = arith.constant 0 : index
      %18 = vector.load %arg5[%c0_14, %c0_15] : memref<128x128xf32, #tpu.memory_space<vmem>>, vector<128x128xf32>
      tpu.vector_store %arg5[%c0_14, %c0_15], %17 {strides = array<i32>} : memref<128x128xf32, #tpu.memory_space<vmem>>, vector<128x128xf32>,
    } else {
    }
    return
  }
  func.func @transform_0(%arg0: i32, %arg1: i32, %arg2: i32) -> (i32, i32) {
    %c0_i32 = arith.constant 0 : i32
    return %arg0, %arg2 : i32, i32
  }
  func.func @transform_1(%arg0: i32, %arg1: i32, %arg2: i32) -> (i32, i32) {
    %c0_i32 = arith.constant 0 : i32
    return %arg2, %arg1 : i32, i32
  }
  func.func @transform_2(%arg0: i32, %arg1: i32, %arg2: i32) -> (i32, i32) {
    %c0_i32 = arith.constant 0 : i32
    return %arg0, %arg1 : i32, i32
  }
}

module attributes {stable_mosaic.version = 11 : i64} {
  func.func @_bn_apply_kernel(%arg0: i32, %arg1: memref<128x128xf32, #tpu.memory_space<vmem>>, %arg2: memref<1x128xf32, #tpu.memory_space<vmem>>, %arg3: memref<1x128xf32, #tpu.memory_space<vmem>>, %arg4: memref<128x128xf32, #tpu.memory_space<vmem>>) attributes {dimension_semantics = [#tpu.dimension_semantics<parallel>], iteration_bounds = array<i64: 1>, scalar_prefetch = 0 : i64, scratch_operands = 0 : i64, tpu.core_type = #tpu.core_type<tc>, window_params = [{transform_indices = @transform_0, window_bounds = array<i64: 128, 128>}, {pipeline_mode = #tpu.pipeline_mode<synchronous>, transform_indices = @transform_1, window_bounds = array<i64: 1, 128>}, {pipeline_mode = #tpu.pipeline_mode<synchronous>, transform_indices = @transform_2, window_bounds = array<i64: 1, 128>}, {transform_indices = @transform_3, window_bounds = array<i64: 128, 128>}]} {
    %c0 = arith.constant 0 : index
    %c0_0 = arith.constant 0 : index
    %0 = vector.load %arg1[%c0, %c0_0] : memref<128x128xf32, #tpu.memory_space<vmem>>, vector<128x128xf32>
    %c0_1 = arith.constant 0 : index
    %c0_2 = arith.constant 0 : index
    %1 = vector.load %arg2[%c0_1, %c0_2] : memref<1x128xf32, #tpu.memory_space<vmem>>, vector<1x128xf32>
    %2 = vector.broadcast %1 : vector<1x128xf32> to vector<128x128xf32>
    %3 = arith.mulf %0, %2 : vector<128x128xf32>
    %c0_3 = arith.constant 0 : index
    %c0_4 = arith.constant 0 : index
    %4 = vector.load %arg3[%c0_3, %c0_4] : memref<1x128xf32, #tpu.memory_space<vmem>>, vector<1x128xf32>
    %5 = vector.broadcast %4 : vector<1x128xf32> to vector<128x128xf32>
    %6 = arith.addf %3, %5 : vector<128x128xf32>
    %c0_5 = arith.constant 0 : index
    %c0_6 = arith.constant 0 : index
    %7 = vector.load %arg4[%c0_5, %c0_6] : memref<128x128xf32, #tpu.memory_space<vmem>>, vector<128x128xf32>
    tpu.vector_store %arg4[%c0_5, %c0_6], %6 {strides = array<i32>} : memref<128x128xf32, #tpu.memory_space<vmem>>, vector<128x128xf32>,
    return
  }
  func.func @transform_0(%arg0: i32) -> (i32, i32) {
    %c0_i32 = arith.constant 0 : i32
    %c0_i32_0 = arith.constant 0 : i32
    return %arg0, %c0_i32 : i32, i32
  }
  func.func @transform_1(%arg0: i32) -> (i32, i32) {
    %c0_i32 = arith.constant 0 : i32
    %c0_i32_0 = arith.constant 0 : i32
    %c0_i32_1 = arith.constant 0 : i32
    return %c0_i32, %c0_i32_0 : i32, i32
  }
  func.func @transform_2(%arg0: i32) -> (i32, i32) {
    %c0_i32 = arith.constant 0 : i32
    %c0_i32_0 = arith.constant 0 : i32
    %c0_i32_1 = arith.constant 0 : i32
    return %c0_i32, %c0_i32_0 : i32, i32
  }
  func.func @transform_3(%arg0: i32) -> (i32, i32) {
    %c0_i32 = arith.constant 0 : i32
    %c0_i32_0 = arith.constant 0 : i32
    return %arg0, %c0_i32 : i32, i32
  }
}

module attributes {stable_mosaic.version = 11 : i64} {
  func.func @kernel(%arg0: i32, %arg1: i32, %arg2: i32, %arg3: memref<32x256xbf16, #tpu.memory_space<vmem>>, %arg4: memref<256x128xbf16, #tpu.memory_space<vmem>>, %arg5: memref<32x128xf32, #tpu.memory_space<vmem>>, %arg6: memref<32x128xf32, #tpu.memory_space<vmem>>) attributes {dimension_semantics = [#tpu.dimension_semantics<parallel>, #tpu.dimension_semantics<parallel>, #tpu.dimension_semantics<arbitrary>], iteration_bounds = array<i64: 1, 1, 1>, scalar_prefetch = 0 : i64, scratch_operands = 1 : i64, tpu.core_type = #tpu.core_type<tc>, window_params = [{transform_indices = @transform_0, window_bounds = array<i64: 32, 256>}, {transform_indices = @transform_1, window_bounds = array<i64: 256, 128>}, {transform_indices = @transform_2, window_bounds = array<i64: 32, 128>}]} {
    %c0_i32 = arith.constant 0 : i32
    %0 = arith.cmpi eq, %arg2, %c0_i32 : i32
    %1 = arith.extui %0 : i1 to i32
    %c0_i32_0 = arith.constant 0 : i32
    %2 = arith.cmpi ne, %1, %c0_i32_0 : i32
    scf.if %2 {
      %cst_12 = arith.constant 0.000000e+00 : f32
      %17 = vector.broadcast %cst_12 : f32 to vector<32x128xf32>
      %c0_13 = arith.constant 0 : index
      %c0_14 = arith.constant 0 : index
      %18 = vector.load %arg6[%c0_13, %c0_14] : memref<32x128xf32, #tpu.memory_space<vmem>>, vector<32x128xf32>
      tpu.vector_store %arg6[%c0_13, %c0_14], %17 {strides = array<i32>} : memref<32x128xf32, #tpu.memory_space<vmem>>, vector<32x128xf32>,
    } else {
    }
    %c0 = arith.constant 0 : index
    %c0_1 = arith.constant 0 : index
    %3 = vector.load %arg3[%c0, %c0_1] : memref<32x256xbf16, #tpu.memory_space<vmem>>, vector<32x256xbf16>
    %cst = arith.constant 0.000000e+00 : bf16
    %4 = vector.broadcast %cst : bf16 to vector<32x256xbf16>
    %5 = arith.cmpf ogt, %3, %4 : vector<32x256xbf16>
    %cst_2 = arith.constant 2.001950e-01 : bf16
    %6 = vector.broadcast %cst_2 : bf16 to vector<32x256xbf16>
    %7 = arith.mulf %3, %6 : vector<32x256xbf16>
    %8 = arith.select %5, %3, %7 : vector<32x256xi1>, vector<32x256xbf16>
    %c0_3 = arith.constant 0 : index
    %c0_4 = arith.constant 0 : index
    %9 = vector.load %arg6[%c0_3, %c0_4] : memref<32x128xf32, #tpu.memory_space<vmem>>, vector<32x128xf32>
    %c0_5 = arith.constant 0 : index
    %c0_6 = arith.constant 0 : index
    %10 = vector.load %arg4[%c0_5, %c0_6] : memref<256x128xbf16, #tpu.memory_space<vmem>>, vector<256x128xbf16>
    %cst_7 = arith.constant dense<0.000000e+00> : vector<32x128xf32>
    %11 = tpu.matmul %8, %10, %cst_7 {dimension_numbers = #tpu.dot_dimension_numbers<[1], [0], [0], [1], [0, 0, 1, 1], [], []>} : vector<32x256xbf16>, vector<256x128xbf16>, vector<32x128xf32> -> vector<32x128xf32>
    %12 = arith.addf %9, %11 : vector<32x128xf32>
    %c0_8 = arith.constant 0 : index
    %c0_9 = arith.constant 0 : index
    %13 = vector.load %arg6[%c0_8, %c0_9] : memref<32x128xf32, #tpu.memory_space<vmem>>, vector<32x128xf32>
    tpu.vector_store %arg6[%c0_8, %c0_9], %12 {strides = array<i32>} : memref<32x128xf32, #tpu.memory_space<vmem>>, vector<32x128xf32>,
    %c0_i32_10 = arith.constant 0 : i32
    %14 = arith.cmpi eq, %arg2, %c0_i32_10 : i32
    %15 = arith.extui %14 : i1 to i32
    %c0_i32_11 = arith.constant 0 : i32
    %16 = arith.cmpi ne, %15, %c0_i32_11 : i32
    scf.if %16 {
      %c0_12 = arith.constant 0 : index
      %c0_13 = arith.constant 0 : index
      %17 = vector.load %arg6[%c0_12, %c0_13] : memref<32x128xf32, #tpu.memory_space<vmem>>, vector<32x128xf32>
      %c0_14 = arith.constant 0 : index
      %c0_15 = arith.constant 0 : index
      %18 = vector.load %arg5[%c0_14, %c0_15] : memref<32x128xf32, #tpu.memory_space<vmem>>, vector<32x128xf32>
      tpu.vector_store %arg5[%c0_14, %c0_15], %17 {strides = array<i32>} : memref<32x128xf32, #tpu.memory_space<vmem>>, vector<32x128xf32>,
    } else {
    }
    return
  }
  func.func @transform_0(%arg0: i32, %arg1: i32, %arg2: i32) -> (i32, i32) {
    %c0_i32 = arith.constant 0 : i32
    return %arg0, %arg2 : i32, i32
  }
  func.func @transform_1(%arg0: i32, %arg1: i32, %arg2: i32) -> (i32, i32) {
    %c0_i32 = arith.constant 0 : i32
    return %arg2, %arg1 : i32, i32
  }
  func.func @transform_2(%arg0: i32, %arg1: i32, %arg2: i32) -> (i32, i32) {
    %c0_i32 = arith.constant 0 : i32
    return %arg0, %arg1 : i32, i32
  }
}

module attributes {stable_mosaic.version = 11 : i64} {
  func.func @_bn_apply_kernel(%arg0: i32, %arg1: memref<32x128xf32, #tpu.memory_space<vmem>>, %arg2: memref<1x128xf32, #tpu.memory_space<vmem>>, %arg3: memref<1x128xf32, #tpu.memory_space<vmem>>, %arg4: memref<32x128xf32, #tpu.memory_space<vmem>>) attributes {dimension_semantics = [#tpu.dimension_semantics<parallel>], iteration_bounds = array<i64: 1>, scalar_prefetch = 0 : i64, scratch_operands = 0 : i64, tpu.core_type = #tpu.core_type<tc>, window_params = [{transform_indices = @transform_0, window_bounds = array<i64: 32, 128>}, {pipeline_mode = #tpu.pipeline_mode<synchronous>, transform_indices = @transform_1, window_bounds = array<i64: 1, 128>}, {pipeline_mode = #tpu.pipeline_mode<synchronous>, transform_indices = @transform_2, window_bounds = array<i64: 1, 128>}, {transform_indices = @transform_3, window_bounds = array<i64: 32, 128>}]} {
    %c0 = arith.constant 0 : index
    %c0_0 = arith.constant 0 : index
    %0 = vector.load %arg1[%c0, %c0_0] : memref<32x128xf32, #tpu.memory_space<vmem>>, vector<32x128xf32>
    %c0_1 = arith.constant 0 : index
    %c0_2 = arith.constant 0 : index
    %1 = vector.load %arg2[%c0_1, %c0_2] : memref<1x128xf32, #tpu.memory_space<vmem>>, vector<1x128xf32>
    %2 = vector.broadcast %1 : vector<1x128xf32> to vector<32x128xf32>
    %3 = arith.mulf %0, %2 : vector<32x128xf32>
    %c0_3 = arith.constant 0 : index
    %c0_4 = arith.constant 0 : index
    %4 = vector.load %arg3[%c0_3, %c0_4] : memref<1x128xf32, #tpu.memory_space<vmem>>, vector<1x128xf32>
    %5 = vector.broadcast %4 : vector<1x128xf32> to vector<32x128xf32>
    %6 = arith.addf %3, %5 : vector<32x128xf32>
    %c0_5 = arith.constant 0 : index
    %c0_6 = arith.constant 0 : index
    %7 = vector.load %arg4[%c0_5, %c0_6] : memref<32x128xf32, #tpu.memory_space<vmem>>, vector<32x128xf32>
    tpu.vector_store %arg4[%c0_5, %c0_6], %6 {strides = array<i32>} : memref<32x128xf32, #tpu.memory_space<vmem>>, vector<32x128xf32>,
    return
  }
  func.func @transform_0(%arg0: i32) -> (i32, i32) {
    %c0_i32 = arith.constant 0 : i32
    %c0_i32_0 = arith.constant 0 : i32
    return %arg0, %c0_i32 : i32, i32
  }
  func.func @transform_1(%arg0: i32) -> (i32, i32) {
    %c0_i32 = arith.constant 0 : i32
    %c0_i32_0 = arith.constant 0 : i32
    %c0_i32_1 = arith.constant 0 : i32
    return %c0_i32, %c0_i32_0 : i32, i32
  }
  func.func @transform_2(%arg0: i32) -> (i32, i32) {
    %c0_i32 = arith.constant 0 : i32
    %c0_i32_0 = arith.constant 0 : i32
    %c0_i32_1 = arith.constant 0 : i32
    return %c0_i32, %c0_i32_0 : i32, i32
  }
  func.func @transform_3(%arg0: i32) -> (i32, i32) {
    %c0_i32 = arith.constant 0 : i32
    %c0_i32_0 = arith.constant 0 : i32
    return %arg0, %c0_i32 : i32, i32
  }
}

module attributes {stable_mosaic.version = 11 : i64} {
  func.func @_bn_stats_kernel(%arg0: i32, %arg1: memref<32x128xf32, #tpu.memory_space<vmem>>, %arg2: memref<2x128xf32, #tpu.memory_space<vmem>>) attributes {dimension_semantics = [#tpu.dimension_semantics<arbitrary>], iteration_bounds = array<i64: 1>, scalar_prefetch = 0 : i64, scratch_operands = 0 : i64, tpu.core_type = #tpu.core_type<tc>, window_params = [{transform_indices = @transform_0, window_bounds = array<i64: 32, 128>}, {pipeline_mode = #tpu.pipeline_mode<synchronous>, transform_indices = @transform_1, window_bounds = array<i64: 2, 128>}]} {
    %c0_i32 = arith.constant 0 : i32
    %0 = arith.cmpi eq, %arg0, %c0_i32 : i32
    %1 = arith.extui %0 : i1 to i32
    %c0_i32_0 = arith.constant 0 : i32
    %2 = arith.cmpi ne, %1, %c0_i32_0 : i32
    scf.if %2 {
      %cst_7 = arith.constant 0.000000e+00 : f32
      %13 = vector.broadcast %cst_7 : f32 to vector<2x128xf32>
      %c0_8 = arith.constant 0 : index
      %c0_9 = arith.constant 0 : index
      %14 = vector.load %arg2[%c0_8, %c0_9] : memref<2x128xf32, #tpu.memory_space<vmem>>, vector<2x128xf32>
      tpu.vector_store %arg2[%c0_8, %c0_9], %13 {strides = array<i32>} : memref<2x128xf32, #tpu.memory_space<vmem>>, vector<2x128xf32>,
    } else {
    }
    %c0 = arith.constant 0 : index
    %c0_1 = arith.constant 0 : index
    %3 = vector.load %arg1[%c0, %c0_1] : memref<32x128xf32, #tpu.memory_space<vmem>>, vector<32x128xf32>
    %c0_2 = arith.constant 0 : index
    %c0_3 = arith.constant 0 : index
    %4 = vector.load %arg2[%c0_2, %c0_3] : memref<2x128xf32, #tpu.memory_space<vmem>>, vector<2x128xf32>
    %cst = arith.constant dense<0.000000e+00> : vector<128xf32>
    %5 = vector.multi_reduction <add>, %3, %cst [0] : vector<32x128xf32> to vector<128xf32>
    %6 = vector.shape_cast %5 : vector<128xf32> to vector<1x128xf32>
    %7 = arith.mulf %3, %3 : vector<32x128xf32>
    %cst_4 = arith.constant dense<0.000000e+00> : vector<128xf32>
    %8 = vector.multi_reduction <add>, %7, %cst_4 [0] : vector<32x128xf32> to vector<128xf32>
    %9 = vector.shape_cast %8 : vector<128xf32> to vector<1x128xf32>
    %10 = tpu.concatenate %6, %9 in 0 : vector<1x128xf32>, vector<1x128xf32> -> vector<2x128xf32>
    %11 = arith.addf %4, %10 : vector<2x128xf32>
    %c0_5 = arith.constant 0 : index
    %c0_6 = arith.constant 0 : index
    %12 = vector.load %arg2[%c0_5, %c0_6] : memref<2x128xf32, #tpu.memory_space<vmem>>, vector<2x128xf32>
    tpu.vector_store %arg2[%c0_5, %c0_6], %11 {strides = array<i32>} : memref<2x128xf32, #tpu.memory_space<vmem>>, vector<2x128xf32>,
    return
  }
  func.func @transform_0(%arg0: i32) -> (i32, i32) {
    %c0_i32 = arith.constant 0 : i32
    %c0_i32_0 = arith.constant 0 : i32
    return %arg0, %c0_i32 : i32, i32
  }
  func.func @transform_1(%arg0: i32) -> (i32, i32) {
    %c0_i32 = arith.constant 0 : i32
    %c0_i32_0 = arith.constant 0 : i32
    %c0_i32_1 = arith.constant 0 : i32
    return %c0_i32, %c0_i32_0 : i32, i32
  }
}

module attributes {stable_mosaic.version = 11 : i64} {
  func.func @_bn_apply_kernel(%arg0: i32, %arg1: memref<8x128xf32, #tpu.memory_space<vmem>>, %arg2: memref<1x128xf32, #tpu.memory_space<vmem>>, %arg3: memref<1x128xf32, #tpu.memory_space<vmem>>, %arg4: memref<8x128xf32, #tpu.memory_space<vmem>>) attributes {dimension_semantics = [#tpu.dimension_semantics<parallel>], iteration_bounds = array<i64: 1>, scalar_prefetch = 0 : i64, scratch_operands = 0 : i64, tpu.core_type = #tpu.core_type<tc>, window_params = [{transform_indices = @transform_0, window_bounds = array<i64: 8, 128>}, {pipeline_mode = #tpu.pipeline_mode<synchronous>, transform_indices = @transform_1, window_bounds = array<i64: 1, 128>}, {pipeline_mode = #tpu.pipeline_mode<synchronous>, transform_indices = @transform_2, window_bounds = array<i64: 1, 128>}, {transform_indices = @transform_3, window_bounds = array<i64: 8, 128>}]} {
    %c0 = arith.constant 0 : index
    %c0_0 = arith.constant 0 : index
    %0 = vector.load %arg1[%c0, %c0_0] : memref<8x128xf32, #tpu.memory_space<vmem>>, vector<8x128xf32>
    %c0_1 = arith.constant 0 : index
    %c0_2 = arith.constant 0 : index
    %1 = vector.load %arg2[%c0_1, %c0_2] : memref<1x128xf32, #tpu.memory_space<vmem>>, vector<1x128xf32>
    %2 = vector.broadcast %1 : vector<1x128xf32> to vector<8x128xf32>
    %3 = arith.mulf %0, %2 : vector<8x128xf32>
    %c0_3 = arith.constant 0 : index
    %c0_4 = arith.constant 0 : index
    %4 = vector.load %arg3[%c0_3, %c0_4] : memref<1x128xf32, #tpu.memory_space<vmem>>, vector<1x128xf32>
    %5 = vector.broadcast %4 : vector<1x128xf32> to vector<8x128xf32>
    %6 = arith.addf %3, %5 : vector<8x128xf32>
    %c0_5 = arith.constant 0 : index
    %c0_6 = arith.constant 0 : index
    %7 = vector.load %arg4[%c0_5, %c0_6] : memref<8x128xf32, #tpu.memory_space<vmem>>, vector<8x128xf32>
    tpu.vector_store %arg4[%c0_5, %c0_6], %6 {strides = array<i32>} : memref<8x128xf32, #tpu.memory_space<vmem>>, vector<8x128xf32>,
    return
  }
  func.func @transform_0(%arg0: i32) -> (i32, i32) {
    %c0_i32 = arith.constant 0 : i32
    %c0_i32_0 = arith.constant 0 : i32
    return %arg0, %c0_i32 : i32, i32
  }
  func.func @transform_1(%arg0: i32) -> (i32, i32) {
    %c0_i32 = arith.constant 0 : i32
    %c0_i32_0 = arith.constant 0 : i32
    %c0_i32_1 = arith.constant 0 : i32
    return %c0_i32, %c0_i32_0 : i32, i32
  }
  func.func @transform_2(%arg0: i32) -> (i32, i32) {
    %c0_i32 = arith.constant 0 : i32
    %c0_i32_0 = arith.constant 0 : i32
    %c0_i32_1 = arith.constant 0 : i32
    return %c0_i32, %c0_i32_0 : i32, i32
  }
  func.func @transform_3(%arg0: i32) -> (i32, i32) {
    %c0_i32 = arith.constant 0 : i32
    %c0_i32_0 = arith.constant 0 : i32
    return %arg0, %c0_i32 : i32, i32
  }
}

module attributes {stable_mosaic.version = 11 : i64} {
  func.func @kernel(%arg0: i32, %arg1: i32, %arg2: i32, %arg3: memref<8x512xbf16, #tpu.memory_space<vmem>>, %arg4: memref<512x128xbf16, #tpu.memory_space<vmem>>, %arg5: memref<8x128xf32, #tpu.memory_space<vmem>>, %arg6: memref<8x128xf32, #tpu.memory_space<vmem>>) attributes {dimension_semantics = [#tpu.dimension_semantics<parallel>, #tpu.dimension_semantics<parallel>, #tpu.dimension_semantics<arbitrary>], iteration_bounds = array<i64: 1, 1, 1>, scalar_prefetch = 0 : i64, scratch_operands = 1 : i64, tpu.core_type = #tpu.core_type<tc>, window_params = [{transform_indices = @transform_0, window_bounds = array<i64: 8, 512>}, {transform_indices = @transform_1, window_bounds = array<i64: 512, 128>}, {transform_indices = @transform_2, window_bounds = array<i64: 8, 128>}]} {
    %c0_i32 = arith.constant 0 : i32
    %0 = arith.cmpi eq, %arg2, %c0_i32 : i32
    %1 = arith.extui %0 : i1 to i32
    %c0_i32_0 = arith.constant 0 : i32
    %2 = arith.cmpi ne, %1, %c0_i32_0 : i32
    scf.if %2 {
      %cst_12 = arith.constant 0.000000e+00 : f32
      %17 = vector.broadcast %cst_12 : f32 to vector<8x128xf32>
      %c0_13 = arith.constant 0 : index
      %c0_14 = arith.constant 0 : index
      %18 = vector.load %arg6[%c0_13, %c0_14] : memref<8x128xf32, #tpu.memory_space<vmem>>, vector<8x128xf32>
      tpu.vector_store %arg6[%c0_13, %c0_14], %17 {strides = array<i32>} : memref<8x128xf32, #tpu.memory_space<vmem>>, vector<8x128xf32>,
    } else {
    }
    %c0 = arith.constant 0 : index
    %c0_1 = arith.constant 0 : index
    %3 = vector.load %arg3[%c0, %c0_1] : memref<8x512xbf16, #tpu.memory_space<vmem>>, vector<8x512xbf16>
    %cst = arith.constant 0.000000e+00 : bf16
    %4 = vector.broadcast %cst : bf16 to vector<8x512xbf16>
    %5 = arith.cmpf ogt, %3, %4 : vector<8x512xbf16>
    %cst_2 = arith.constant 2.001950e-01 : bf16
    %6 = vector.broadcast %cst_2 : bf16 to vector<8x512xbf16>
    %7 = arith.mulf %3, %6 : vector<8x512xbf16>
    %8 = arith.select %5, %3, %7 : vector<8x512xi1>, vector<8x512xbf16>
    %c0_3 = arith.constant 0 : index
    %c0_4 = arith.constant 0 : index
    %9 = vector.load %arg6[%c0_3, %c0_4] : memref<8x128xf32, #tpu.memory_space<vmem>>, vector<8x128xf32>
    %c0_5 = arith.constant 0 : index
    %c0_6 = arith.constant 0 : index
    %10 = vector.load %arg4[%c0_5, %c0_6] : memref<512x128xbf16, #tpu.memory_space<vmem>>, vector<512x128xbf16>
    %cst_7 = arith.constant dense<0.000000e+00> : vector<8x128xf32>
    %11 = tpu.matmul %8, %10, %cst_7 {dimension_numbers = #tpu.dot_dimension_numbers<[1], [0], [0], [1], [0, 0, 1, 1], [], []>} : vector<8x512xbf16>, vector<512x128xbf16>, vector<8x128xf32> -> vector<8x128xf32>
    %12 = arith.addf %9, %11 : vector<8x128xf32>
    %c0_8 = arith.constant 0 : index
    %c0_9 = arith.constant 0 : index
    %13 = vector.load %arg6[%c0_8, %c0_9] : memref<8x128xf32, #tpu.memory_space<vmem>>, vector<8x128xf32>
    tpu.vector_store %arg6[%c0_8, %c0_9], %12 {strides = array<i32>} : memref<8x128xf32, #tpu.memory_space<vmem>>, vector<8x128xf32>,
    %c0_i32_10 = arith.constant 0 : i32
    %14 = arith.cmpi eq, %arg2, %c0_i32_10 : i32
    %15 = arith.extui %14 : i1 to i32
    %c0_i32_11 = arith.constant 0 : i32
    %16 = arith.cmpi ne, %15, %c0_i32_11 : i32
    scf.if %16 {
      %c0_12 = arith.constant 0 : index
      %c0_13 = arith.constant 0 : index
      %17 = vector.load %arg6[%c0_12, %c0_13] : memref<8x128xf32, #tpu.memory_space<vmem>>, vector<8x128xf32>
      %c0_14 = arith.constant 0 : index
      %c0_15 = arith.constant 0 : index
      %18 = vector.load %arg5[%c0_14, %c0_15] : memref<8x128xf32, #tpu.memory_space<vmem>>, vector<8x128xf32>
      tpu.vector_store %arg5[%c0_14, %c0_15], %17 {strides = array<i32>} : memref<8x128xf32, #tpu.memory_space<vmem>>, vector<8x128xf32>,
    } else {
    }
    return
  }
  func.func @transform_0(%arg0: i32, %arg1: i32, %arg2: i32) -> (i32, i32) {
    %c0_i32 = arith.constant 0 : i32
    return %arg0, %arg2 : i32, i32
  }
  func.func @transform_1(%arg0: i32, %arg1: i32, %arg2: i32) -> (i32, i32) {
    %c0_i32 = arith.constant 0 : i32
    return %arg2, %arg1 : i32, i32
  }
  func.func @transform_2(%arg0: i32, %arg1: i32, %arg2: i32) -> (i32, i32) {
    %c0_i32 = arith.constant 0 : i32
    return %arg0, %arg1 : i32, i32
  }
}

module attributes {stable_mosaic.version = 11 : i64} {
  func.func @_bn_stats_kernel(%arg0: i32, %arg1: memref<8x128xf32, #tpu.memory_space<vmem>>, %arg2: memref<2x128xf32, #tpu.memory_space<vmem>>) attributes {dimension_semantics = [#tpu.dimension_semantics<arbitrary>], iteration_bounds = array<i64: 1>, scalar_prefetch = 0 : i64, scratch_operands = 0 : i64, tpu.core_type = #tpu.core_type<tc>, window_params = [{transform_indices = @transform_0, window_bounds = array<i64: 8, 128>}, {pipeline_mode = #tpu.pipeline_mode<synchronous>, transform_indices = @transform_1, window_bounds = array<i64: 2, 128>}]} {
    %c0_i32 = arith.constant 0 : i32
    %0 = arith.cmpi eq, %arg0, %c0_i32 : i32
    %1 = arith.extui %0 : i1 to i32
    %c0_i32_0 = arith.constant 0 : i32
    %2 = arith.cmpi ne, %1, %c0_i32_0 : i32
    scf.if %2 {
      %cst_7 = arith.constant 0.000000e+00 : f32
      %13 = vector.broadcast %cst_7 : f32 to vector<2x128xf32>
      %c0_8 = arith.constant 0 : index
      %c0_9 = arith.constant 0 : index
      %14 = vector.load %arg2[%c0_8, %c0_9] : memref<2x128xf32, #tpu.memory_space<vmem>>, vector<2x128xf32>
      tpu.vector_store %arg2[%c0_8, %c0_9], %13 {strides = array<i32>} : memref<2x128xf32, #tpu.memory_space<vmem>>, vector<2x128xf32>,
    } else {
    }
    %c0 = arith.constant 0 : index
    %c0_1 = arith.constant 0 : index
    %3 = vector.load %arg1[%c0, %c0_1] : memref<8x128xf32, #tpu.memory_space<vmem>>, vector<8x128xf32>
    %c0_2 = arith.constant 0 : index
    %c0_3 = arith.constant 0 : index
    %4 = vector.load %arg2[%c0_2, %c0_3] : memref<2x128xf32, #tpu.memory_space<vmem>>, vector<2x128xf32>
    %cst = arith.constant dense<0.000000e+00> : vector<128xf32>
    %5 = vector.multi_reduction <add>, %3, %cst [0] : vector<8x128xf32> to vector<128xf32>
    %6 = vector.shape_cast %5 : vector<128xf32> to vector<1x128xf32>
    %7 = arith.mulf %3, %3 : vector<8x128xf32>
    %cst_4 = arith.constant dense<0.000000e+00> : vector<128xf32>
    %8 = vector.multi_reduction <add>, %7, %cst_4 [0] : vector<8x128xf32> to vector<128xf32>
    %9 = vector.shape_cast %8 : vector<128xf32> to vector<1x128xf32>
    %10 = tpu.concatenate %6, %9 in 0 : vector<1x128xf32>, vector<1x128xf32> -> vector<2x128xf32>
    %11 = arith.addf %4, %10 : vector<2x128xf32>
    %c0_5 = arith.constant 0 : index
    %c0_6 = arith.constant 0 : index
    %12 = vector.load %arg2[%c0_5, %c0_6] : memref<2x128xf32, #tpu.memory_space<vmem>>, vector<2x128xf32>
    tpu.vector_store %arg2[%c0_5, %c0_6], %11 {strides = array<i32>} : memref<2x128xf32, #tpu.memory_space<vmem>>, vector<2x128xf32>,
    return
  }
  func.func @transform_0(%arg0: i32) -> (i32, i32) {
    %c0_i32 = arith.constant 0 : i32
    %c0_i32_0 = arith.constant 0 : i32
    return %arg0, %c0_i32 : i32, i32
  }
  func.func @transform_1(%arg0: i32) -> (i32, i32) {
    %c0_i32 = arith.constant 0 : i32
    %c0_i32_0 = arith.constant 0 : i32
    %c0_i32_1 = arith.constant 0 : i32
    return %c0_i32, %c0_i32_0 : i32, i32
  }
}

module attributes {stable_mosaic.version = 11 : i64} {
  func.func @kernel(%arg0: i32, %arg1: i32, %arg2: i32, %arg3: memref<8x512xbf16, #tpu.memory_space<vmem>>, %arg4: memref<512x128xbf16, #tpu.memory_space<vmem>>, %arg5: memref<8x128xf32, #tpu.memory_space<vmem>>, %arg6: memref<8x128xf32, #tpu.memory_space<vmem>>) attributes {dimension_semantics = [#tpu.dimension_semantics<parallel>, #tpu.dimension_semantics<parallel>, #tpu.dimension_semantics<arbitrary>], iteration_bounds = array<i64: 1, 1, 2>, scalar_prefetch = 0 : i64, scratch_operands = 1 : i64, tpu.core_type = #tpu.core_type<tc>, window_params = [{transform_indices = @transform_0, window_bounds = array<i64: 8, 512>}, {transform_indices = @transform_1, window_bounds = array<i64: 512, 128>}, {transform_indices = @transform_2, window_bounds = array<i64: 8, 128>}]} {
    %c0_i32 = arith.constant 0 : i32
    %0 = arith.cmpi eq, %arg2, %c0_i32 : i32
    %1 = arith.extui %0 : i1 to i32
    %c0_i32_0 = arith.constant 0 : i32
    %2 = arith.cmpi ne, %1, %c0_i32_0 : i32
    scf.if %2 {
      %cst_11 = arith.constant 0.000000e+00 : f32
      %17 = vector.broadcast %cst_11 : f32 to vector<8x128xf32>
      %c0_12 = arith.constant 0 : index
      %c0_13 = arith.constant 0 : index
      %18 = vector.load %arg6[%c0_12, %c0_13] : memref<8x128xf32, #tpu.memory_space<vmem>>, vector<8x128xf32>
      tpu.vector_store %arg6[%c0_12, %c0_13], %17 {strides = array<i32>} : memref<8x128xf32, #tpu.memory_space<vmem>>, vector<8x128xf32>,
    } else {
    }
    %c0 = arith.constant 0 : index
    %c0_1 = arith.constant 0 : index
    %3 = vector.load %arg3[%c0, %c0_1] : memref<8x512xbf16, #tpu.memory_space<vmem>>, vector<8x512xbf16>
    %cst = arith.constant 0.000000e+00 : bf16
    %4 = vector.broadcast %cst : bf16 to vector<8x512xbf16>
    %5 = arith.cmpf ogt, %3, %4 : vector<8x512xbf16>
    %cst_2 = arith.constant 2.001950e-01 : bf16
    %6 = vector.broadcast %cst_2 : bf16 to vector<8x512xbf16>
    %7 = arith.mulf %3, %6 : vector<8x512xbf16>
    %8 = arith.select %5, %3, %7 : vector<8x512xi1>, vector<8x512xbf16>
    %c0_3 = arith.constant 0 : index
    %c0_4 = arith.constant 0 : index
    %9 = vector.load %arg6[%c0_3, %c0_4] : memref<8x128xf32, #tpu.memory_space<vmem>>, vector<8x128xf32>
    %c0_5 = arith.constant 0 : index
    %c0_6 = arith.constant 0 : index
    %10 = vector.load %arg4[%c0_5, %c0_6] : memref<512x128xbf16, #tpu.memory_space<vmem>>, vector<512x128xbf16>
    %cst_7 = arith.constant dense<0.000000e+00> : vector<8x128xf32>
    %11 = tpu.matmul %8, %10, %cst_7 {dimension_numbers = #tpu.dot_dimension_numbers<[1], [0], [0], [1], [0, 0, 1, 1], [], []>} : vector<8x512xbf16>, vector<512x128xbf16>, vector<8x128xf32> -> vector<8x128xf32>
    %12 = arith.addf %9, %11 : vector<8x128xf32>
    %c0_8 = arith.constant 0 : index
    %c0_9 = arith.constant 0 : index
    %13 = vector.load %arg6[%c0_8, %c0_9] : memref<8x128xf32, #tpu.memory_space<vmem>>, vector<8x128xf32>
    tpu.vector_store %arg6[%c0_8, %c0_9], %12 {strides = array<i32>} : memref<8x128xf32, #tpu.memory_space<vmem>>, vector<8x128xf32>,
    %c1_i32 = arith.constant 1 : i32
    %14 = arith.cmpi eq, %arg2, %c1_i32 : i32
    %15 = arith.extui %14 : i1 to i32
    %c0_i32_10 = arith.constant 0 : i32
    %16 = arith.cmpi ne, %15, %c0_i32_10 : i32
    scf.if %16 {
      %c0_11 = arith.constant 0 : index
      %c0_12 = arith.constant 0 : index
      %17 = vector.load %arg6[%c0_11, %c0_12] : memref<8x128xf32, #tpu.memory_space<vmem>>, vector<8x128xf32>
      %c0_13 = arith.constant 0 : index
      %c0_14 = arith.constant 0 : index
      %18 = vector.load %arg5[%c0_13, %c0_14] : memref<8x128xf32, #tpu.memory_space<vmem>>, vector<8x128xf32>
      tpu.vector_store %arg5[%c0_13, %c0_14], %17 {strides = array<i32>} : memref<8x128xf32, #tpu.memory_space<vmem>>, vector<8x128xf32>,
    } else {
    }
    return
  }
  func.func @transform_0(%arg0: i32, %arg1: i32, %arg2: i32) -> (i32, i32) {
    %c0_i32 = arith.constant 0 : i32
    return %arg0, %arg2 : i32, i32
  }
  func.func @transform_1(%arg0: i32, %arg1: i32, %arg2: i32) -> (i32, i32) {
    %c0_i32 = arith.constant 0 : i32
    return %arg2, %arg1 : i32, i32
  }
  func.func @transform_2(%arg0: i32, %arg1: i32, %arg2: i32) -> (i32, i32) {
    %c0_i32 = arith.constant 0 : i32
    return %arg0, %arg1 : i32, i32
  }
}

module attributes {stable_mosaic.version = 11 : i64} {
  func.func @kernel(%arg0: i32, %arg1: i32, %arg2: i32, %arg3: memref<8x512xbf16, #tpu.memory_space<vmem>>, %arg4: memref<512x128xbf16, #tpu.memory_space<vmem>>, %arg5: memref<8x128xf32, #tpu.memory_space<vmem>>, %arg6: memref<8x128xf32, #tpu.memory_space<vmem>>) attributes {dimension_semantics = [#tpu.dimension_semantics<parallel>, #tpu.dimension_semantics<parallel>, #tpu.dimension_semantics<arbitrary>], iteration_bounds = array<i64: 1, 1, 1>, scalar_prefetch = 0 : i64, scratch_operands = 1 : i64, tpu.core_type = #tpu.core_type<tc>, window_params = [{transform_indices = @transform_0, window_bounds = array<i64: 8, 512>}, {transform_indices = @transform_1, window_bounds = array<i64: 512, 128>}, {transform_indices = @transform_2, window_bounds = array<i64: 8, 128>}]} {
    %c0_i32 = arith.constant 0 : i32
    %0 = arith.cmpi eq, %arg2, %c0_i32 : i32
    %1 = arith.extui %0 : i1 to i32
    %c0_i32_0 = arith.constant 0 : i32
    %2 = arith.cmpi ne, %1, %c0_i32_0 : i32
    scf.if %2 {
      %cst_11 = arith.constant 0.000000e+00 : f32
      %14 = vector.broadcast %cst_11 : f32 to vector<8x128xf32>
      %c0_12 = arith.constant 0 : index
      %c0_13 = arith.constant 0 : index
      %15 = vector.load %arg6[%c0_12, %c0_13] : memref<8x128xf32, #tpu.memory_space<vmem>>, vector<8x128xf32>
      tpu.vector_store %arg6[%c0_12, %c0_13], %14 {strides = array<i32>} : memref<8x128xf32, #tpu.memory_space<vmem>>, vector<8x128xf32>,
    } else {
    }
    %c0 = arith.constant 0 : index
    %c0_1 = arith.constant 0 : index
    %3 = vector.load %arg3[%c0, %c0_1] : memref<8x512xbf16, #tpu.memory_space<vmem>>, vector<8x512xbf16>
    %cst = arith.constant 0.000000e+00 : bf16
    %4 = vector.broadcast %cst : bf16 to vector<8x512xbf16>
    %5 = arith.maximumf %3, %4 : vector<8x512xbf16>
    %c0_2 = arith.constant 0 : index
    %c0_3 = arith.constant 0 : index
    %6 = vector.load %arg6[%c0_2, %c0_3] : memref<8x128xf32, #tpu.memory_space<vmem>>, vector<8x128xf32>
    %c0_4 = arith.constant 0 : index
    %c0_5 = arith.constant 0 : index
    %7 = vector.load %arg4[%c0_4, %c0_5] : memref<512x128xbf16, #tpu.memory_space<vmem>>, vector<512x128xbf16>
    %cst_6 = arith.constant dense<0.000000e+00> : vector<8x128xf32>
    %8 = tpu.matmul %5, %7, %cst_6 {dimension_numbers = #tpu.dot_dimension_numbers<[1], [0], [0], [1], [0, 0, 1, 1], [], []>} : vector<8x512xbf16>, vector<512x128xbf16>, vector<8x128xf32> -> vector<8x128xf32>
    %9 = arith.addf %6, %8 : vector<8x128xf32>
    %c0_7 = arith.constant 0 : index
    %c0_8 = arith.constant 0 : index
    %10 = vector.load %arg6[%c0_7, %c0_8] : memref<8x128xf32, #tpu.memory_space<vmem>>, vector<8x128xf32>
    tpu.vector_store %arg6[%c0_7, %c0_8], %9 {strides = array<i32>} : memref<8x128xf32, #tpu.memory_space<vmem>>, vector<8x128xf32>,
    %c0_i32_9 = arith.constant 0 : i32
    %11 = arith.cmpi eq, %arg2, %c0_i32_9 : i32
    %12 = arith.extui %11 : i1 to i32
    %c0_i32_10 = arith.constant 0 : i32
    %13 = arith.cmpi ne, %12, %c0_i32_10 : i32
    scf.if %13 {
      %c0_11 = arith.constant 0 : index
      %c0_12 = arith.constant 0 : index
      %14 = vector.load %arg6[%c0_11, %c0_12] : memref<8x128xf32, #tpu.memory_space<vmem>>, vector<8x128xf32>
      %c0_13 = arith.constant 0 : index
      %c0_14 = arith.constant 0 : index
      %15 = vector.load %arg5[%c0_13, %c0_14] : memref<8x128xf32, #tpu.memory_space<vmem>>, vector<8x128xf32>
      tpu.vector_store %arg5[%c0_13, %c0_14], %14 {strides = array<i32>} : memref<8x128xf32, #tpu.memory_space<vmem>>, vector<8x128xf32>,
    } else {
    }
    return
  }
  func.func @transform_0(%arg0: i32, %arg1: i32, %arg2: i32) -> (i32, i32) {
    %c0_i32 = arith.constant 0 : i32
    return %arg0, %arg2 : i32, i32
  }
  func.func @transform_1(%arg0: i32, %arg1: i32, %arg2: i32) -> (i32, i32) {
    %c0_i32 = arith.constant 0 : i32
    return %arg2, %arg1 : i32, i32
  }
  func.func @transform_2(%arg0: i32, %arg1: i32, %arg2: i32) -> (i32, i32) {
    %c0_i32 = arith.constant 0 : i32
    return %arg0, %arg1 : i32, i32
  }
}

module attributes {stable_mosaic.version = 11 : i64} {
  func.func @kernel(%arg0: i32, %arg1: i32, %arg2: i32, %arg3: memref<8x256xbf16, #tpu.memory_space<vmem>>, %arg4: memref<256x128xbf16, #tpu.memory_space<vmem>>, %arg5: memref<8x128xf32, #tpu.memory_space<vmem>>, %arg6: memref<8x128xf32, #tpu.memory_space<vmem>>) attributes {dimension_semantics = [#tpu.dimension_semantics<parallel>, #tpu.dimension_semantics<parallel>, #tpu.dimension_semantics<arbitrary>], iteration_bounds = array<i64: 1, 1, 1>, scalar_prefetch = 0 : i64, scratch_operands = 1 : i64, tpu.core_type = #tpu.core_type<tc>, window_params = [{transform_indices = @transform_0, window_bounds = array<i64: 8, 256>}, {transform_indices = @transform_1, window_bounds = array<i64: 256, 128>}, {transform_indices = @transform_2, window_bounds = array<i64: 8, 128>}]} {
    %c0_i32 = arith.constant 0 : i32
    %0 = arith.cmpi eq, %arg2, %c0_i32 : i32
    %1 = arith.extui %0 : i1 to i32
    %c0_i32_0 = arith.constant 0 : i32
    %2 = arith.cmpi ne, %1, %c0_i32_0 : i32
    scf.if %2 {
      %cst_11 = arith.constant 0.000000e+00 : f32
      %14 = vector.broadcast %cst_11 : f32 to vector<8x128xf32>
      %c0_12 = arith.constant 0 : index
      %c0_13 = arith.constant 0 : index
      %15 = vector.load %arg6[%c0_12, %c0_13] : memref<8x128xf32, #tpu.memory_space<vmem>>, vector<8x128xf32>
      tpu.vector_store %arg6[%c0_12, %c0_13], %14 {strides = array<i32>} : memref<8x128xf32, #tpu.memory_space<vmem>>, vector<8x128xf32>,
    } else {
    }
    %c0 = arith.constant 0 : index
    %c0_1 = arith.constant 0 : index
    %3 = vector.load %arg3[%c0, %c0_1] : memref<8x256xbf16, #tpu.memory_space<vmem>>, vector<8x256xbf16>
    %cst = arith.constant 0.000000e+00 : bf16
    %4 = vector.broadcast %cst : bf16 to vector<8x256xbf16>
    %5 = arith.maximumf %3, %4 : vector<8x256xbf16>
    %c0_2 = arith.constant 0 : index
    %c0_3 = arith.constant 0 : index
    %6 = vector.load %arg6[%c0_2, %c0_3] : memref<8x128xf32, #tpu.memory_space<vmem>>, vector<8x128xf32>
    %c0_4 = arith.constant 0 : index
    %c0_5 = arith.constant 0 : index
    %7 = vector.load %arg4[%c0_4, %c0_5] : memref<256x128xbf16, #tpu.memory_space<vmem>>, vector<256x128xbf16>
    %cst_6 = arith.constant dense<0.000000e+00> : vector<8x128xf32>
    %8 = tpu.matmul %5, %7, %cst_6 {dimension_numbers = #tpu.dot_dimension_numbers<[1], [0], [0], [1], [0, 0, 1, 1], [], []>} : vector<8x256xbf16>, vector<256x128xbf16>, vector<8x128xf32> -> vector<8x128xf32>
    %9 = arith.addf %6, %8 : vector<8x128xf32>
    %c0_7 = arith.constant 0 : index
    %c0_8 = arith.constant 0 : index
    %10 = vector.load %arg6[%c0_7, %c0_8] : memref<8x128xf32, #tpu.memory_space<vmem>>, vector<8x128xf32>
    tpu.vector_store %arg6[%c0_7, %c0_8], %9 {strides = array<i32>} : memref<8x128xf32, #tpu.memory_space<vmem>>, vector<8x128xf32>,
    %c0_i32_9 = arith.constant 0 : i32
    %11 = arith.cmpi eq, %arg2, %c0_i32_9 : i32
    %12 = arith.extui %11 : i1 to i32
    %c0_i32_10 = arith.constant 0 : i32
    %13 = arith.cmpi ne, %12, %c0_i32_10 : i32
    scf.if %13 {
      %c0_11 = arith.constant 0 : index
      %c0_12 = arith.constant 0 : index
      %14 = vector.load %arg6[%c0_11, %c0_12] : memref<8x128xf32, #tpu.memory_space<vmem>>, vector<8x128xf32>
      %c0_13 = arith.constant 0 : index
      %c0_14 = arith.constant 0 : index
      %15 = vector.load %arg5[%c0_13, %c0_14] : memref<8x128xf32, #tpu.memory_space<vmem>>, vector<8x128xf32>
      tpu.vector_store %arg5[%c0_13, %c0_14], %14 {strides = array<i32>} : memref<8x128xf32, #tpu.memory_space<vmem>>, vector<8x128xf32>,
    } else {
    }
    return
  }
  func.func @transform_0(%arg0: i32, %arg1: i32, %arg2: i32) -> (i32, i32) {
    %c0_i32 = arith.constant 0 : i32
    return %arg0, %arg2 : i32, i32
  }
  func.func @transform_1(%arg0: i32, %arg1: i32, %arg2: i32) -> (i32, i32) {
    %c0_i32 = arith.constant 0 : i32
    return %arg2, %arg1 : i32, i32
  }
  func.func @transform_2(%arg0: i32, %arg1: i32, %arg2: i32) -> (i32, i32) {
    %c0_i32 = arith.constant 0 : i32
    return %arg0, %arg1 : i32, i32
  }
}

module attributes {stable_mosaic.version = 11 : i64} {
  func.func @kernel(%arg0: i32, %arg1: i32, %arg2: i32, %arg3: memref<32x256xbf16, #tpu.memory_space<vmem>>, %arg4: memref<256x128xbf16, #tpu.memory_space<vmem>>, %arg5: memref<32x128xf32, #tpu.memory_space<vmem>>, %arg6: memref<32x128xf32, #tpu.memory_space<vmem>>) attributes {dimension_semantics = [#tpu.dimension_semantics<parallel>, #tpu.dimension_semantics<parallel>, #tpu.dimension_semantics<arbitrary>], iteration_bounds = array<i64: 1, 1, 1>, scalar_prefetch = 0 : i64, scratch_operands = 1 : i64, tpu.core_type = #tpu.core_type<tc>, window_params = [{transform_indices = @transform_0, window_bounds = array<i64: 32, 256>}, {transform_indices = @transform_1, window_bounds = array<i64: 256, 128>}, {transform_indices = @transform_2, window_bounds = array<i64: 32, 128>}]} {
    %c0_i32 = arith.constant 0 : i32
    %0 = arith.cmpi eq, %arg2, %c0_i32 : i32
    %1 = arith.extui %0 : i1 to i32
    %c0_i32_0 = arith.constant 0 : i32
    %2 = arith.cmpi ne, %1, %c0_i32_0 : i32
    scf.if %2 {
      %cst_11 = arith.constant 0.000000e+00 : f32
      %14 = vector.broadcast %cst_11 : f32 to vector<32x128xf32>
      %c0_12 = arith.constant 0 : index
      %c0_13 = arith.constant 0 : index
      %15 = vector.load %arg6[%c0_12, %c0_13] : memref<32x128xf32, #tpu.memory_space<vmem>>, vector<32x128xf32>
      tpu.vector_store %arg6[%c0_12, %c0_13], %14 {strides = array<i32>} : memref<32x128xf32, #tpu.memory_space<vmem>>, vector<32x128xf32>,
    } else {
    }
    %c0 = arith.constant 0 : index
    %c0_1 = arith.constant 0 : index
    %3 = vector.load %arg3[%c0, %c0_1] : memref<32x256xbf16, #tpu.memory_space<vmem>>, vector<32x256xbf16>
    %cst = arith.constant 0.000000e+00 : bf16
    %4 = vector.broadcast %cst : bf16 to vector<32x256xbf16>
    %5 = arith.maximumf %3, %4 : vector<32x256xbf16>
    %c0_2 = arith.constant 0 : index
    %c0_3 = arith.constant 0 : index
    %6 = vector.load %arg6[%c0_2, %c0_3] : memref<32x128xf32, #tpu.memory_space<vmem>>, vector<32x128xf32>
    %c0_4 = arith.constant 0 : index
    %c0_5 = arith.constant 0 : index
    %7 = vector.load %arg4[%c0_4, %c0_5] : memref<256x128xbf16, #tpu.memory_space<vmem>>, vector<256x128xbf16>
    %cst_6 = arith.constant dense<0.000000e+00> : vector<32x128xf32>
    %8 = tpu.matmul %5, %7, %cst_6 {dimension_numbers = #tpu.dot_dimension_numbers<[1], [0], [0], [1], [0, 0, 1, 1], [], []>} : vector<32x256xbf16>, vector<256x128xbf16>, vector<32x128xf32> -> vector<32x128xf32>
    %9 = arith.addf %6, %8 : vector<32x128xf32>
    %c0_7 = arith.constant 0 : index
    %c0_8 = arith.constant 0 : index
    %10 = vector.load %arg6[%c0_7, %c0_8] : memref<32x128xf32, #tpu.memory_space<vmem>>, vector<32x128xf32>
    tpu.vector_store %arg6[%c0_7, %c0_8], %9 {strides = array<i32>} : memref<32x128xf32, #tpu.memory_space<vmem>>, vector<32x128xf32>,
    %c0_i32_9 = arith.constant 0 : i32
    %11 = arith.cmpi eq, %arg2, %c0_i32_9 : i32
    %12 = arith.extui %11 : i1 to i32
    %c0_i32_10 = arith.constant 0 : i32
    %13 = arith.cmpi ne, %12, %c0_i32_10 : i32
    scf.if %13 {
      %c0_11 = arith.constant 0 : index
      %c0_12 = arith.constant 0 : index
      %14 = vector.load %arg6[%c0_11, %c0_12] : memref<32x128xf32, #tpu.memory_space<vmem>>, vector<32x128xf32>
      %c0_13 = arith.constant 0 : index
      %c0_14 = arith.constant 0 : index
      %15 = vector.load %arg5[%c0_13, %c0_14] : memref<32x128xf32, #tpu.memory_space<vmem>>, vector<32x128xf32>
      tpu.vector_store %arg5[%c0_13, %c0_14], %14 {strides = array<i32>} : memref<32x128xf32, #tpu.memory_space<vmem>>, vector<32x128xf32>,
    } else {
    }
    return
  }
  func.func @transform_0(%arg0: i32, %arg1: i32, %arg2: i32) -> (i32, i32) {
    %c0_i32 = arith.constant 0 : i32
    return %arg0, %arg2 : i32, i32
  }
  func.func @transform_1(%arg0: i32, %arg1: i32, %arg2: i32) -> (i32, i32) {
    %c0_i32 = arith.constant 0 : i32
    return %arg2, %arg1 : i32, i32
  }
  func.func @transform_2(%arg0: i32, %arg1: i32, %arg2: i32) -> (i32, i32) {
    %c0_i32 = arith.constant 0 : i32
    return %arg0, %arg1 : i32, i32
  }
}

module attributes {stable_mosaic.version = 11 : i64} {
  func.func @kernel(%arg0: i32, %arg1: i32, %arg2: i32, %arg3: memref<128x128xbf16, #tpu.memory_space<vmem>>, %arg4: memref<128x128xbf16, #tpu.memory_space<vmem>>, %arg5: memref<128x128xf32, #tpu.memory_space<vmem>>, %arg6: memref<128x128xf32, #tpu.memory_space<vmem>>) attributes {dimension_semantics = [#tpu.dimension_semantics<parallel>, #tpu.dimension_semantics<parallel>, #tpu.dimension_semantics<arbitrary>], iteration_bounds = array<i64: 1, 1, 1>, scalar_prefetch = 0 : i64, scratch_operands = 1 : i64, tpu.core_type = #tpu.core_type<tc>, window_params = [{transform_indices = @transform_0, window_bounds = array<i64: 128, 128>}, {transform_indices = @transform_1, window_bounds = array<i64: 128, 128>}, {transform_indices = @transform_2, window_bounds = array<i64: 128, 128>}]} {
    %c0_i32 = arith.constant 0 : i32
    %0 = arith.cmpi eq, %arg2, %c0_i32 : i32
    %1 = arith.extui %0 : i1 to i32
    %c0_i32_0 = arith.constant 0 : i32
    %2 = arith.cmpi ne, %1, %c0_i32_0 : i32
    scf.if %2 {
      %cst_11 = arith.constant 0.000000e+00 : f32
      %14 = vector.broadcast %cst_11 : f32 to vector<128x128xf32>
      %c0_12 = arith.constant 0 : index
      %c0_13 = arith.constant 0 : index
      %15 = vector.load %arg6[%c0_12, %c0_13] : memref<128x128xf32, #tpu.memory_space<vmem>>, vector<128x128xf32>
      tpu.vector_store %arg6[%c0_12, %c0_13], %14 {strides = array<i32>} : memref<128x128xf32, #tpu.memory_space<vmem>>, vector<128x128xf32>,
    } else {
    }
    %c0 = arith.constant 0 : index
    %c0_1 = arith.constant 0 : index
    %3 = vector.load %arg3[%c0, %c0_1] : memref<128x128xbf16, #tpu.memory_space<vmem>>, vector<128x128xbf16>
    %cst = arith.constant 0.000000e+00 : bf16
    %4 = vector.broadcast %cst : bf16 to vector<128x128xbf16>
    %5 = arith.maximumf %3, %4 : vector<128x128xbf16>
    %c0_2 = arith.constant 0 : index
    %c0_3 = arith.constant 0 : index
    %6 = vector.load %arg6[%c0_2, %c0_3] : memref<128x128xf32, #tpu.memory_space<vmem>>, vector<128x128xf32>
    %c0_4 = arith.constant 0 : index
    %c0_5 = arith.constant 0 : index
    %7 = vector.load %arg4[%c0_4, %c0_5] : memref<128x128xbf16, #tpu.memory_space<vmem>>, vector<128x128xbf16>
    %cst_6 = arith.constant dense<0.000000e+00> : vector<128x128xf32>
    %8 = tpu.matmul %5, %7, %cst_6 {dimension_numbers = #tpu.dot_dimension_numbers<[1], [0], [0], [1], [0, 0, 1, 1], [], []>} : vector<128x128xbf16>, vector<128x128xbf16>, vector<128x128xf32> -> vector<128x128xf32>
    %9 = arith.addf %6, %8 : vector<128x128xf32>
    %c0_7 = arith.constant 0 : index
    %c0_8 = arith.constant 0 : index
    %10 = vector.load %arg6[%c0_7, %c0_8] : memref<128x128xf32, #tpu.memory_space<vmem>>, vector<128x128xf32>
    tpu.vector_store %arg6[%c0_7, %c0_8], %9 {strides = array<i32>} : memref<128x128xf32, #tpu.memory_space<vmem>>, vector<128x128xf32>,
    %c0_i32_9 = arith.constant 0 : i32
    %11 = arith.cmpi eq, %arg2, %c0_i32_9 : i32
    %12 = arith.extui %11 : i1 to i32
    %c0_i32_10 = arith.constant 0 : i32
    %13 = arith.cmpi ne, %12, %c0_i32_10 : i32
    scf.if %13 {
      %c0_11 = arith.constant 0 : index
      %c0_12 = arith.constant 0 : index
      %14 = vector.load %arg6[%c0_11, %c0_12] : memref<128x128xf32, #tpu.memory_space<vmem>>, vector<128x128xf32>
      %c0_13 = arith.constant 0 : index
      %c0_14 = arith.constant 0 : index
      %15 = vector.load %arg5[%c0_13, %c0_14] : memref<128x128xf32, #tpu.memory_space<vmem>>, vector<128x128xf32>
      tpu.vector_store %arg5[%c0_13, %c0_14], %14 {strides = array<i32>} : memref<128x128xf32, #tpu.memory_space<vmem>>, vector<128x128xf32>,
    } else {
    }
    return
  }
  func.func @transform_0(%arg0: i32, %arg1: i32, %arg2: i32) -> (i32, i32) {
    %c0_i32 = arith.constant 0 : i32
    return %arg0, %arg2 : i32, i32
  }
  func.func @transform_1(%arg0: i32, %arg1: i32, %arg2: i32) -> (i32, i32) {
    %c0_i32 = arith.constant 0 : i32
    return %arg2, %arg1 : i32, i32
  }
  func.func @transform_2(%arg0: i32, %arg1: i32, %arg2: i32) -> (i32, i32) {
    %c0_i32 = arith.constant 0 : i32
    return %arg0, %arg1 : i32, i32
  }
}

module attributes {stable_mosaic.version = 11 : i64} {
  func.func @_bn_stats_kernel(%arg0: i32, %arg1: memref<512x128xf32, #tpu.memory_space<vmem>>, %arg2: memref<2x128xf32, #tpu.memory_space<vmem>>) attributes {dimension_semantics = [#tpu.dimension_semantics<arbitrary>], iteration_bounds = array<i64: 1>, scalar_prefetch = 0 : i64, scratch_operands = 0 : i64, tpu.core_type = #tpu.core_type<tc>, window_params = [{transform_indices = @transform_0, window_bounds = array<i64: 512, 128>}, {pipeline_mode = #tpu.pipeline_mode<synchronous>, transform_indices = @transform_1, window_bounds = array<i64: 2, 128>}]} {
    %c0_i32 = arith.constant 0 : i32
    %0 = arith.cmpi eq, %arg0, %c0_i32 : i32
    %1 = arith.extui %0 : i1 to i32
    %c0_i32_0 = arith.constant 0 : i32
    %2 = arith.cmpi ne, %1, %c0_i32_0 : i32
    scf.if %2 {
      %cst_7 = arith.constant 0.000000e+00 : f32
      %13 = vector.broadcast %cst_7 : f32 to vector<2x128xf32>
      %c0_8 = arith.constant 0 : index
      %c0_9 = arith.constant 0 : index
      %14 = vector.load %arg2[%c0_8, %c0_9] : memref<2x128xf32, #tpu.memory_space<vmem>>, vector<2x128xf32>
      tpu.vector_store %arg2[%c0_8, %c0_9], %13 {strides = array<i32>} : memref<2x128xf32, #tpu.memory_space<vmem>>, vector<2x128xf32>,
    } else {
    }
    %c0 = arith.constant 0 : index
    %c0_1 = arith.constant 0 : index
    %3 = vector.load %arg1[%c0, %c0_1] : memref<512x128xf32, #tpu.memory_space<vmem>>, vector<512x128xf32>
    %c0_2 = arith.constant 0 : index
    %c0_3 = arith.constant 0 : index
    %4 = vector.load %arg2[%c0_2, %c0_3] : memref<2x128xf32, #tpu.memory_space<vmem>>, vector<2x128xf32>
    %cst = arith.constant dense<0.000000e+00> : vector<128xf32>
    %5 = vector.multi_reduction <add>, %3, %cst [0] : vector<512x128xf32> to vector<128xf32>
    %6 = vector.shape_cast %5 : vector<128xf32> to vector<1x128xf32>
    %7 = arith.mulf %3, %3 : vector<512x128xf32>
    %cst_4 = arith.constant dense<0.000000e+00> : vector<128xf32>
    %8 = vector.multi_reduction <add>, %7, %cst_4 [0] : vector<512x128xf32> to vector<128xf32>
    %9 = vector.shape_cast %8 : vector<128xf32> to vector<1x128xf32>
    %10 = tpu.concatenate %6, %9 in 0 : vector<1x128xf32>, vector<1x128xf32> -> vector<2x128xf32>
    %11 = arith.addf %4, %10 : vector<2x128xf32>
    %c0_5 = arith.constant 0 : index
    %c0_6 = arith.constant 0 : index
    %12 = vector.load %arg2[%c0_5, %c0_6] : memref<2x128xf32, #tpu.memory_space<vmem>>, vector<2x128xf32>
    tpu.vector_store %arg2[%c0_5, %c0_6], %11 {strides = array<i32>} : memref<2x128xf32, #tpu.memory_space<vmem>>, vector<2x128xf32>,
    return
  }
  func.func @transform_0(%arg0: i32) -> (i32, i32) {
    %c0_i32 = arith.constant 0 : i32
    %c0_i32_0 = arith.constant 0 : i32
    return %arg0, %c0_i32 : i32, i32
  }
  func.func @transform_1(%arg0: i32) -> (i32, i32) {
    %c0_i32 = arith.constant 0 : i32
    %c0_i32_0 = arith.constant 0 : i32
    %c0_i32_1 = arith.constant 0 : i32
    return %c0_i32, %c0_i32_0 : i32, i32
  }
}

module attributes {stable_mosaic.version = 11 : i64} {
  func.func @_bn_apply_kernel(%arg0: i32, %arg1: memref<512x128xf32, #tpu.memory_space<vmem>>, %arg2: memref<1x128xf32, #tpu.memory_space<vmem>>, %arg3: memref<1x128xf32, #tpu.memory_space<vmem>>, %arg4: memref<512x128xf32, #tpu.memory_space<vmem>>) attributes {dimension_semantics = [#tpu.dimension_semantics<parallel>], iteration_bounds = array<i64: 1>, scalar_prefetch = 0 : i64, scratch_operands = 0 : i64, tpu.core_type = #tpu.core_type<tc>, window_params = [{transform_indices = @transform_0, window_bounds = array<i64: 512, 128>}, {pipeline_mode = #tpu.pipeline_mode<synchronous>, transform_indices = @transform_1, window_bounds = array<i64: 1, 128>}, {pipeline_mode = #tpu.pipeline_mode<synchronous>, transform_indices = @transform_2, window_bounds = array<i64: 1, 128>}, {transform_indices = @transform_3, window_bounds = array<i64: 512, 128>}]} {
    %c0 = arith.constant 0 : index
    %c0_0 = arith.constant 0 : index
    %0 = vector.load %arg1[%c0, %c0_0] : memref<512x128xf32, #tpu.memory_space<vmem>>, vector<512x128xf32>
    %c0_1 = arith.constant 0 : index
    %c0_2 = arith.constant 0 : index
    %1 = vector.load %arg2[%c0_1, %c0_2] : memref<1x128xf32, #tpu.memory_space<vmem>>, vector<1x128xf32>
    %2 = vector.broadcast %1 : vector<1x128xf32> to vector<512x128xf32>
    %3 = arith.mulf %0, %2 : vector<512x128xf32>
    %c0_3 = arith.constant 0 : index
    %c0_4 = arith.constant 0 : index
    %4 = vector.load %arg3[%c0_3, %c0_4] : memref<1x128xf32, #tpu.memory_space<vmem>>, vector<1x128xf32>
    %5 = vector.broadcast %4 : vector<1x128xf32> to vector<512x128xf32>
    %6 = arith.addf %3, %5 : vector<512x128xf32>
    %c0_5 = arith.constant 0 : index
    %c0_6 = arith.constant 0 : index
    %7 = vector.load %arg4[%c0_5, %c0_6] : memref<512x128xf32, #tpu.memory_space<vmem>>, vector<512x128xf32>
    tpu.vector_store %arg4[%c0_5, %c0_6], %6 {strides = array<i32>} : memref<512x128xf32, #tpu.memory_space<vmem>>, vector<512x128xf32>,
    return
  }
  func.func @transform_0(%arg0: i32) -> (i32, i32) {
    %c0_i32 = arith.constant 0 : i32
    %c0_i32_0 = arith.constant 0 : i32
    return %arg0, %c0_i32 : i32, i32
  }
  func.func @transform_1(%arg0: i32) -> (i32, i32) {
    %c0_i32 = arith.constant 0 : i32
    %c0_i32_0 = arith.constant 0 : i32
    %c0_i32_1 = arith.constant 0 : i32
    return %c0_i32, %c0_i32_0 : i32, i32
  }
  func.func @transform_2(%arg0: i32) -> (i32, i32) {
    %c0_i32 = arith.constant 0 : i32
    %c0_i32_0 = arith.constant 0 : i32
    %c0_i32_1 = arith.constant 0 : i32
    return %c0_i32, %c0_i32_0 : i32, i32
  }
  func.func @transform_3(%arg0: i32) -> (i32, i32) {
    %c0_i32 = arith.constant 0 : i32
    %c0_i32_0 = arith.constant 0 : i32
    return %arg0, %c0_i32 : i32, i32
  }
}

module attributes {stable_mosaic.version = 11 : i64} {
  func.func @kernel(%arg0: i32, %arg1: i32, %arg2: i32, %arg3: memref<256x128xbf16, #tpu.memory_space<vmem>>, %arg4: memref<128x128xbf16, #tpu.memory_space<vmem>>, %arg5: memref<1x128xf32, #tpu.memory_space<vmem>>, %arg6: memref<256x128xf32, #tpu.memory_space<vmem>>, %arg7: memref<256x128xf32, #tpu.memory_space<vmem>>) attributes {dimension_semantics = [#tpu.dimension_semantics<parallel>, #tpu.dimension_semantics<parallel>, #tpu.dimension_semantics<arbitrary>], iteration_bounds = array<i64: 2, 1, 1>, scalar_prefetch = 0 : i64, scratch_operands = 1 : i64, tpu.core_type = #tpu.core_type<tc>, window_params = [{transform_indices = @transform_0, window_bounds = array<i64: 256, 128>}, {transform_indices = @transform_1, window_bounds = array<i64: 128, 128>}, {transform_indices = @transform_2, window_bounds = array<i64: 1, 128>}, {transform_indices = @transform_3, window_bounds = array<i64: 256, 128>}]} {
    %c0_i32 = arith.constant 0 : i32
    %0 = arith.cmpi eq, %arg2, %c0_i32 : i32
    %1 = arith.extui %0 : i1 to i32
    %c0_i32_0 = arith.constant 0 : i32
    %2 = arith.cmpi ne, %1, %c0_i32_0 : i32
    scf.if %2 {
      %cst_11 = arith.constant 0.000000e+00 : f32
      %14 = vector.broadcast %cst_11 : f32 to vector<256x128xf32>
      %c0_12 = arith.constant 0 : index
      %c0_13 = arith.constant 0 : index
      %15 = vector.load %arg7[%c0_12, %c0_13] : memref<256x128xf32, #tpu.memory_space<vmem>>, vector<256x128xf32>
      tpu.vector_store %arg7[%c0_12, %c0_13], %14 {strides = array<i32>} : memref<256x128xf32, #tpu.memory_space<vmem>>, vector<256x128xf32>,
    } else {
    }
    %c0 = arith.constant 0 : index
    %c0_1 = arith.constant 0 : index
    %3 = vector.load %arg3[%c0, %c0_1] : memref<256x128xbf16, #tpu.memory_space<vmem>>, vector<256x128xbf16>
    %cst = arith.constant 0.000000e+00 : bf16
    %4 = vector.broadcast %cst : bf16 to vector<256x128xbf16>
    %5 = arith.maximumf %3, %4 : vector<256x128xbf16>
    %c0_2 = arith.constant 0 : index
    %c0_3 = arith.constant 0 : index
    %6 = vector.load %arg7[%c0_2, %c0_3] : memref<256x128xf32, #tpu.memory_space<vmem>>, vector<256x128xf32>
    %c0_4 = arith.constant 0 : index
    %c0_5 = arith.constant 0 : index
    %7 = vector.load %arg4[%c0_4, %c0_5] : memref<128x128xbf16, #tpu.memory_space<vmem>>, vector<128x128xbf16>
    %cst_6 = arith.constant dense<0.000000e+00> : vector<256x128xf32>
    %8 = tpu.matmul %5, %7, %cst_6 {dimension_numbers = #tpu.dot_dimension_numbers<[1], [0], [0], [1], [0, 0, 1, 1], [], []>} : vector<256x128xbf16>, vector<128x128xbf16>, vector<256x128xf32> -> vector<256x128xf32>
    %9 = arith.addf %6, %8 : vector<256x128xf32>
    %c0_7 = arith.constant 0 : index
    %c0_8 = arith.constant 0 : index
    %10 = vector.load %arg7[%c0_7, %c0_8] : memref<256x128xf32, #tpu.memory_space<vmem>>, vector<256x128xf32>
    tpu.vector_store %arg7[%c0_7, %c0_8], %9 {strides = array<i32>} : memref<256x128xf32, #tpu.memory_space<vmem>>, vector<256x128xf32>,
    %c0_i32_9 = arith.constant 0 : i32
    %11 = arith.cmpi eq, %arg2, %c0_i32_9 : i32
    %12 = arith.extui %11 : i1 to i32
    %c0_i32_10 = arith.constant 0 : i32
    %13 = arith.cmpi ne, %12, %c0_i32_10 : i32
    scf.if %13 {
      %c0_11 = arith.constant 0 : index
      %c0_12 = arith.constant 0 : index
      %14 = vector.load %arg7[%c0_11, %c0_12] : memref<256x128xf32, #tpu.memory_space<vmem>>, vector<256x128xf32>
      %c0_13 = arith.constant 0 : index
      %c0_14 = arith.constant 0 : index
      %15 = vector.load %arg5[%c0_13, %c0_14] : memref<1x128xf32, #tpu.memory_space<vmem>>, vector<1x128xf32>
      %16 = vector.broadcast %15 : vector<1x128xf32> to vector<256x128xf32>
      %17 = arith.addf %14, %16 : vector<256x128xf32>
      %18 = math.tanh %17 : vector<256x128xf32>
      %c0_15 = arith.constant 0 : index
      %c0_16 = arith.constant 0 : index
      %19 = vector.load %arg6[%c0_15, %c0_16] : memref<256x128xf32, #tpu.memory_space<vmem>>, vector<256x128xf32>
      tpu.vector_store %arg6[%c0_15, %c0_16], %18 {strides = array<i32>} : memref<256x128xf32, #tpu.memory_space<vmem>>, vector<256x128xf32>,
    } else {
    }
    return
  }
  func.func @transform_0(%arg0: i32, %arg1: i32, %arg2: i32) -> (i32, i32) {
    %c0_i32 = arith.constant 0 : i32
    return %arg0, %arg2 : i32, i32
  }
  func.func @transform_1(%arg0: i32, %arg1: i32, %arg2: i32) -> (i32, i32) {
    %c0_i32 = arith.constant 0 : i32
    return %arg2, %arg1 : i32, i32
  }
  func.func @transform_2(%arg0: i32, %arg1: i32, %arg2: i32) -> (i32, i32) {
    %c0_i32 = arith.constant 0 : i32
    %c0_i32_0 = arith.constant 0 : i32
    return %c0_i32, %arg1 : i32, i32
  }
  func.func @transform_3(%arg0: i32, %arg1: i32, %arg2: i32) -> (i32, i32) {
    %c0_i32 = arith.constant 0 : i32
    return %arg0, %arg1 : i32, i32
  }
}

</mosaic_0001>

<bundles_post_ra>
// kernel: _lambda_.39
= control target key start
LH: loop header
LB: loop body
LE: loop exit
PB: predicated region body
PF: predicated region fallthrough
CT: control target
= control target key end

     0   :  { %s1081_s9 = smov 0   ;;  %s1083_s10 = smov 0   ;;  %s1194_s0 = inlined_call_operand.vmem [shape: bf16[512,128], index: 0, kind: input, shape index: {}]   ;;  %s1195_s1 = inlined_call_operand.vmem [shape: bf16[128,128], index: 1, kind: input, shape index: {}]   ;;  %s1196_s2 = inlined_call_operand.vmem [shape: f32[512,128], index: 2, kind: output, shape index: {}]  }
   0x1   :  { %s1085_s11 = smov 0  }
   0x2 LB: > { %s31_s12 = sadd.s32 1, %s1060_s10  ;;  %p875_p0 = scmp.ge.s32.totalorder %s1064_s11, 1  ;;  %s1064_s11 = sphi %s1085_s11, %s12_s11   ;;  %s1060_s10 = sphi %s1083_s10, %s1198_s10   ;;  %s1056_s9 = sphi %s1081_s9, %s1197_s9  }
   0x3   : > { %p33_p1 = scmp.ge.s32.totalorder %s31_s12, 2  ;;  %p155_p2 = scmp.lt.s32.totalorder %s1064_s11, 3 }
   0x5   : > { %s1200_s12 = smov (%p33_p1, %s31_s12), 0  ;;  %p156_p3 = pnand %p875_p0, %p155_p2 }
   0x6   : > { %v1018_v0 = vld [vmem:[%s1195_s1] sm:$0xff] (!%p156_p3)   ;;  %s876_s15 = sshll.u32 (!%p156_p3), %s1056_s9, 5  ;;  %v1019_v1 = vld [vmem:[%s1195_s1 + $0x8] sm:$0xff] (!%p156_p3)   ;;  %v1020_v2 = vld [vmem:[%s1195_s1 + $0x10] sm:$0xff] (!%p156_p3)  }
   0x7   : > { %159 = sbr.rel (%p156_p3) target bundleno = 279 (0x117), region = 28  ;;  %p192_p4 = scmp.lt.s32.totalorder (!%p156_p3), %s876_s15, 63  ;;  %930 = vmatprep.subr.bf16.mxu0 (!%p156_p3), %v1018_v0  ;;  %978 = vmatprep.subr.bf16.mxu1 (!%p156_p3), %v1018_v0  ;;  %v1021_v3 = vld [vmem:[%s1195_s1 + $0x18] sm:$0xff] (!%p156_p3)   ;;  %v1022_v6 = vld [vmem:[%s1195_s1 + $0x20] sm:$0xff] (!%p156_p3)   ;;  %v1023_v7 = vld [vmem:[%s1195_s1 + $0x28] sm:$0xff] (!%p156_p3)  }
   0x8   : > { %931 = vmatpush3.bf16.msra.mxu0 (!%p156_p3), %v1018_v0  ;;  %986 = vmatpush3.bf16.msra.mxu1 (!%p156_p3), %v1018_v0  ;;  %v1024_v8 = vld [vmem:[%s1195_s1 + $0x30] sm:$0xff] (!%p156_p3)   ;;  %v1025_v9 = vld [vmem:[%s1195_s1 + $0x38] sm:$0xff] (!%p156_p3)  }
   0x9   : > { %932 = vmatprep.subr.bf16.mxu0 (!%p156_p3), %v1019_v1  ;;  %979 = vmatprep.subr.bf16.mxu1 (!%p156_p3), %v1019_v1 }
   0xc   : > { %933 = vmatpush3.bf16.msra.mxu0 (!%p156_p3), %v1019_v1  ;;  %987 = vmatpush3.bf16.msra.mxu1 (!%p156_p3), %v1019_v1 }
   0xd   : > { %934 = vmatprep.subr.bf16.mxu0 (!%p156_p3), %v1020_v2  ;;  %980 = vmatprep.subr.bf16.mxu1 (!%p156_p3), %v1020_v2 }
   0xe   : > { %s1202_s15 = smov (!%p192_p4, %s876_s15), 63 }
   0xf   : > { %s877_s20 = sshll.u32 %s1202_s15, 2  ;;  %s879_s6 = sshll.u32 %s1202_s15, 3 }
  0x10   : > { %s1114_s23 = scalar_lea.vmem %s1194_s0, %s877_s20  ;;  %935 = vmatpush3.bf16.msra.mxu0 %v1020_v2  ;;  %988 = vmatpush3.bf16.msra.mxu1 %v1020_v2  ;;  %s1151_s9 = scalar_lea.vmem %s1196_s2, %s879_s6 }
  0x11   : > { %v1026_v4 = vld [vmem:[%s1114_s23] sm:$0xff]   ;;  %936 = vmatprep.subr.bf16.mxu0 %v1021_v3  ;;  %981 = vmatprep.subr.bf16.mxu1 %v1021_v3  ;;  %v1028_v10 = vld [vmem:[%s1114_s23 + $0x8] sm:$0xff]   ;;  %v1030_v12 = vld [vmem:[%s1114_s23 + $0x10] sm:$0xff]  }
  0x12   : > { %v1027_v5 = vld [vmem:[%s1114_s23 + $0x40] sm:$0xff]   ;;  %946 = vmatprep.mubr.bf16.mxu0 %v1026_v4  ;;  %v1029_v11 = vld [vmem:[%s1114_s23 + $0x48] sm:$0xff]   ;;  %v1031_v13 = vld [vmem:[%s1114_s23 + $0x50] sm:$0xff]  }
  0x13   : > { %962 = vmatprep.mubr.bf16.mxu1 %v1027_v5  ;;  %v1032_v14 = vld [vmem:[%s1114_s23 + $0x18] sm:$0xff]   ;;  %v1034_v16 = vld [vmem:[%s1114_s23 + $0x20] sm:$0xff]   ;;  %v1036_v18 = vld [vmem:[%s1114_s23 + $0x28] sm:$0xff]  }
  0x14   : > { %937 = vmatpush3.bf16.msra.mxu0 %v1021_v3  ;;  %989 = vmatpush3.bf16.msra.mxu1 %v1021_v3  ;;  %v1033_v15 = vld [vmem:[%s1114_s23 + $0x58] sm:$0xff]   ;;  %v1035_v17 = vld [vmem:[%s1114_s23 + $0x60] sm:$0xff]   ;;  %v1037_v19 = vld [vmem:[%s1114_s23 + $0x68] sm:$0xff]  }
  0x15   : > { %938 = vmatprep.subr.bf16.mxu0 %v1022_v6  ;;  %982 = vmatprep.subr.bf16.mxu1 %v1022_v6  ;;  %v1038_v20 = vld [vmem:[%s1114_s23 + $0x30] sm:$0xff]   ;;  %v1040_v22 = vld [vmem:[%s1114_s23 + $0x38] sm:$0xff]  }
  0x16   : > { %v1039_v21 = vld [vmem:[%s1114_s23 + $0x70] sm:$0xff]   ;;  %v1041_v23 = vld [vmem:[%s1114_s23 + $0x78] sm:$0xff]  }
  0x18   : > { %939 = vmatpush3.bf16.msra.mxu0 %v1022_v6  ;;  %990 = vmatpush3.bf16.msra.mxu1 %v1022_v6 }
  0x19   : > { %940 = vmatprep.subr.bf16.mxu0 %v1023_v7  ;;  %983 = vmatprep.subr.bf16.mxu1 %v1023_v7 }
  0x1c   : > { %941 = vmatpush3.bf16.msra.mxu0 %v1023_v7  ;;  %991 = vmatpush3.bf16.msra.mxu1 %v1023_v7 }
  0x1d   : > { %942 = vmatprep.subr.bf16.mxu0 %v1024_v8  ;;  %984 = vmatprep.subr.bf16.mxu1 %v1024_v8 }
  0x20   : > { %943 = vmatpush3.bf16.msra.mxu0 %v1024_v8  ;;  %992 = vmatpush3.bf16.msra.mxu1 %v1024_v8 }
  0x21   : > { %944 = vmatprep.subr.bf16.mxu0 %v1025_v9  ;;  %985 = vmatprep.subr.bf16.mxu1 %v1025_v9 }
  0x24   : > { %945 = vmatpush3.bf16.msra.mxu0 %v1025_v9  ;;  %993 = vmatpush3.bf16.msra.mxu1 %v1025_v9 }
  0x27   : > { %947 = vmatmul.mubr.bf16.vlgmr.msra.gmra.mrb[0].mxu0 %v1028_v10  ;;  %963 = vmatmul.mubr.bf16.vlgmr.msra.gmra.mrb[0].mxu1 %v1029_v11 }
  0x28   : > { %950 = vmatprep.mubr.bf16.mxu0 %v1030_v12  ;;  %966 = vmatprep.mubr.bf16.mxu1 %v1031_v13 }
  0x2f   : > { %951 = vmatmul.mubr.bf16.gmra.mrb[4].mxu0 %v1032_v14  ;;  %967 = vmatmul.mubr.bf16.gmra.mrb[4].mxu1 %v1033_v15 }
  0x30   : > { %954 = vmatprep.mubr.bf16.mxu0 %v1034_v16  ;;  %970 = vmatprep.mubr.bf16.mxu1 %v1035_v17 }
  0x37   : > { %955 = vmatmul.mubr.bf16.gmra.mrb[8].mxu0 %v1036_v18  ;;  %971 = vmatmul.mubr.bf16.gmra.mrb[8].mxu1 %v1037_v19 }
  0x38   : > { %958 = vmatprep.mubr.bf16.mxu0 %v1038_v20  ;;  %974 = vmatprep.mubr.bf16.mxu1 %v1039_v21 }
  0x3f   : > { %959 = vmatmul.mubr.bf16.gmra.mrb[12].mxu0 %v1040_v22  ;;  %975 = vmatmul.mubr.bf16.gmra.mrb[12].mxu1 %v1041_v23 }
  0xfa   : > { %v948_v24 = vpop.f32.mrb[0].mxu0  ;;  %v964_v25 = vpop.f32.mrb[0].mxu1 }
  0xfb   : > { %741 = vst [vmem:[%s1151_s9 + $0x10] sm:$0xff] %v948_v24  ;;  %757 = vst [vmem:[%s1151_s9 + $0x90] sm:$0xff] %v964_v25  ;;  %v513_v26 = vpop.f32.mrb[1].mxu0  ;;  %v577_v27 = vpop.f32.mrb[1].mxu1 }
  0xfc   : > { %739 = vst [vmem:[%s1151_s9] sm:$0xff] %v513_v26  ;;  %755 = vst [vmem:[%s1151_s9 + $0x80] sm:$0xff] %v577_v27  ;;  %v949_v28 = vpop.f32.mrb[2].mxu0  ;;  %v965_v29 = vpop.f32.mrb[2].mxu1 }
  0xfd   : > { %742 = vst [vmem:[%s1151_s9 + $0x18] sm:$0xff] %v949_v28  ;;  %758 = vst [vmem:[%s1151_s9 + $0x98] sm:$0xff] %v965_v29  ;;  %v516_v30 = vpop.f32.mrb[3].mxu0  ;;  %v580_v31 = vpop.f32.mrb[3].mxu1 }
  0xfe   : > { %740 = vst [vmem:[%s1151_s9 + $0x8] sm:$0xff] %v516_v30  ;;  %756 = vst [vmem:[%s1151_s9 + $0x88] sm:$0xff] %v580_v31 }
 0x102   : > { %v952_v32 = vpop.f32.mrb[4].mxu0  ;;  %v968_v33 = vpop.f32.mrb[4].mxu1 }
 0x103   : > { %745 = vst [vmem:[%s1151_s9 + $0x30] sm:$0xff] %v952_v32  ;;  %761 = vst [vmem:[%s1151_s9 + $0xb0] sm:$0xff] %v968_v33  ;;  %v529_v34 = vpop.f32.mrb[5].mxu0  ;;  %v593_v35 = vpop.f32.mrb[5].mxu1 }
 0x104   : > { %743 = vst [vmem:[%s1151_s9 + $0x20] sm:$0xff] %v529_v34  ;;  %759 = vst [vmem:[%s1151_s9 + $0xa0] sm:$0xff] %v593_v35  ;;  %v953_v36 = vpop.f32.mrb[6].mxu0  ;;  %v969_v37 = vpop.f32.mrb[6].mxu1 }
 0x105   : > { %746 = vst [vmem:[%s1151_s9 + $0x38] sm:$0xff] %v953_v36  ;;  %762 = vst [vmem:[%s1151_s9 + $0xb8] sm:$0xff] %v969_v37  ;;  %v532_v38 = vpop.f32.mrb[7].mxu0  ;;  %v596_v39 = vpop.f32.mrb[7].mxu1 }
 0x106   : > { %744 = vst [vmem:[%s1151_s9 + $0x28] sm:$0xff] %v532_v38  ;;  %760 = vst [vmem:[%s1151_s9 + $0xa8] sm:$0xff] %v596_v39 }
 0x10a   : > { %v956_v40 = vpop.f32.mrb[8].mxu0  ;;  %v972_v41 = vpop.f32.mrb[8].mxu1 }
 0x10b   : > { %749 = vst [vmem:[%s1151_s9 + $0x50] sm:$0xff] %v956_v40  ;;  %765 = vst [vmem:[%s1151_s9 + $0xd0] sm:$0xff] %v972_v41  ;;  %v545_v42 = vpop.f32.mrb[9].mxu0  ;;  %v609_v43 = vpop.f32.mrb[9].mxu1 }
 0x10c   : > { %747 = vst [vmem:[%s1151_s9 + $0x40] sm:$0xff] %v545_v42  ;;  %763 = vst [vmem:[%s1151_s9 + $0xc0] sm:$0xff] %v609_v43  ;;  %v957_v44 = vpop.f32.mrb[10].mxu0  ;;  %v973_v45 = vpop.f32.mrb[10].mxu1 }
 0x10d   : > { %750 = vst [vmem:[%s1151_s9 + $0x58] sm:$0xff] %v957_v44  ;;  %766 = vst [vmem:[%s1151_s9 + $0xd8] sm:$0xff] %v973_v45  ;;  %v548_v46 = vpop.f32.mrb[11].mxu0  ;;  %v612_v47 = vpop.f32.mrb[11].mxu1 }
 0x10e   : > { %748 = vst [vmem:[%s1151_s9 + $0x48] sm:$0xff] %v548_v46  ;;  %764 = vst [vmem:[%s1151_s9 + $0xc8] sm:$0xff] %v612_v47 }
 0x112   : > { %v960_v48 = vpop.f32.mrb[12].mxu0  ;;  %v976_v49 = vpop.f32.mrb[12].mxu1 }
 0x113   : > { %753 = vst [vmem:[%s1151_s9 + $0x70] sm:$0xff] %v960_v48  ;;  %769 = vst [vmem:[%s1151_s9 + $0xf0] sm:$0xff] %v976_v49  ;;  %v561_v50 = vpop.f32.mrb[13].mxu0  ;;  %v625_v51 = vpop.f32.mrb[13].mxu1 }
 0x114   : > { %751 = vst [vmem:[%s1151_s9 + $0x60] sm:$0xff] %v561_v50  ;;  %767 = vst [vmem:[%s1151_s9 + $0xe0] sm:$0xff] %v625_v51  ;;  %v961_v52 = vpop.f32.mrb[14].mxu0  ;;  %v977_v53 = vpop.f32.mrb[14].mxu1 }
 0x115   : > { %754 = vst [vmem:[%s1151_s9 + $0x78] sm:$0xff] %v961_v52  ;;  %770 = vst [vmem:[%s1151_s9 + $0xf8] sm:$0xff] %v977_v53  ;;  %v564_v54 = vpop.f32.mrb[15].mxu0  ;;  %v628_v55 = vpop.f32.mrb[15].mxu1 }
 0x116   : > { %752 = vst [vmem:[%s1151_s9 + $0x68] sm:$0xff] %v564_v54  ;;  %768 = vst [vmem:[%s1151_s9 + $0xe8] sm:$0xff] %v628_v55 }
 0x117 PF: > { %s12_s11 = sadd.s32 1, %s1064_s11   ;;  %s1197_s9 = smov %s1060_s10 }
 0x118   : > { %p9_p5 = scmp.ge.s32.totalorder %s12_s11, 4   ;;  %s1198_s10 = smov %s1200_s12 }
 0x11a   :  { %11 = sbr.rel (!%p9_p5) target bundleno = 2 (0x2), region = 69 }

// kernel: _lambda_.41
= control target key start
LH: loop header
LB: loop body
LE: loop exit
PB: predicated region body
PF: predicated region fallthrough
CT: control target
= control target key end

     0   :  { %v97_v0 = vmov 0.0   ;;  %vm88_vm0 = vcmask 1040384   ;;  %s165_s1 = inlined_call_operand.vmem [shape: f32[2,128], index: 1, kind: output, shape index: {}]   ;;  %s166_s0 = inlined_call_operand.vmem [shape: f32[128,128], index: 0, kind: input, shape index: {}]  }
   0x1   :  { %12 = vst [vmem:[%s165_s1] sm:$0x3] %v97_v0  ;;  %v13_v1 = vld [vmem:[%s166_s0] sm:$0xff]  ;;  %v14_v2 = vld [vmem:[%s166_s0 + $0x8] sm:$0xff]  ;;  %v15_v3 = vld [vmem:[%s166_s0 + $0x10] sm:$0xff] }
   0x2   :  { %v16_v4 = vld [vmem:[%s166_s0 + $0x18] sm:$0xff]  ;;  %v30_v5 = vadd.f32 %v14_v2, %v13_v1  ;;  %v51_v6 = vmul.f32 %v13_v1, %v13_v1  ;;  %v52_v7 = vmul.f32 %v14_v2, %v14_v2  ;;  %v53_v8 = vmul.f32 %v15_v3, %v15_v3  ;;  %v17_v9 = vld [vmem:[%s166_s0 + $0x20] sm:$0xff]  ;;  %v18_v13 = vld [vmem:[%s166_s0 + $0x28] sm:$0xff] }
   0x3   :  { %v54_v11 = vmul.f32 %v16_v4, %v16_v4  ;;  %v55_v15 = vmul.f32 %v17_v9, %v17_v9  ;;  %v19_v17 = vld [vmem:[%s166_s0 + $0x30] sm:$0xff]  ;;  %v56_v19 = vmul.f32 %v18_v13, %v18_v13  ;;  %v20_v21 = vld [vmem:[%s166_s0 + $0x38] sm:$0xff]  ;;  %v21_v25 = vld [vmem:[%s166_s0 + $0x40] sm:$0xff] }
   0x4   :  { %v31_v10 = vadd.f32 %v30_v5, %v15_v3  ;;  %v67_v12 = vadd.f32 %v52_v7, %v51_v6  ;;  %v57_v23 = vmul.f32 %v19_v17, %v19_v17  ;;  %v58_v27 = vmul.f32 %v20_v21, %v20_v21  ;;  %v22_v29 = vld [vmem:[%s166_s0 + $0x48] sm:$0xff]  ;;  %v23_v33 = vld [vmem:[%s166_s0 + $0x50] sm:$0xff]  ;;  %v24_v37 = vld [vmem:[%s166_s0 + $0x58] sm:$0xff] }
   0x5   :  { %v59_v31 = vmul.f32 %v21_v25, %v21_v25  ;;  %v60_v35 = vmul.f32 %v22_v29, %v22_v29  ;;  %v61_v39 = vmul.f32 %v23_v33, %v23_v33  ;;  %v25_v41 = vld [vmem:[%s166_s0 + $0x60] sm:$0xff]  ;;  %v62_v43 = vmul.f32 %v24_v37, %v24_v37  ;;  %v26_v45 = vld [vmem:[%s166_s0 + $0x68] sm:$0xff]  ;;  %v27_v49 = vld [vmem:[%s166_s0 + $0x70] sm:$0xff] }
   0x6   :  { %v32_v14 = vadd.f32 %v31_v10, %v16_v4  ;;  %v68_v16 = vadd.f32 %v67_v12, %v53_v8  ;;  %v63_v47 = vmul.f32 %v25_v41, %v25_v41  ;;  %v64_v51 = vmul.f32 %v26_v45, %v26_v45  ;;  %v28_v53 = vld [vmem:[%s166_s0 + $0x78] sm:$0xff] }
   0x7   :  { %v65_v55 = vmul.f32 %v27_v49, %v27_v49  ;;  %v66_v58 = vmul.f32 %v28_v53, %v28_v53 }
   0x8   :  { %v33_v18 = vadd.f32 %v32_v14, %v17_v9  ;;  %v69_v20 = vadd.f32 %v68_v16, %v54_v11  ;;  %v29_v10 = vld [vmem:[%s165_s1] sm:$0x3] }
   0xa   :  { %v34_v22 = vadd.f32 %v33_v18, %v18_v13  ;;  %v70_v24 = vadd.f32 %v69_v20, %v55_v15 }
   0xc   :  { %v35_v26 = vadd.f32 %v34_v22, %v19_v17  ;;  %v71_v28 = vadd.f32 %v70_v24, %v56_v19 }
   0xe   :  { %v36_v30 = vadd.f32 %v35_v26, %v20_v21  ;;  %v72_v32 = vadd.f32 %v71_v28, %v57_v23 }
  0x10   :  { %v37_v34 = vadd.f32 %v36_v30, %v21_v25  ;;  %v73_v36 = vadd.f32 %v72_v32, %v58_v27 }
  0x12   :  { %v38_v38 = vadd.f32 %v37_v34, %v22_v29  ;;  %v74_v40 = vadd.f32 %v73_v36, %v59_v31 }
  0x14   :  { %v39_v42 = vadd.f32 %v38_v38, %v23_v33  ;;  %v75_v44 = vadd.f32 %v74_v40, %v60_v35 }
  0x16   :  { %v40_v46 = vadd.f32 %v39_v42, %v24_v37  ;;  %v76_v48 = vadd.f32 %v75_v44, %v61_v39 }
  0x18   :  { %v41_v50 = vadd.f32 %v40_v46, %v25_v41  ;;  %v77_v52 = vadd.f32 %v76_v48, %v62_v43 }
  0x1a   :  { %v42_v54 = vadd.f32 %v41_v50, %v26_v45  ;;  %v78_v56 = vadd.f32 %v77_v52, %v63_v47 }
  0x1c   :  { %v43_v57 = vadd.f32 %v42_v54, %v27_v49  ;;  %v79_v59 = vadd.f32 %v78_v56, %v64_v51 }
  0x1e   :  { %v44_v60 = vadd.f32 %v43_v57, %v28_v53  ;;  %v80_v61 = vadd.f32 %v79_v59, %v65_v55 }
  0x20   :  { %v45_v62 = vrot.slane %v44_v60, 4  ;;  %v81_v63 = vadd.f32 %v80_v61, %v66_v58 }
  0x22   :  { %v46_v0 = vadd.f32 %v45_v62, %v44_v60  ;;  %v82_v1 = vrot.slane %v81_v63, 4 }
  0x24   :  { %v47_v2 = vrot.slane %v46_v0, 2  ;;  %v83_v3 = vadd.f32 %v82_v1, %v81_v63 }
  0x26   :  { %v48_v4 = vadd.f32 %v47_v2, %v46_v0  ;;  %v84_v5 = vrot.slane %v83_v3, 2 }
  0x28   :  { %v49_v6 = vrot.slane %v48_v4, 1  ;;  %v85_v7 = vadd.f32 %v84_v5, %v83_v3 }
  0x2a   :  { %v50_v8 = vadd.f32 %v49_v6, %v48_v4  ;;  %v86_v9 = vrot.slane %v85_v7, 1 }
  0x2c   :  { %v87_v11 = vadd.f32 %v86_v9, %v85_v7 }
  0x2e   :  { %v89_v12 = vsel %vm88_vm0, %v50_v8, %v87_v11 }
  0x2f   :  { %v90_v13 = vadd.f32 %v89_v12, %v29_v10 }
  0x31   :  { %91 = vst [vmem:[%s165_s1] sm:$0x3] %v90_v13 }

// kernel: _lambda_.42
= control target key start
LH: loop header
LB: loop body
LE: loop exit
PB: predicated region body
PF: predicated region fallthrough
CT: control target
= control target key end

     0   :  { %s220_s0 = inlined_call_operand.vmem [shape: f32[128,128], index: 0, kind: input, shape index: {}]   ;;  %s221_s1 = inlined_call_operand.vmem [shape: f32[1,128], index: 1, kind: input, shape index: {}]   ;;  %s222_s2 = inlined_call_operand.vmem [shape: f32[1,128], index: 2, kind: input, shape index: {}]   ;;  %s223_s3 = inlined_call_operand.vmem [shape: f32[128,128], index: 3, kind: output, shape index: {}]  }
   0x1   :  { %v14_v0 = vld [vmem:[%s220_s0] sm:$0xff]  ;;  %v15_v4 = vld [vmem:[%s220_s0 + $0x8] sm:$0xff]  ;;  %v16_v5 = vld [vmem:[%s220_s0 + $0x10] sm:$0xff] }
   0x2   :  { %v96_v1 = vld [vmem:[%s221_s1] ss:$0 sm:$0xff]  ;;  %v17_v6 = vld [vmem:[%s220_s0 + $0x18] sm:$0xff]  ;;  %v19_v11 = vld [vmem:[%s220_s0 + $0x28] sm:$0xff] }
   0x3   :  { %v97_v2 = vld [vmem:[%s222_s2] ss:$0 sm:$0xff]  ;;  %v37_v3 = vmul.f32 %v96_v1, %v14_v0  ;;  %v38_v7 = vmul.f32 %v96_v1, %v15_v4  ;;  %v39_v8 = vmul.f32 %v96_v1, %v16_v5  ;;  %v40_v9 = vmul.f32 %v96_v1, %v17_v6  ;;  %v20_v12 = vld [vmem:[%s220_s0 + $0x30] sm:$0xff]  ;;  %v21_v17 = vld [vmem:[%s220_s0 + $0x38] sm:$0xff] }
   0x4   :  { %v18_v10 = vld [vmem:[%s220_s0 + $0x20] sm:$0xff]  ;;  %v42_v15 = vmul.f32 %v96_v1, %v19_v11  ;;  %v43_v16 = vmul.f32 %v96_v1, %v20_v12  ;;  %v23_v19 = vld [vmem:[%s220_s0 + $0x48] sm:$0xff]  ;;  %v44_v23 = vmul.f32 %v96_v1, %v21_v17  ;;  %v24_v24 = vld [vmem:[%s220_s0 + $0x50] sm:$0xff] }
   0x5   :  { %v60_v13 = vadd.f32 %v97_v2, %v37_v3  ;;  %v41_v14 = vmul.f32 %v96_v1, %v18_v10  ;;  %v22_v18 = vld [vmem:[%s220_s0 + $0x40] sm:$0xff]  ;;  %v61_v20 = vadd.f32 %v97_v2, %v38_v7  ;;  %v62_v21 = vadd.f32 %v97_v2, %v39_v8  ;;  %v25_v25 = vld [vmem:[%s220_s0 + $0x58] sm:$0xff]  ;;  %v27_v31 = vld [vmem:[%s220_s0 + $0x68] sm:$0xff] }
   0x6   :  { %v63_v22 = vadd.f32 %v97_v2, %v40_v9  ;;  %v26_v26 = vld [vmem:[%s220_s0 + $0x60] sm:$0xff]  ;;  %v65_v28 = vadd.f32 %v97_v2, %v42_v15  ;;  %v66_v29 = vadd.f32 %v97_v2, %v43_v16  ;;  %v45_v30 = vmul.f32 %v96_v1, %v22_v18  ;;  %v28_v32 = vld [vmem:[%s220_s0 + $0x70] sm:$0xff]  ;;  %v29_v33 = vld [vmem:[%s220_s0 + $0x78] sm:$0xff] }
   0x7   :  { %76 = vst [vmem:[%s223_s3] sm:$0xff] %v60_v13  ;;  %v64_v27 = vadd.f32 %v97_v2, %v41_v14  ;;  %77 = vst [vmem:[%s223_s3 + $0x8] sm:$0xff] %v61_v20  ;;  %v67_v34 = vadd.f32 %v97_v2, %v44_v23  ;;  %v46_v35 = vmul.f32 %v96_v1, %v23_v19 }
   0x8   :  { %78 = vst [vmem:[%s223_s3 + $0x10] sm:$0xff] %v62_v21  ;;  %79 = vst [vmem:[%s223_s3 + $0x18] sm:$0xff] %v63_v22  ;;  %v47_v36 = vmul.f32 %v96_v1, %v24_v24  ;;  %v48_v37 = vmul.f32 %v96_v1, %v25_v25  ;;  %v68_v38 = vadd.f32 %v97_v2, %v45_v30 }
   0x9   :  { %80 = vst [vmem:[%s223_s3 + $0x20] sm:$0xff] %v64_v27  ;;  %81 = vst [vmem:[%s223_s3 + $0x28] sm:$0xff] %v65_v28  ;;  %v49_v39 = vmul.f32 %v96_v1, %v26_v26  ;;  %v50_v40 = vmul.f32 %v96_v1, %v27_v31  ;;  %v51_v41 = vmul.f32 %v96_v1, %v28_v32 }
   0xa   :  { %82 = vst [vmem:[%s223_s3 + $0x30] sm:$0xff] %v66_v29  ;;  %83 = vst [vmem:[%s223_s3 + $0x38] sm:$0xff] %v67_v34  ;;  %v69_v42 = vadd.f32 %v97_v2, %v46_v35  ;;  %v70_v43 = vadd.f32 %v97_v2, %v47_v36  ;;  %v71_v44 = vadd.f32 %v97_v2, %v48_v37 }
   0xb   :  { %v52_v45 = vmul.f32 %v96_v1, %v29_v33  ;;  %84 = vst [vmem:[%s223_s3 + $0x40] sm:$0xff] %v68_v38  ;;  %v72_v46 = vadd.f32 %v97_v2, %v49_v39  ;;  %v73_v47 = vadd.f32 %v97_v2, %v50_v40  ;;  %v74_v48 = vadd.f32 %v97_v2, %v51_v41 }
   0xc   :  { %85 = vst [vmem:[%s223_s3 + $0x48] sm:$0xff] %v69_v42  ;;  %86 = vst [vmem:[%s223_s3 + $0x50] sm:$0xff] %v70_v43 }
   0xd   :  { %87 = vst [vmem:[%s223_s3 + $0x58] sm:$0xff] %v71_v44  ;;  %v75_v49 = vadd.f32 %v97_v2, %v52_v45  ;;  %88 = vst [vmem:[%s223_s3 + $0x60] sm:$0xff] %v72_v46 }
   0xe   :  { %89 = vst [vmem:[%s223_s3 + $0x68] sm:$0xff] %v73_v47  ;;  %90 = vst [vmem:[%s223_s3 + $0x70] sm:$0xff] %v74_v48 }
   0xf   :  { %91 = vst [vmem:[%s223_s3 + $0x78] sm:$0xff] %v75_v49 }

// kernel: _lambda_.40
= control target key start
LH: loop header
LB: loop body
LE: loop exit
PB: predicated region body
PF: predicated region fallthrough
CT: control target
= control target key end

     0   :  { %s620_s1 = inlined_call_operand.vmem [shape: bf16[128,128], index: 1, kind: input, shape index: {}]   ;;  %s621_s0 = inlined_call_operand.vmem [shape: bf16[128,128], index: 0, kind: input, shape index: {}]   ;;  %s622_s2 = inlined_call_operand.vmem [shape: f32[128,128], index: 2, kind: output, shape index: {}]  }
   0x1   :  { %v473_v0 = vld [vmem:[%s620_s1] sm:$0xff]   ;;  %v474_v1 = vld [vmem:[%s620_s1 + $0x8] sm:$0xff]   ;;  %v475_v2 = vld [vmem:[%s620_s1 + $0x10] sm:$0xff]  }
   0x2   :  { %425 = vmatprep.subr.bf16.mxu0 %v473_v0  ;;  %457 = vmatprep.subr.bf16.mxu1 %v473_v0  ;;  %v476_v3 = vld [vmem:[%s620_s1 + $0x18] sm:$0xff]   ;;  %v33_v4 = vld [vmem:[%s621_s0] sm:$0xf]  ;;  %v34_v5 = vld [vmem:[%s621_s0 + $0x4] sm:$0xf] }
   0x3   :  { %426 = vmatpush3.bf16.msra.mxu0 %v473_v0  ;;  %465 = vmatpush3.bf16.msra.mxu1 %v473_v0  ;;  %v41_v6 = vld [vmem:[%s621_s0 + $0x20] sm:$0xf]  ;;  %vm49_vm0 = vcmp.gt.bf16.partialorder %v33_v4, 0  ;;  %vm50_vm1 = vcmp.gt.bf16.partialorder %v34_v5, 0  ;;  %v65_v7 = vmul.bf16 1045249613, %v33_v4 }
   0x4   :  { %427 = vmatprep.subr.bf16.mxu0 %v474_v1  ;;  %458 = vmatprep.subr.bf16.mxu1 %v474_v1  ;;  %v66_v8 = vmul.bf16 1045249613, %v34_v5  ;;  %v42_v9 = vld [vmem:[%s621_s0 + $0x24] sm:$0xf]  ;;  %vm57_vm2 = vcmp.gt.bf16.partialorder %v41_v6, 0  ;;  %v478_v19 = vld [vmem:[%s620_s1 + $0x28] sm:$0xff]  }
   0x5   :  { %v73_v10 = vmul.bf16 1045249613, %v41_v6  ;;  %v81_v11 = vsel %vm49_vm0, %v33_v4, %v65_v7  ;;  %vm58_vm3 = vcmp.gt.bf16.partialorder %v42_v9, 0  ;;  %v74_v13 = vmul.bf16 1045249613, %v42_v9  ;;  %v477_v14 = vld [vmem:[%s620_s1 + $0x20] sm:$0xff]  }
   0x6   :  { %v82_v12 = vsel %vm50_vm1, %v34_v5, %v66_v8  ;;  %v35_v20 = vld [vmem:[%s621_s0 + $0x8] sm:$0xf]  ;;  %v36_v21 = vld [vmem:[%s621_s0 + $0xc] sm:$0xf]  ;;  %v479_v22 = vld [vmem:[%s620_s1 + $0x30] sm:$0xff]  }
   0x7   :  { %428 = vmatpush3.bf16.msra.mxu0 %v474_v1  ;;  %466 = vmatpush3.bf16.msra.mxu1 %v474_v1  ;;  %v393_v15 = vcombine.low %v81_v11, %v82_v12  ;;  %v89_v16 = vsel %vm57_vm2, %v41_v6, %v73_v10  ;;  %v90_v17 = vsel %vm58_vm3, %v42_v9, %v74_v13  ;;  %v43_v23 = vld [vmem:[%s621_s0 + $0x28] sm:$0xf]  ;;  %v44_v24 = vld [vmem:[%s621_s0 + $0x2c] sm:$0xf]  ;;  %v67_v25 = vmul.bf16 1045249613, %v35_v20 }
   0x8   :  { %429 = vmatprep.subr.bf16.mxu0 %v475_v2  ;;  %459 = vmatprep.subr.bf16.mxu1 %v475_v2  ;;  %v397_v18 = vcombine.low %v89_v16, %v90_v17  ;;  %v37_v26 = vld [vmem:[%s621_s0 + $0x10] sm:$0xf]  ;;  %v38_v27 = vld [vmem:[%s621_s0 + $0x14] sm:$0xf]  ;;  %vm51_vm4 = vcmp.gt.bf16.partialorder %v35_v20, 0  ;;  %vm52_vm5 = vcmp.gt.bf16.partialorder %v36_v21, 0 }
   0x9   :  { %441 = vmatprep.mubr.bf16.mxu0 %v393_v15  ;;  %v45_v28 = vld [vmem:[%s621_s0 + $0x30] sm:$0xf]  ;;  %v46_v29 = vld [vmem:[%s621_s0 + $0x34] sm:$0xf]  ;;  %v480_v30 = vld [vmem:[%s620_s1 + $0x38] sm:$0xff]   ;;  %vm59_vm6 = vcmp.gt.bf16.partialorder %v43_v23, 0  ;;  %v83_v38 = vsel %vm51_vm4, %v35_v20, %v67_v25 }
   0xa   :  { %449 = vmatprep.mubr.bf16.mxu1 %v397_v18  ;;  %v68_v31 = vmul.bf16 1045249613, %v36_v21  ;;  %vm60_vm7 = vcmp.gt.bf16.partialorder %v44_v24, 0  ;;  %v75_v32 = vmul.bf16 1045249613, %v43_v23  ;;  %vm53_vm8 = vcmp.gt.bf16.partialorder %v37_v26, 0 }
   0xb   :  { %430 = vmatpush3.bf16.msra.mxu0 %v475_v2  ;;  %467 = vmatpush3.bf16.msra.mxu1 %v475_v2  ;;  %v76_v33 = vmul.bf16 1045249613, %v44_v24  ;;  %v69_v34 = vmul.bf16 1045249613, %v37_v26  ;;  %v70_v35 = vmul.bf16 1045249613, %v38_v27 }
   0xc   :  { %431 = vmatprep.subr.bf16.mxu0 %v476_v3  ;;  %460 = vmatprep.subr.bf16.mxu1 %v476_v3  ;;  %vm54_vm9 = vcmp.gt.bf16.partialorder %v38_v27, 0  ;;  %v77_v36 = vmul.bf16 1045249613, %v45_v28  ;;  %v78_v37 = vmul.bf16 1045249613, %v46_v29  ;;  %vm61_vm10 = vcmp.gt.bf16.partialorder %v45_v28, 0 }
   0xd   :  { %vm62_vm11 = vcmp.gt.bf16.partialorder %v46_v29, 0  ;;  %v84_v39 = vsel %vm52_vm5, %v36_v21, %v68_v31  ;;  %v91_v40 = vsel %vm59_vm6, %v43_v23, %v75_v32  ;;  %v92_v41 = vsel %vm60_vm7, %v44_v24, %v76_v33  ;;  %v39_v44 = vld [vmem:[%s621_s0 + $0x18] sm:$0xf]  ;;  %v40_v47 = vld [vmem:[%s621_s0 + $0x1c] sm:$0xf] }
   0xe   :  { %v85_v42 = vsel %vm53_vm8, %v37_v26, %v69_v34  ;;  %v86_v43 = vsel %vm54_vm9, %v38_v27, %v70_v35  ;;  %v93_v45 = vsel %vm61_vm10, %v45_v28, %v77_v36  ;;  %v94_v46 = vsel %vm62_vm11, %v46_v29, %v78_v37  ;;  %v47_v48 = vld [vmem:[%s621_s0 + $0x38] sm:$0xf]  ;;  %v48_v49 = vld [vmem:[%s621_s0 + $0x3c] sm:$0xf] }
   0xf   :  { %432 = vmatpush3.bf16.msra.mxu0 %v476_v3  ;;  %468 = vmatpush3.bf16.msra.mxu1 %v476_v3  ;;  %v394_v50 = vcombine.low %v83_v38, %v84_v39  ;;  %v398_v51 = vcombine.low %v91_v40, %v92_v41  ;;  %v395_v52 = vcombine.low %v85_v42, %v86_v43  ;;  %vm55_vm12 = vcmp.gt.bf16.partialorder %v39_v44, 0 }
  0x10   :  { %433 = vmatprep.subr.bf16.mxu0 %v477_v14  ;;  %461 = vmatprep.subr.bf16.mxu1 %v477_v14  ;;  %v71_v53 = vmul.bf16 1045249613, %v39_v44  ;;  %v399_v54 = vcombine.low %v93_v45, %v94_v46  ;;  %v72_v55 = vmul.bf16 1045249613, %v40_v47  ;;  %v79_v56 = vmul.bf16 1045249613, %v47_v48 }
  0x11   :  { %v80_v57 = vmul.bf16 1045249613, %v48_v49  ;;  %vm56_vm13 = vcmp.gt.bf16.partialorder %v40_v47, 0  ;;  %vm63_vm14 = vcmp.gt.bf16.partialorder %v47_v48, 0  ;;  %vm64_vm15 = vcmp.gt.bf16.partialorder %v48_v49, 0 }
  0x12   :  { %v87_v58 = vsel %vm55_vm12, %v39_v44, %v71_v53  ;;  %v88_v59 = vsel %vm56_vm13, %v40_v47, %v72_v55  ;;  %v95_v60 = vsel %vm63_vm14, %v47_v48, %v79_v56 }
  0x13   :  { %434 = vmatpush3.bf16.msra.mxu0 %v477_v14  ;;  %469 = vmatpush3.bf16.msra.mxu1 %v477_v14  ;;  %v96_v61 = vsel %vm64_vm15, %v48_v49, %v80_v57  ;;  %v396_v62 = vcombine.low %v87_v58, %v88_v59 }
  0x14   :  { %435 = vmatprep.subr.bf16.mxu0 %v478_v19  ;;  %462 = vmatprep.subr.bf16.mxu1 %v478_v19  ;;  %v400_v63 = vcombine.low %v95_v60, %v96_v61 }
  0x17   :  { %436 = vmatpush3.bf16.msra.mxu0 %v478_v19  ;;  %470 = vmatpush3.bf16.msra.mxu1 %v478_v19 }
  0x18   :  { %437 = vmatprep.subr.bf16.mxu0 %v479_v22  ;;  %463 = vmatprep.subr.bf16.mxu1 %v479_v22 }
  0x1b   :  { %438 = vmatpush3.bf16.msra.mxu0 %v479_v22  ;;  %471 = vmatpush3.bf16.msra.mxu1 %v479_v22 }
  0x1c   :  { %439 = vmatprep.subr.bf16.mxu0 %v480_v30  ;;  %464 = vmatprep.subr.bf16.mxu1 %v480_v30 }
  0x1f   :  { %440 = vmatpush3.bf16.msra.mxu0 %v480_v30  ;;  %472 = vmatpush3.bf16.msra.mxu1 %v480_v30 }
  0x22   :  { %442 = vmatmul.mubr.bf16.vlgmr.msra.gmra.mrb[0].mxu0 %v394_v50  ;;  %450 = vmatmul.mubr.bf16.vlgmr.msra.gmra.mrb[0].mxu1 %v398_v51 }
  0x23   :  { %445 = vmatprep.mubr.bf16.mxu0 %v395_v52  ;;  %453 = vmatprep.mubr.bf16.mxu1 %v399_v54 }
  0x2a   :  { %446 = vmatmul.mubr.bf16.gmra.mrb[4].mxu0 %v396_v62  ;;  %454 = vmatmul.mubr.bf16.gmra.mrb[4].mxu1 %v400_v63 }
  0xf5   :  { %v443_v0 = vpop.f32.mrb[0].mxu0  ;;  %v451_v1 = vpop.f32.mrb[0].mxu1 }
  0xf6   :  { %375 = vst [vmem:[%s622_s2 + $0x10] sm:$0xff] %v443_v0  ;;  %383 = vst [vmem:[%s622_s2 + $0x50] sm:$0xff] %v451_v1  ;;  %v259_v2 = vpop.f32.mrb[1].mxu0  ;;  %v291_v3 = vpop.f32.mrb[1].mxu1 }
  0xf7   :  { %373 = vst [vmem:[%s622_s2] sm:$0xff] %v259_v2  ;;  %381 = vst [vmem:[%s622_s2 + $0x40] sm:$0xff] %v291_v3  ;;  %v444_v4 = vpop.f32.mrb[2].mxu0  ;;  %v452_v5 = vpop.f32.mrb[2].mxu1 }
  0xf8   :  { %376 = vst [vmem:[%s622_s2 + $0x18] sm:$0xff] %v444_v4  ;;  %384 = vst [vmem:[%s622_s2 + $0x58] sm:$0xff] %v452_v5  ;;  %v262_v6 = vpop.f32.mrb[3].mxu0  ;;  %v294_v7 = vpop.f32.mrb[3].mxu1 }
  0xf9   :  { %374 = vst [vmem:[%s622_s2 + $0x8] sm:$0xff] %v262_v6  ;;  %382 = vst [vmem:[%s622_s2 + $0x48] sm:$0xff] %v294_v7 }
  0xfd   :  { %v447_v8 = vpop.f32.mrb[4].mxu0  ;;  %v455_v9 = vpop.f32.mrb[4].mxu1 }
  0xfe   :  { %379 = vst [vmem:[%s622_s2 + $0x30] sm:$0xff] %v447_v8  ;;  %387 = vst [vmem:[%s622_s2 + $0x70] sm:$0xff] %v455_v9  ;;  %v275_v10 = vpop.f32.mrb[5].mxu0  ;;  %v307_v11 = vpop.f32.mrb[5].mxu1 }
  0xff   :  { %377 = vst [vmem:[%s622_s2 + $0x20] sm:$0xff] %v275_v10  ;;  %385 = vst [vmem:[%s622_s2 + $0x60] sm:$0xff] %v307_v11  ;;  %v448_v12 = vpop.f32.mrb[6].mxu0  ;;  %v456_v13 = vpop.f32.mrb[6].mxu1 }
 0x100   :  { %380 = vst [vmem:[%s622_s2 + $0x38] sm:$0xff] %v448_v12  ;;  %388 = vst [vmem:[%s622_s2 + $0x78] sm:$0xff] %v456_v13  ;;  %v278_v14 = vpop.f32.mrb[7].mxu0  ;;  %v310_v15 = vpop.f32.mrb[7].mxu1 }
 0x101   :  { %378 = vst [vmem:[%s622_s2 + $0x28] sm:$0xff] %v278_v14  ;;  %386 = vst [vmem:[%s622_s2 + $0x68] sm:$0xff] %v310_v15 }

// kernel: _lambda_.45
= control target key start
LH: loop header
LB: loop body
LE: loop exit
PB: predicated region body
PF: predicated region fallthrough
CT: control target
= control target key end

     0   :  { %s100_s0 = inlined_call_operand.vmem [shape: f32[32,128], index: 0, kind: input, shape index: {}]   ;;  %s101_s1 = inlined_call_operand.vmem [shape: f32[1,128], index: 1, kind: input, shape index: {}]   ;;  %s102_s2 = inlined_call_operand.vmem [shape: f32[1,128], index: 2, kind: input, shape index: {}]   ;;  %s103_s3 = inlined_call_operand.vmem [shape: f32[32,128], index: 3, kind: output, shape index: {}]  }
   0x1   :  { %v14_v0 = vld [vmem:[%s100_s0] sm:$0xff]  ;;  %v15_v4 = vld [vmem:[%s100_s0 + $0x8] sm:$0xff]  ;;  %v16_v5 = vld [vmem:[%s100_s0 + $0x10] sm:$0xff] }
   0x2   :  { %v48_v1 = vld [vmem:[%s101_s1] ss:$0 sm:$0xff]  ;;  %v17_v6 = vld [vmem:[%s100_s0 + $0x18] sm:$0xff] }
   0x3   :  { %v49_v2 = vld [vmem:[%s102_s2] ss:$0 sm:$0xff]  ;;  %v25_v3 = vmul.f32 %v48_v1, %v14_v0  ;;  %v26_v7 = vmul.f32 %v48_v1, %v15_v4  ;;  %v27_v8 = vmul.f32 %v48_v1, %v16_v5  ;;  %v28_v9 = vmul.f32 %v48_v1, %v17_v6 }
   0x5   :  { %v36_v10 = vadd.f32 %v49_v2, %v25_v3  ;;  %v37_v11 = vadd.f32 %v49_v2, %v26_v7  ;;  %v38_v12 = vadd.f32 %v49_v2, %v27_v8  ;;  %v39_v13 = vadd.f32 %v49_v2, %v28_v9 }
   0x7   :  { %40 = vst [vmem:[%s103_s3] sm:$0xff] %v36_v10  ;;  %41 = vst [vmem:[%s103_s3 + $0x8] sm:$0xff] %v37_v11 }
   0x8   :  { %42 = vst [vmem:[%s103_s3 + $0x10] sm:$0xff] %v38_v12  ;;  %43 = vst [vmem:[%s103_s3 + $0x18] sm:$0xff] %v39_v13 }

// kernel: _lambda_.43
= control target key start
LH: loop header
LB: loop body
LE: loop exit
PB: predicated region body
PF: predicated region fallthrough
CT: control target
= control target key end

     0   :  { %s428_s1 = inlined_call_operand.vmem [shape: bf16[256,128], index: 1, kind: input, shape index: {}]   ;;  %s429_s0 = inlined_call_operand.vmem [shape: bf16[32,256], index: 0, kind: input, shape index: {}]   ;;  %s430_s2 = inlined_call_operand.vmem [shape: f32[32,128], index: 2, kind: output, shape index: {}]  }
   0x1   :  { %v325_v0 = vld [vmem:[%s428_s1 + $0x40] sm:$0xff]   ;;  %v327_v2 = vld [vmem:[%s428_s1 + $0x48] sm:$0xff]   ;;  %v329_v4 = vld [vmem:[%s428_s1 + $0x50] sm:$0xff]  }
   0x2   :  { %v326_v1 = vld [vmem:[%s428_s1] sm:$0xff]   ;;  %281 = vmatprep.subr.bf16.mxu0 %v325_v0  ;;  %309 = vmatprep.subr.bf16.mxu1 %v325_v0  ;;  %v328_v3 = vld [vmem:[%s428_s1 + $0x8] sm:$0xff]   ;;  %v330_v5 = vld [vmem:[%s428_s1 + $0x10] sm:$0xff]  }
   0x3   :  { %282 = vmatpush3.bf16.msra.mxu0 %v326_v1  ;;  %317 = vmatpush3.bf16.msra.mxu1 %v326_v1  ;;  %v331_v6 = vld [vmem:[%s428_s1 + $0x58] sm:$0xff]   ;;  %v333_v8 = vld [vmem:[%s428_s1 + $0x60] sm:$0xff]   ;;  %v335_v10 = vld [vmem:[%s428_s1 + $0x68] sm:$0xff]  }
   0x4   :  { %283 = vmatprep.subr.bf16.mxu0 %v327_v2  ;;  %310 = vmatprep.subr.bf16.mxu1 %v327_v2  ;;  %v332_v7 = vld [vmem:[%s428_s1 + $0x18] sm:$0xff]   ;;  %v334_v9 = vld [vmem:[%s428_s1 + $0x20] sm:$0xff]   ;;  %v22_v12 = vld [vmem:[%s429_s0 + $0x8] sm:$0xff] }
   0x5   :  { %v21_v11 = vld [vmem:[%s429_s0] sm:$0xff]  ;;  %v23_v13 = vld [vmem:[%s429_s0 + $0x10] sm:$0xff]  ;;  %vm26_vm1 = vcmp.gt.bf16.partialorder %v22_v12, 0  ;;  %v30_v15 = vmul.bf16 1045249613, %v22_v12  ;;  %v24_v16 = vld [vmem:[%s429_s0 + $0x18] sm:$0xff] }
   0x6   :  { %vm25_vm0 = vcmp.gt.bf16.partialorder %v21_v11, 0  ;;  %v29_v14 = vmul.bf16 1045249613, %v21_v11  ;;  %vm27_vm2 = vcmp.gt.bf16.partialorder %v23_v13, 0  ;;  %v31_v17 = vmul.bf16 1045249613, %v23_v13 }
   0x7   :  { %284 = vmatpush3.bf16.msra.mxu0 %v328_v3  ;;  %318 = vmatpush3.bf16.msra.mxu1 %v328_v3  ;;  %v336_v18 = vld [vmem:[%s428_s1 + $0x28] sm:$0xff]   ;;  %v34_v20 = vsel %vm26_vm1, %v22_v12, %v30_v15  ;;  %vm28_vm3 = vcmp.gt.bf16.partialorder %v24_v16, 0  ;;  %v32_v21 = vmul.bf16 1045249613, %v24_v16  ;;  %v337_v22 = vld [vmem:[%s428_s1 + $0x70] sm:$0xff]   ;;  %v339_v28 = vld [vmem:[%s428_s1 + $0x78] sm:$0xff]  }
   0x8   :  { %285 = vmatprep.subr.bf16.mxu0 %v329_v4  ;;  %311 = vmatprep.subr.bf16.mxu1 %v329_v4  ;;  %v33_v19 = vsel %vm25_vm0, %v21_v11, %v29_v14  ;;  %v35_v24 = vsel %vm27_vm2, %v23_v13, %v31_v17  ;;  %v338_v27 = vld [vmem:[%s428_s1 + $0x30] sm:$0xff]   ;;  %v340_v29 = vld [vmem:[%s428_s1 + $0x38] sm:$0xff]  }
   0x9   :  { %v262_v23 = vcombine.high %v33_v19, %v34_v20  ;;  %v36_v25 = vsel %vm28_vm3, %v24_v16, %v32_v21  ;;  %v261_v30 = vcombine.low %v33_v19, %v34_v20 }
   0xa   :  { %v264_v26 = vcombine.high %v35_v24, %v36_v25  ;;  %v263_v31 = vcombine.low %v35_v24, %v36_v25 }
   0xb   :  { %286 = vmatpush3.bf16.msra.mxu0 %v330_v5  ;;  %319 = vmatpush3.bf16.msra.mxu1 %v330_v5 }
   0xc   :  { %287 = vmatprep.subr.bf16.mxu0 %v331_v6  ;;  %312 = vmatprep.subr.bf16.mxu1 %v331_v6 }
   0xd   :  { %221 = vmatprep.mubr.bf16.mxu0 %v262_v23  ;;  %229 = vmatprep.mubr.bf16.mxu1 %v264_v26 }
   0xf   :  { %288 = vmatpush3.bf16.msra.mxu0 %v332_v7  ;;  %320 = vmatpush3.bf16.msra.mxu1 %v332_v7 }
  0x10   :  { %289 = vmatprep.subr.bf16.mxu0 %v333_v8  ;;  %313 = vmatprep.subr.bf16.mxu1 %v333_v8 }
  0x13   :  { %290 = vmatpush3.bf16.msra.mxu0 %v334_v9  ;;  %321 = vmatpush3.bf16.msra.mxu1 %v334_v9 }
  0x14   :  { %291 = vmatprep.subr.bf16.mxu0 %v335_v10  ;;  %314 = vmatprep.subr.bf16.mxu1 %v335_v10 }
  0x17   :  { %292 = vmatpush3.bf16.msra.mxu0 %v336_v18  ;;  %322 = vmatpush3.bf16.msra.mxu1 %v336_v18 }
  0x18   :  { %293 = vmatprep.subr.bf16.mxu0 %v337_v22  ;;  %315 = vmatprep.subr.bf16.mxu1 %v337_v22 }
  0x1b   :  { %294 = vmatpush3.bf16.msra.mxu0 %v338_v27  ;;  %323 = vmatpush3.bf16.msra.mxu1 %v338_v27 }
  0x1c   :  { %295 = vmatprep.subr.bf16.mxu0 %v339_v28  ;;  %316 = vmatprep.subr.bf16.mxu1 %v339_v28 }
  0x1f   :  { %296 = vmatpush3.bf16.msra.mxu0 %v340_v29  ;;  %324 = vmatpush3.bf16.msra.mxu1 %v340_v29 }
  0x22   :  { %222 = vmatmul.mubr.bf16.vlgmr.msra.gmra.mrb[0].mxu0 %v261_v30  ;;  %230 = vmatmul.mubr.bf16.vlgmr.msra.gmra.mrb[0].mxu1 %v263_v31 }
  0xf5   :  { %v297_v32 = vpop.f32.mrb[0].mxu0  ;;  %v303_v33 = vpop.f32.mrb[0].mxu1 }
  0xf6   :  { %v298_v34 = vpop.f32.mrb[1].mxu0  ;;  %v304_v35 = vpop.f32.mrb[1].mxu1 }
  0xf7   :  { %v299_v36 = vadd.f32 %v298_v34, %v297_v32  ;;  %v305_v37 = vadd.f32 %v304_v35, %v303_v33  ;;  %v300_v38 = vpop.f32.mrb[2].mxu0  ;;  %v306_v39 = vpop.f32.mrb[2].mxu1 }
  0xf8   :  { %v301_v40 = vpop.f32.mrb[3].mxu0  ;;  %v307_v41 = vpop.f32.mrb[3].mxu1 }
  0xf9   :  { %253 = vst [vmem:[%s430_s2] sm:$0xff] %v299_v36  ;;  %255 = vst [vmem:[%s430_s2 + $0x10] sm:$0xff] %v305_v37  ;;  %v302_v42 = vadd.f32 %v301_v40, %v300_v38  ;;  %v308_v43 = vadd.f32 %v307_v41, %v306_v39 }
  0xfb   :  { %254 = vst [vmem:[%s430_s2 + $0x8] sm:$0xff] %v302_v42  ;;  %256 = vst [vmem:[%s430_s2 + $0x18] sm:$0xff] %v308_v43 }

// kernel: _lambda_.44
= control target key start
LH: loop header
LB: loop body
LE: loop exit
PB: predicated region body
PF: predicated region fallthrough
CT: control target
= control target key end

     0   :  { %v49_v0 = vmov 0.0   ;;  %vm40_vm0 = vcmask 1040384   ;;  %s81_s1 = inlined_call_operand.vmem [shape: f32[2,128], index: 1, kind: output, shape index: {}]   ;;  %s82_s0 = inlined_call_operand.vmem [shape: f32[32,128], index: 0, kind: input, shape index: {}]  }
   0x1   :  { %12 = vst [vmem:[%s81_s1] sm:$0x3] %v49_v0  ;;  %v13_v1 = vld [vmem:[%s82_s0] sm:$0xff]  ;;  %v14_v2 = vld [vmem:[%s82_s0 + $0x8] sm:$0xff]  ;;  %v15_v3 = vld [vmem:[%s82_s0 + $0x10] sm:$0xff] }
   0x2   :  { %v16_v4 = vld [vmem:[%s82_s0 + $0x18] sm:$0xff]  ;;  %v18_v5 = vadd.f32 %v14_v2, %v13_v1  ;;  %v27_v6 = vmul.f32 %v13_v1, %v13_v1  ;;  %v28_v7 = vmul.f32 %v14_v2, %v14_v2  ;;  %v29_v8 = vmul.f32 %v15_v3, %v15_v3 }
   0x3   :  { %v30_v10 = vmul.f32 %v16_v4, %v16_v4 }
   0x4   :  { %v19_v9 = vadd.f32 %v18_v5, %v15_v3  ;;  %v31_v11 = vadd.f32 %v28_v7, %v27_v6 }
   0x6   :  { %v20_v12 = vadd.f32 %v19_v9, %v16_v4  ;;  %v32_v13 = vadd.f32 %v31_v11, %v29_v8 }
   0x8   :  { %v21_v14 = vrot.slane %v20_v12, 4  ;;  %v33_v15 = vadd.f32 %v32_v13, %v30_v10  ;;  %v17_v26 = vld [vmem:[%s81_s1] sm:$0x3] }
   0xa   :  { %v22_v16 = vadd.f32 %v21_v14, %v20_v12  ;;  %v34_v17 = vrot.slane %v33_v15, 4 }
   0xc   :  { %v23_v18 = vrot.slane %v22_v16, 2  ;;  %v35_v19 = vadd.f32 %v34_v17, %v33_v15 }
   0xe   :  { %v24_v20 = vadd.f32 %v23_v18, %v22_v16  ;;  %v36_v21 = vrot.slane %v35_v19, 2 }
  0x10   :  { %v25_v22 = vrot.slane %v24_v20, 1  ;;  %v37_v23 = vadd.f32 %v36_v21, %v35_v19 }
  0x12   :  { %v26_v24 = vadd.f32 %v25_v22, %v24_v20  ;;  %v38_v25 = vrot.slane %v37_v23, 1 }
  0x14   :  { %v39_v27 = vadd.f32 %v38_v25, %v37_v23 }
  0x16   :  { %v41_v28 = vsel %vm40_vm0, %v26_v24, %v39_v27 }
  0x17   :  { %v42_v29 = vadd.f32 %v41_v28, %v17_v26 }
  0x19   :  { %43 = vst [vmem:[%s81_s1] sm:$0x3] %v42_v29 }

// kernel: _lambda_.48
= control target key start
LH: loop header
LB: loop body
LE: loop exit
PB: predicated region body
PF: predicated region fallthrough
CT: control target
= control target key end

     0   :  { %s70_s0 = inlined_call_operand.vmem [shape: f32[8,128], index: 0, kind: input, shape index: {}]   ;;  %s71_s1 = inlined_call_operand.vmem [shape: f32[1,128], index: 1, kind: input, shape index: {}]   ;;  %s72_s2 = inlined_call_operand.vmem [shape: f32[1,128], index: 2, kind: input, shape index: {}]   ;;  %s73_s3 = inlined_call_operand.vmem [shape: f32[8,128], index: 3, kind: output, shape index: {}]  }
   0x1   :  { %v14_v0 = vld [vmem:[%s70_s0] sm:$0xff] }
   0x2   :  { %v36_v1 = vld [vmem:[%s71_s1] ss:$0 sm:$0xff] }
   0x3   :  { %v37_v2 = vld [vmem:[%s72_s2] ss:$0 sm:$0xff]  ;;  %v22_v3 = vmul.f32 %v36_v1, %v14_v0 }
   0x5   :  { %v30_v4 = vadd.f32 %v37_v2, %v22_v3 }
   0x7   :  { %31 = vst [vmem:[%s73_s3] sm:$0xff] %v30_v4 }

// kernel: _lambda_.47
= control target key start
LH: loop header
LB: loop body
LE: loop exit
PB: predicated region body
PF: predicated region fallthrough
CT: control target
= control target key end

     0   :  { %v37_v0 = vmov 0.0   ;;  %vm28_vm0 = vcmask 1040384   ;;  %s60_s1 = inlined_call_operand.vmem [shape: f32[2,128], index: 1, kind: output, shape index: {}]   ;;  %s61_s0 = inlined_call_operand.vmem [shape: f32[8,128], index: 0, kind: input, shape index: {}]  }
   0x1   :  { %12 = vst [vmem:[%s60_s1] sm:$0x3] %v37_v0  ;;  %v13_v1 = vld [vmem:[%s61_s0] sm:$0xff] }
   0x2   :  { %v15_v2 = vrot.slane %v13_v1, 4  ;;  %v21_v3 = vmul.f32 %v13_v1, %v13_v1 }
   0x4   :  { %v16_v4 = vadd.f32 %v15_v2, %v13_v1  ;;  %v22_v5 = vrot.slane %v21_v3, 4 }
   0x6   :  { %v17_v6 = vrot.slane %v16_v4, 2  ;;  %v23_v7 = vadd.f32 %v22_v5, %v21_v3 }
   0x8   :  { %v18_v8 = vadd.f32 %v17_v6, %v16_v4  ;;  %v24_v9 = vrot.slane %v23_v7, 2  ;;  %v14_v14 = vld [vmem:[%s60_s1] sm:$0x3] }
   0xa   :  { %v19_v10 = vrot.slane %v18_v8, 1  ;;  %v25_v11 = vadd.f32 %v24_v9, %v23_v7 }
   0xc   :  { %v20_v12 = vadd.f32 %v19_v10, %v18_v8  ;;  %v26_v13 = vrot.slane %v25_v11, 1 }
   0xe   :  { %v27_v15 = vadd.f32 %v26_v13, %v25_v11 }
  0x10   :  { %v29_v16 = vsel %vm28_vm0, %v20_v12, %v27_v15 }
  0x11   :  { %v30_v17 = vadd.f32 %v29_v16, %v14_v14 }
  0x13   :  { %31 = vst [vmem:[%s60_s1] sm:$0x3] %v30_v17 }

// kernel: _lambda_.46
= control target key start
LH: loop header
LB: loop body
LE: loop exit
PB: predicated region body
PF: predicated region fallthrough
CT: control target
= control target key end

     0   :  { %s620_s1 = inlined_call_operand.vmem [shape: bf16[512,128], index: 1, kind: input, shape index: {}]   ;;  %s621_s0 = inlined_call_operand.vmem [shape: bf16[8,512], index: 0, kind: input, shape index: {}]   ;;  %s622_s2 = inlined_call_operand.vmem [shape: f32[8,128], index: 2, kind: output, shape index: {}]  }
   0x1   :  { %v468_v0 = vld [vmem:[%s620_s1 + $0x40] sm:$0xff]   ;;  %v472_v4 = vld [vmem:[%s620_s1 + $0x48] sm:$0xff]   ;;  %v476_v8 = vld [vmem:[%s620_s1 + $0x50] sm:$0xff]  }
   0x2   :  { %v469_v1 = vld [vmem:[%s620_s1 + $0xc0] sm:$0xff]   ;;  %424 = vmatprep.subr.bf16.mxu0 %v468_v0  ;;  %v473_v5 = vld [vmem:[%s620_s1 + $0xc8] sm:$0xff]   ;;  %v477_v9 = vld [vmem:[%s620_s1 + $0xd0] sm:$0xff]  }
   0x3   :  { %v470_v2 = vld [vmem:[%s620_s1] sm:$0xff]   ;;  %446 = vmatprep.subr.bf16.mxu1 %v469_v1  ;;  %v474_v6 = vld [vmem:[%s620_s1 + $0x8] sm:$0xff]   ;;  %v478_v10 = vld [vmem:[%s620_s1 + $0x10] sm:$0xff]  }
   0x4   :  { %v471_v3 = vld [vmem:[%s620_s1 + $0x80] sm:$0xff]   ;;  %425 = vmatpush3.bf16.msra.mxu0 %v470_v2  ;;  %v475_v7 = vld [vmem:[%s620_s1 + $0x88] sm:$0xff]   ;;  %v479_v11 = vld [vmem:[%s620_s1 + $0x90] sm:$0xff]  }
   0x5   :  { %447 = vmatpush3.bf16.msra.mxu1 %v471_v3  ;;  %426 = vmatprep.subr.bf16.mxu0 %v472_v4  ;;  %v480_v12 = vld [vmem:[%s620_s1 + $0x58] sm:$0xff]   ;;  %v484_v16 = vld [vmem:[%s620_s1 + $0x60] sm:$0xff]   ;;  %v488_v20 = vld [vmem:[%s620_s1 + $0x68] sm:$0xff]  }
   0x6   :  { %448 = vmatprep.subr.bf16.mxu1 %v473_v5  ;;  %v481_v13 = vld [vmem:[%s620_s1 + $0xd8] sm:$0xff]   ;;  %v485_v17 = vld [vmem:[%s620_s1 + $0xe0] sm:$0xff]   ;;  %v489_v21 = vld [vmem:[%s620_s1 + $0xe8] sm:$0xff]  }
   0x7   :  { %v482_v14 = vld [vmem:[%s620_s1 + $0x18] sm:$0xff]   ;;  %v486_v18 = vld [vmem:[%s620_s1 + $0x20] sm:$0xff]   ;;  %v490_v22 = vld [vmem:[%s620_s1 + $0x28] sm:$0xff]  }
   0x8   :  { %427 = vmatpush3.bf16.msra.mxu0 %v474_v6  ;;  %v483_v15 = vld [vmem:[%s620_s1 + $0x98] sm:$0xff]   ;;  %v487_v19 = vld [vmem:[%s620_s1 + $0xa0] sm:$0xff]   ;;  %v491_v23 = vld [vmem:[%s620_s1 + $0xa8] sm:$0xff]  }
   0x9   :  { %449 = vmatpush3.bf16.msra.mxu1 %v475_v7  ;;  %428 = vmatprep.subr.bf16.mxu0 %v476_v8  ;;  %v492_v24 = vld [vmem:[%s620_s1 + $0x70] sm:$0xff]   ;;  %v496_v28 = vld [vmem:[%s620_s1 + $0x78] sm:$0xff]   ;;  %v18_v32 = vld [vmem:[%s621_s0] sm:$0xff] }
   0xa   :  { %450 = vmatprep.subr.bf16.mxu1 %v477_v9  ;;  %v493_v25 = vld [vmem:[%s620_s1 + $0xf0] sm:$0xff]   ;;  %v497_v29 = vld [vmem:[%s620_s1 + $0xf8] sm:$0xff]   ;;  %v19_v33 = vld [vmem:[%s621_s0 + $0x8] sm:$0xff]  ;;  %vm20_vm0 = vcmp.gt.bf16.partialorder %v18_v32, 0  ;;  %v22_v34 = vmul.bf16 1045249613, %v18_v32 }
   0xb   :  { %v494_v26 = vld [vmem:[%s620_s1 + $0x30] sm:$0xff]   ;;  %v498_v30 = vld [vmem:[%s620_s1 + $0x38] sm:$0xff]   ;;  %vm21_vm1 = vcmp.gt.bf16.partialorder %v19_v33, 0  ;;  %v23_v35 = vmul.bf16 1045249613, %v19_v33 }
   0xc   :  { %429 = vmatpush3.bf16.msra.mxu0 %v478_v10  ;;  %v495_v27 = vld [vmem:[%s620_s1 + $0xb0] sm:$0xff]   ;;  %v499_v31 = vld [vmem:[%s620_s1 + $0xb8] sm:$0xff]   ;;  %v24_v36 = vsel %vm20_vm0, %v18_v32, %v22_v34 }
   0xd   :  { %451 = vmatpush3.bf16.msra.mxu1 %v479_v11  ;;  %430 = vmatprep.subr.bf16.mxu0 %v480_v12  ;;  %v25_v37 = vsel %vm21_vm1, %v19_v33, %v23_v35  ;;  %v388_v38 = vcombine.low %v24_v36, %v24_v36  ;;  %v389_v39 = vcombine.high %v24_v36, %v24_v36 }
   0xe   :  { %452 = vmatprep.subr.bf16.mxu1 %v481_v13  ;;  %v390_v40 = vcombine.low %v25_v37, %v25_v37  ;;  %v391_v41 = vcombine.high %v25_v37, %v25_v37 }
   0xf   :  { %329 = vmatprep.mubr.bf16.mxu0 %v389_v39 }
  0x10   :  { %431 = vmatpush3.bf16.msra.mxu0 %v482_v14  ;;  %369 = vmatprep.mubr.bf16.mxu1 %v391_v41 }
  0x11   :  { %453 = vmatpush3.bf16.msra.mxu1 %v483_v15  ;;  %432 = vmatprep.subr.bf16.mxu0 %v484_v16 }
  0x12   :  { %454 = vmatprep.subr.bf16.mxu1 %v485_v17 }
  0x14   :  { %433 = vmatpush3.bf16.msra.mxu0 %v486_v18 }
  0x15   :  { %455 = vmatpush3.bf16.msra.mxu1 %v487_v19  ;;  %434 = vmatprep.subr.bf16.mxu0 %v488_v20 }
  0x16   :  { %456 = vmatprep.subr.bf16.mxu1 %v489_v21 }
  0x18   :  { %435 = vmatpush3.bf16.msra.mxu0 %v490_v22 }
  0x19   :  { %457 = vmatpush3.bf16.msra.mxu1 %v491_v23  ;;  %436 = vmatprep.subr.bf16.mxu0 %v492_v24 }
  0x1a   :  { %458 = vmatprep.subr.bf16.mxu1 %v493_v25 }
  0x1c   :  { %437 = vmatpush3.bf16.msra.mxu0 %v494_v26 }
  0x1d   :  { %459 = vmatpush3.bf16.msra.mxu1 %v495_v27  ;;  %438 = vmatprep.subr.bf16.mxu0 %v496_v28 }
  0x1e   :  { %460 = vmatprep.subr.bf16.mxu1 %v497_v29 }
  0x20   :  { %439 = vmatpush3.bf16.msra.mxu0 %v498_v30 }
  0x21   :  { %461 = vmatpush3.bf16.msra.mxu1 %v499_v31 }
  0x23   :  { %330 = vmatmul.mubr.bf16.vlgmr.msra.gmra.mrb[0].mxu0 %v388_v38 }
  0x24   :  { %370 = vmatmul.mubr.bf16.vlgmr.msra.gmra.mrb[0].mxu1 %v390_v40 }
  0xf6   :  { %v440_v42 = vpop.f32.mrb[0].mxu0 }
  0xf7   :  { %v462_v43 = vpop.f32.mrb[0].mxu1  ;;  %v441_v44 = vpop.f32.mrb[1].mxu0 }
  0xf8   :  { %v463_v45 = vpop.f32.mrb[1].mxu1  ;;  %v442_v46 = vadd.f32 %v441_v44, %v440_v42  ;;  %v443_v48 = vpop.f32.mrb[2].mxu0 }
  0xf9   :  { %v464_v47 = vadd.f32 %v463_v45, %v462_v43  ;;  %v465_v49 = vpop.f32.mrb[2].mxu1  ;;  %v444_v50 = vpop.f32.mrb[3].mxu0 }
  0xfa   :  { %v466_v51 = vpop.f32.mrb[3].mxu1 }
  0xfb   :  { %v372_v52 = vadd.f32 %v464_v47, %v442_v46 }
  0xfd   :  { %383 = vst [vmem:[%s622_s2] sm:$0xff] %v372_v52 }

// kernel: _lambda_.49
= control target key start
LH: loop header
LB: loop body
LE: loop exit
PB: predicated region body
PF: predicated region fallthrough
CT: control target
= control target key end

     0   :  { %s875_s9 = smov 0   ;;  %s877_s10 = smov 0   ;;  %s955_s0 = inlined_call_operand.vmem [shape: bf16[8,1024], index: 0, kind: input, shape index: {}]   ;;  %s956_s1 = inlined_call_operand.vmem [shape: bf16[1024,128], index: 1, kind: input, shape index: {}]   ;;  %s957_s2 = inlined_call_operand.vmem [shape: f32[8,128], index: 2, kind: output, shape index: {}]  }
   0x1   :  { %s879_s11 = smov 0  }
   0x2 LB: > { %s24_s12 = sadd.s32 1, %s853_s10  ;;  %p688_p0 = scmp.ge.s32.totalorder %s857_s11, 1  ;;  %s857_s11 = sphi %s879_s11, %s12_s11   ;;  %s853_s10 = sphi %s877_s10, %s959_s10   ;;  %s849_s9 = sphi %s875_s9, %s958_s9  }
   0x3   : > { %p25_p1 = scmp.ge.s32.totalorder %s24_s12, 2  ;;  %p156_p2 = scmp.lt.s32.totalorder %s857_s11, 3 }
   0x5   : > { %s961_s12 = smov (%p25_p1, %s24_s12), 0  ;;  %p157_p3 = pnand %p688_p0, %p156_p2 }
   0x6   : > { %s689_s13 = sshll.u32 (!%p157_p3), %s849_s9, 2  ;;  %s691_s14 = sshll.u32 (!%p157_p3), %s849_s9, 6 }
   0x7   : > { %160 = sbr.rel (%p157_p3) target bundleno = 287 (0x11f), region = 28  ;;  %p195_p4 = scmp.lt.s32.totalorder (!%p157_p3), %s689_s13, 7 }
   0x8   : > { %p203_p5 = scmp.lt.s32.totalorder (!%p157_p3), %s691_s14, 127  ;;  %p693_p6 = scmp.ne.s32.totalorder (!%p157_p3), %s849_s9, 0 }
   0xe   : > { %s963_s13 = smov (!%p195_p4, %s689_s13), 7  ;;  %s965_s14 = smov (!%p203_p5, %s691_s14), 127 }
   0xf   : > { %s690_s15 = sshll.u32 %s963_s13, 2  ;;  %s692_s19 = sshll.u32 %s965_s14, 2  ;;  %v859_v0 = vmov (!%p693_p6), 0.0  }
  0x10   : > { %s900_s18 = scalar_lea.vmem %s955_s0, %s690_s15  ;;  %s905_s22 = scalar_lea.vmem %s956_s1, %s692_s19  ;;  %224 = vst [vmem:[#allocation2] sm:$0xff] (!%p693_p6), %v859_v0 }
  0x11   : > { %223 = sbr.rel (%p693_p6) target bundleno = 24 (0x18), region = 32 }
  0x18 PF: > { %v803_v1 = vld [vmem:[%s905_s22 + $0x40] sm:$0xff]   ;;  %v807_v5 = vld [vmem:[%s905_s22 + $0x48] sm:$0xff]   ;;  %v811_v9 = vld [vmem:[%s905_s22 + $0x50] sm:$0xff]   ;;  %p730_p7 = scmp.ne.s32.totalorder %s849_s9, 1 }
  0x19   : > { %v804_v2 = vld [vmem:[%s905_s22 + $0xc0] sm:$0xff]   ;;  %734 = vmatprep.subr.bf16.mxu0 %v803_v1  ;;  %v808_v6 = vld [vmem:[%s905_s22 + $0xc8] sm:$0xff]   ;;  %v812_v10 = vld [vmem:[%s905_s22 + $0xd0] sm:$0xff]  }
  0x1a   : > { %v805_v3 = vld [vmem:[%s905_s22] sm:$0xff]   ;;  %756 = vmatprep.subr.bf16.mxu1 %v804_v2  ;;  %v809_v7 = vld [vmem:[%s905_s22 + $0x8] sm:$0xff]   ;;  %v813_v11 = vld [vmem:[%s905_s22 + $0x10] sm:$0xff]  }
  0x1b   : > { %v806_v4 = vld [vmem:[%s905_s22 + $0x80] sm:$0xff]   ;;  %735 = vmatpush3.bf16.msra.mxu0 %v805_v3  ;;  %v810_v8 = vld [vmem:[%s905_s22 + $0x88] sm:$0xff]   ;;  %v814_v12 = vld [vmem:[%s905_s22 + $0x90] sm:$0xff]  }
  0x1c   : > { %757 = vmatpush3.bf16.msra.mxu1 %v806_v4  ;;  %736 = vmatprep.subr.bf16.mxu0 %v807_v5  ;;  %v815_v13 = vld [vmem:[%s905_s22 + $0x58] sm:$0xff]   ;;  %v819_v17 = vld [vmem:[%s905_s22 + $0x60] sm:$0xff]   ;;  %v823_v21 = vld [vmem:[%s905_s22 + $0x68] sm:$0xff]  }
  0x1d   : > { %758 = vmatprep.subr.bf16.mxu1 %v808_v6  ;;  %v816_v14 = vld [vmem:[%s905_s22 + $0xd8] sm:$0xff]   ;;  %v820_v18 = vld [vmem:[%s905_s22 + $0xe0] sm:$0xff]   ;;  %v824_v22 = vld [vmem:[%s905_s22 + $0xe8] sm:$0xff]  }
  0x1e   : > { %v817_v15 = vld [vmem:[%s905_s22 + $0x18] sm:$0xff]   ;;  %v821_v19 = vld [vmem:[%s905_s22 + $0x20] sm:$0xff]   ;;  %v825_v23 = vld [vmem:[%s905_s22 + $0x28] sm:$0xff]  }
  0x1f   : > { %737 = vmatpush3.bf16.msra.mxu0 %v809_v7  ;;  %v818_v16 = vld [vmem:[%s905_s22 + $0x98] sm:$0xff]   ;;  %v822_v20 = vld [vmem:[%s905_s22 + $0xa0] sm:$0xff]   ;;  %v826_v24 = vld [vmem:[%s905_s22 + $0xa8] sm:$0xff]  }
  0x20   : > { %759 = vmatpush3.bf16.msra.mxu1 %v810_v8  ;;  %738 = vmatprep.subr.bf16.mxu0 %v811_v9  ;;  %v827_v25 = vld [vmem:[%s905_s22 + $0x70] sm:$0xff]   ;;  %v831_v29 = vld [vmem:[%s905_s22 + $0x78] sm:$0xff]   ;;  %v225_v33 = vld [vmem:[%s900_s18] sm:$0xff] }
  0x21   : > { %760 = vmatprep.subr.bf16.mxu1 %v812_v10  ;;  %v828_v26 = vld [vmem:[%s905_s22 + $0xf0] sm:$0xff]   ;;  %v832_v30 = vld [vmem:[%s905_s22 + $0xf8] sm:$0xff]   ;;  %v226_v34 = vld [vmem:[%s900_s18 + $0x8] sm:$0xff]  ;;  %vm227_vm0 = vcmp.gt.bf16.partialorder %v225_v33, 0  ;;  %v229_v35 = vmul.bf16 1045249613, %v225_v33 }
  0x22   : > { %v829_v27 = vld [vmem:[%s905_s22 + $0x30] sm:$0xff]   ;;  %v833_v31 = vld [vmem:[%s905_s22 + $0x38] sm:$0xff]   ;;  %vm228_vm1 = vcmp.gt.bf16.partialorder %v226_v34, 0  ;;  %v230_v36 = vmul.bf16 1045249613, %v226_v34  ;;  %v233_v51 = vld [vmem:[#allocation2] sm:$0xff] }
  0x23   : > { %739 = vmatpush3.bf16.msra.mxu0 %v813_v11  ;;  %v830_v28 = vld [vmem:[%s905_s22 + $0xb0] sm:$0xff]   ;;  %v834_v32 = vld [vmem:[%s905_s22 + $0xb8] sm:$0xff]   ;;  %v231_v37 = vsel %vm227_vm0, %v225_v33, %v229_v35 }
  0x24   : > { %761 = vmatpush3.bf16.msra.mxu1 %v814_v12  ;;  %740 = vmatprep.subr.bf16.mxu0 %v815_v13  ;;  %v232_v38 = vsel %vm228_vm1, %v226_v34, %v230_v36  ;;  %v694_v39 = vcombine.low %v231_v37, %v231_v37  ;;  %v695_v40 = vcombine.high %v231_v37, %v231_v37 }
  0x25   : > { %762 = vmatprep.subr.bf16.mxu1 %v816_v14  ;;  %v696_v41 = vcombine.low %v232_v38, %v232_v38  ;;  %v697_v42 = vcombine.high %v232_v38, %v232_v38 }
  0x26   : > { %536 = vmatprep.mubr.bf16.mxu0 %v695_v40 }
  0x27   : > { %741 = vmatpush3.bf16.msra.mxu0 %v817_v15  ;;  %576 = vmatprep.mubr.bf16.mxu1 %v697_v42 }
  0x28   : > { %763 = vmatpush3.bf16.msra.mxu1 %v818_v16  ;;  %742 = vmatprep.subr.bf16.mxu0 %v819_v17 }
  0x29   : > { %764 = vmatprep.subr.bf16.mxu1 %v820_v18 }
  0x2b   : > { %743 = vmatpush3.bf16.msra.mxu0 %v821_v19 }
  0x2c   : > { %765 = vmatpush3.bf16.msra.mxu1 %v822_v20  ;;  %744 = vmatprep.subr.bf16.mxu0 %v823_v21 }
  0x2d   : > { %766 = vmatprep.subr.bf16.mxu1 %v824_v22 }
  0x2f   : > { %745 = vmatpush3.bf16.msra.mxu0 %v825_v23 }
  0x30   : > { %767 = vmatpush3.bf16.msra.mxu1 %v826_v24  ;;  %746 = vmatprep.subr.bf16.mxu0 %v827_v25 }
  0x31   : > { %768 = vmatprep.subr.bf16.mxu1 %v828_v26 }
  0x33   : > { %747 = vmatpush3.bf16.msra.mxu0 %v829_v27 }
  0x34   : > { %769 = vmatpush3.bf16.msra.mxu1 %v830_v28  ;;  %748 = vmatprep.subr.bf16.mxu0 %v831_v29 }
  0x35   : > { %770 = vmatprep.subr.bf16.mxu1 %v832_v30 }
  0x37   : > { %749 = vmatpush3.bf16.msra.mxu0 %v833_v31 }
  0x38   : > { %771 = vmatpush3.bf16.msra.mxu1 %v834_v32 }
  0x3a   : > { %537 = vmatmul.mubr.bf16.vlgmr.msra.gmra.mrb[0].mxu0 %v694_v39 }
  0x3b   : > { %577 = vmatmul.mubr.bf16.vlgmr.msra.gmra.mrb[0].mxu1 %v696_v41 }
 0x10d   : > { %v750_v43 = vpop.f32.mrb[0].mxu0 }
 0x10e   : > { %v772_v44 = vpop.f32.mrb[0].mxu1  ;;  %v751_v45 = vpop.f32.mrb[1].mxu0 }
 0x10f   : > { %v773_v46 = vpop.f32.mrb[1].mxu1  ;;  %v752_v47 = vadd.f32 %v751_v45, %v750_v43  ;;  %v753_v49 = vpop.f32.mrb[2].mxu0 }
 0x110   : > { %v774_v48 = vadd.f32 %v773_v46, %v772_v44  ;;  %v775_v50 = vpop.f32.mrb[2].mxu1  ;;  %v754_v52 = vpop.f32.mrb[3].mxu0  ;;  %589 = sbr.rel (%p730_p7) target bundleno = 287 (0x11f), region = 36 }
 0x111   : > { %v776_v53 = vpop.f32.mrb[3].mxu1 }
 0x112   : > { %v579_v54 = vadd.f32 %v774_v48, %v752_v47 }
 0x114   : > { %v584_v55 = vadd.f32 %v579_v54, %v233_v51 }
 0x116   : > { %585 = vst [vmem:[#allocation2] sm:$0xff] %v584_v55 }
 0x11d   : > { %v590_v56 = vld [vmem:[#allocation2] sm:$0xff] }
 0x11e   : > { %591 = vst [vmem:[%s957_s2] sm:$0xff] %v590_v56 }
 0x11f PF: > { %s12_s11 = sadd.s32 1, %s857_s11   ;;  %s958_s9 = smov %s853_s10 }
 0x120   : > { %p9_p8 = scmp.ge.s32.totalorder %s12_s11, 4   ;;  %s959_s10 = smov %s961_s12 }
 0x122   :  { %11 = sbr.rel (!%p9_p8) target bundleno = 2 (0x2), region = 69 }

// kernel: _lambda_.50
= control target key start
LH: loop header
LB: loop body
LE: loop exit
PB: predicated region body
PF: predicated region fallthrough
CT: control target
= control target key end

     0   :  { %v263_v12 = vmov 0   ;;  %s333_s1 = inlined_call_operand.vmem [shape: bf16[256,128], index: 1, kind: input, shape index: {}]   ;;  %s334_s0 = inlined_call_operand.vmem [shape: bf16[8,256], index: 0, kind: input, shape index: {}]   ;;  %s335_s2 = inlined_call_operand.vmem [shape: f32[8,128], index: 2, kind: output, shape index: {}]  }
   0x1   :  { %v247_v0 = vld [vmem:[%s333_s1 + $0x40] sm:$0xff]   ;;  %v249_v2 = vld [vmem:[%s333_s1 + $0x48] sm:$0xff]   ;;  %v251_v4 = vld [vmem:[%s333_s1 + $0x50] sm:$0xff]  }
   0x2   :  { %v248_v1 = vld [vmem:[%s333_s1] sm:$0xff]   ;;  %224 = vmatprep.subr.bf16.mxu0 %v247_v0  ;;  %v250_v3 = vld [vmem:[%s333_s1 + $0x8] sm:$0xff]   ;;  %v252_v5 = vld [vmem:[%s333_s1 + $0x10] sm:$0xff]  }
   0x3   :  { %225 = vmatpush3.bf16.msra.mxu0 %v248_v1  ;;  %v253_v6 = vld [vmem:[%s333_s1 + $0x58] sm:$0xff]   ;;  %v255_v8 = vld [vmem:[%s333_s1 + $0x60] sm:$0xff]   ;;  %v257_v10 = vld [vmem:[%s333_s1 + $0x68] sm:$0xff]  }
   0x4   :  { %226 = vmatprep.subr.bf16.mxu0 %v249_v2  ;;  %v254_v7 = vld [vmem:[%s333_s1 + $0x18] sm:$0xff]   ;;  %v256_v9 = vld [vmem:[%s333_s1 + $0x20] sm:$0xff]   ;;  %v258_v14 = vld [vmem:[%s333_s1 + $0x28] sm:$0xff]  }
   0x5   :  { %v17_v11 = vld [vmem:[%s334_s0] sm:$0xff]  ;;  %v259_v16 = vld [vmem:[%s333_s1 + $0x70] sm:$0xff]   ;;  %v261_v18 = vld [vmem:[%s333_s1 + $0x78] sm:$0xff]  }
   0x6   :  { %v18_v13 = vmax.bf16 %v263_v12, %v17_v11  ;;  %v260_v17 = vld [vmem:[%s333_s1 + $0x30] sm:$0xff]   ;;  %v262_v19 = vld [vmem:[%s333_s1 + $0x38] sm:$0xff]  }
   0x7   :  { %227 = vmatpush3.bf16.msra.mxu0 %v250_v3 }
   0x8   :  { %228 = vmatprep.subr.bf16.mxu0 %v251_v4  ;;  %v207_v15 = vcombine.high %v18_v13, %v18_v13  ;;  %v206_v20 = vcombine.low %v18_v13, %v18_v13 }
   0xa   :  { %187 = vmatprep.mubr.bf16.mxu0 %v207_v15 }
   0xb   :  { %229 = vmatpush3.bf16.msra.mxu0 %v252_v5 }
   0xc   :  { %230 = vmatprep.subr.bf16.mxu0 %v253_v6 }
   0xf   :  { %231 = vmatpush3.bf16.msra.mxu0 %v254_v7 }
  0x10   :  { %232 = vmatprep.subr.bf16.mxu0 %v255_v8 }
  0x13   :  { %233 = vmatpush3.bf16.msra.mxu0 %v256_v9 }
  0x14   :  { %234 = vmatprep.subr.bf16.mxu0 %v257_v10 }
  0x17   :  { %235 = vmatpush3.bf16.msra.mxu0 %v258_v14 }
  0x18   :  { %236 = vmatprep.subr.bf16.mxu0 %v259_v16 }
  0x1b   :  { %237 = vmatpush3.bf16.msra.mxu0 %v260_v17 }
  0x1c   :  { %238 = vmatprep.subr.bf16.mxu0 %v261_v18 }
  0x1f   :  { %239 = vmatpush3.bf16.msra.mxu0 %v262_v19 }
  0x22   :  { %188 = vmatmul.mubr.bf16.vlgmr.msra.gmra.mrb[0].mxu0 %v206_v20 }
  0xf5   :  { %v240_v21 = vpop.f32.mrb[0].mxu0 }
  0xf6   :  { %v241_v22 = vpop.f32.mrb[1].mxu0 }
  0xf7   :  { %v242_v23 = vadd.f32 %v241_v22, %v240_v21  ;;  %v243_v24 = vpop.f32.mrb[2].mxu0 }
  0xf8   :  { %v244_v25 = vpop.f32.mrb[3].mxu0 }
  0xf9   :  { %201 = vst [vmem:[%s335_s2] sm:$0xff] %v242_v23 }

// kernel: _lambda_.56
= control target key start
LH: loop header
LB: loop body
LE: loop exit
PB: predicated region body
PF: predicated region fallthrough
CT: control target
= control target key end

     0   :  { %v496_v34 = vmov 0   ;;  %s617_s1 = inlined_call_operand.vmem [shape: bf16[512,128], index: 1, kind: input, shape index: {}]   ;;  %s618_s0 = inlined_call_operand.vmem [shape: bf16[8,512], index: 0, kind: input, shape index: {}]   ;;  %s619_s2 = inlined_call_operand.vmem [shape: f32[8,128], index: 2, kind: output, shape index: {}]  }
   0x1   :  { %v464_v0 = vld [vmem:[%s617_s1 + $0x40] sm:$0xff]   ;;  %v468_v4 = vld [vmem:[%s617_s1 + $0x48] sm:$0xff]   ;;  %v472_v8 = vld [vmem:[%s617_s1 + $0x50] sm:$0xff]  }
   0x2   :  { %v465_v1 = vld [vmem:[%s617_s1 + $0xc0] sm:$0xff]   ;;  %419 = vmatprep.subr.bf16.mxu0 %v464_v0  ;;  %v469_v5 = vld [vmem:[%s617_s1 + $0xc8] sm:$0xff]   ;;  %v473_v9 = vld [vmem:[%s617_s1 + $0xd0] sm:$0xff]  }
   0x3   :  { %v466_v2 = vld [vmem:[%s617_s1] sm:$0xff]   ;;  %441 = vmatprep.subr.bf16.mxu1 %v465_v1  ;;  %v470_v6 = vld [vmem:[%s617_s1 + $0x8] sm:$0xff]   ;;  %v474_v10 = vld [vmem:[%s617_s1 + $0x10] sm:$0xff]  }
   0x4   :  { %v467_v3 = vld [vmem:[%s617_s1 + $0x80] sm:$0xff]   ;;  %420 = vmatpush3.bf16.msra.mxu0 %v466_v2  ;;  %v471_v7 = vld [vmem:[%s617_s1 + $0x88] sm:$0xff]   ;;  %v475_v11 = vld [vmem:[%s617_s1 + $0x90] sm:$0xff]  }
   0x5   :  { %442 = vmatpush3.bf16.msra.mxu1 %v467_v3  ;;  %421 = vmatprep.subr.bf16.mxu0 %v468_v4  ;;  %v476_v12 = vld [vmem:[%s617_s1 + $0x58] sm:$0xff]   ;;  %v480_v16 = vld [vmem:[%s617_s1 + $0x60] sm:$0xff]   ;;  %v484_v20 = vld [vmem:[%s617_s1 + $0x68] sm:$0xff]  }
   0x6   :  { %443 = vmatprep.subr.bf16.mxu1 %v469_v5  ;;  %v477_v13 = vld [vmem:[%s617_s1 + $0xd8] sm:$0xff]   ;;  %v481_v17 = vld [vmem:[%s617_s1 + $0xe0] sm:$0xff]   ;;  %v485_v21 = vld [vmem:[%s617_s1 + $0xe8] sm:$0xff]  }
   0x7   :  { %v478_v14 = vld [vmem:[%s617_s1 + $0x18] sm:$0xff]   ;;  %v482_v18 = vld [vmem:[%s617_s1 + $0x20] sm:$0xff]   ;;  %v486_v22 = vld [vmem:[%s617_s1 + $0x28] sm:$0xff]  }
   0x8   :  { %422 = vmatpush3.bf16.msra.mxu0 %v470_v6  ;;  %v479_v15 = vld [vmem:[%s617_s1 + $0x98] sm:$0xff]   ;;  %v483_v19 = vld [vmem:[%s617_s1 + $0xa0] sm:$0xff]   ;;  %v487_v23 = vld [vmem:[%s617_s1 + $0xa8] sm:$0xff]  }
   0x9   :  { %444 = vmatpush3.bf16.msra.mxu1 %v471_v7  ;;  %423 = vmatprep.subr.bf16.mxu0 %v472_v8  ;;  %v488_v24 = vld [vmem:[%s617_s1 + $0x70] sm:$0xff]   ;;  %v492_v28 = vld [vmem:[%s617_s1 + $0x78] sm:$0xff]   ;;  %v17_v32 = vld [vmem:[%s618_s0] sm:$0xff] }
   0xa   :  { %445 = vmatprep.subr.bf16.mxu1 %v473_v9  ;;  %v489_v25 = vld [vmem:[%s617_s1 + $0xf0] sm:$0xff]   ;;  %v493_v29 = vld [vmem:[%s617_s1 + $0xf8] sm:$0xff]   ;;  %v18_v33 = vld [vmem:[%s618_s0 + $0x8] sm:$0xff]  ;;  %v19_v35 = vmax.bf16 %v496_v34, %v17_v32 }
   0xb   :  { %v490_v26 = vld [vmem:[%s617_s1 + $0x30] sm:$0xff]   ;;  %v494_v30 = vld [vmem:[%s617_s1 + $0x38] sm:$0xff]   ;;  %v20_v36 = vmax.bf16 %v496_v34, %v18_v33 }
   0xc   :  { %424 = vmatpush3.bf16.msra.mxu0 %v474_v10  ;;  %v491_v27 = vld [vmem:[%s617_s1 + $0xb0] sm:$0xff]   ;;  %v495_v31 = vld [vmem:[%s617_s1 + $0xb8] sm:$0xff]   ;;  %v384_v37 = vcombine.high %v19_v35, %v19_v35  ;;  %v383_v39 = vcombine.low %v19_v35, %v19_v35 }
   0xd   :  { %446 = vmatpush3.bf16.msra.mxu1 %v475_v11  ;;  %425 = vmatprep.subr.bf16.mxu0 %v476_v12  ;;  %v386_v38 = vcombine.high %v20_v36, %v20_v36  ;;  %v385_v40 = vcombine.low %v20_v36, %v20_v36 }
   0xe   :  { %447 = vmatprep.subr.bf16.mxu1 %v477_v13  ;;  %324 = vmatprep.mubr.bf16.mxu0 %v384_v37 }
   0xf   :  { %364 = vmatprep.mubr.bf16.mxu1 %v386_v38 }
  0x10   :  { %426 = vmatpush3.bf16.msra.mxu0 %v478_v14 }
  0x11   :  { %448 = vmatpush3.bf16.msra.mxu1 %v479_v15  ;;  %427 = vmatprep.subr.bf16.mxu0 %v480_v16 }
  0x12   :  { %449 = vmatprep.subr.bf16.mxu1 %v481_v17 }
  0x14   :  { %428 = vmatpush3.bf16.msra.mxu0 %v482_v18 }
  0x15   :  { %450 = vmatpush3.bf16.msra.mxu1 %v483_v19  ;;  %429 = vmatprep.subr.bf16.mxu0 %v484_v20 }
  0x16   :  { %451 = vmatprep.subr.bf16.mxu1 %v485_v21 }
  0x18   :  { %430 = vmatpush3.bf16.msra.mxu0 %v486_v22 }
  0x19   :  { %452 = vmatpush3.bf16.msra.mxu1 %v487_v23  ;;  %431 = vmatprep.subr.bf16.mxu0 %v488_v24 }
  0x1a   :  { %453 = vmatprep.subr.bf16.mxu1 %v489_v25 }
  0x1c   :  { %432 = vmatpush3.bf16.msra.mxu0 %v490_v26 }
  0x1d   :  { %454 = vmatpush3.bf16.msra.mxu1 %v491_v27  ;;  %433 = vmatprep.subr.bf16.mxu0 %v492_v28 }
  0x1e   :  { %455 = vmatprep.subr.bf16.mxu1 %v493_v29 }
  0x20   :  { %434 = vmatpush3.bf16.msra.mxu0 %v494_v30 }
  0x21   :  { %456 = vmatpush3.bf16.msra.mxu1 %v495_v31 }
  0x23   :  { %325 = vmatmul.mubr.bf16.vlgmr.msra.gmra.mrb[0].mxu0 %v383_v39 }
  0x24   :  { %365 = vmatmul.mubr.bf16.vlgmr.msra.gmra.mrb[0].mxu1 %v385_v40 }
  0xf6   :  { %v435_v41 = vpop.f32.mrb[0].mxu0 }
  0xf7   :  { %v457_v42 = vpop.f32.mrb[0].mxu1  ;;  %v436_v43 = vpop.f32.mrb[1].mxu0 }
  0xf8   :  { %v458_v44 = vpop.f32.mrb[1].mxu1  ;;  %v437_v45 = vadd.f32 %v436_v43, %v435_v41  ;;  %v438_v47 = vpop.f32.mrb[2].mxu0 }
  0xf9   :  { %v459_v46 = vadd.f32 %v458_v44, %v457_v42  ;;  %v460_v48 = vpop.f32.mrb[2].mxu1  ;;  %v439_v49 = vpop.f32.mrb[3].mxu0 }
  0xfa   :  { %v461_v50 = vpop.f32.mrb[3].mxu1 }
  0xfb   :  { %v367_v51 = vadd.f32 %v459_v46, %v437_v45 }
  0xfd   :  { %378 = vst [vmem:[%s619_s2] sm:$0xff] %v367_v51 }

// kernel: _lambda_.62
= control target key start
LH: loop header
LB: loop body
LE: loop exit
PB: predicated region body
PF: predicated region fallthrough
CT: control target
= control target key end

     0   :  { %v333_v14 = vmov 0   ;;  %s421_s1 = inlined_call_operand.vmem [shape: bf16[256,128], index: 1, kind: input, shape index: {}]   ;;  %s422_s0 = inlined_call_operand.vmem [shape: bf16[32,256], index: 0, kind: input, shape index: {}]   ;;  %s423_s2 = inlined_call_operand.vmem [shape: f32[32,128], index: 2, kind: output, shape index: {}]  }
   0x1   :  { %v317_v0 = vld [vmem:[%s421_s1 + $0x40] sm:$0xff]   ;;  %v319_v2 = vld [vmem:[%s421_s1 + $0x48] sm:$0xff]   ;;  %v321_v4 = vld [vmem:[%s421_s1 + $0x50] sm:$0xff]  }
   0x2   :  { %v318_v1 = vld [vmem:[%s421_s1] sm:$0xff]   ;;  %272 = vmatprep.subr.bf16.mxu0 %v317_v0  ;;  %300 = vmatprep.subr.bf16.mxu1 %v317_v0  ;;  %v320_v3 = vld [vmem:[%s421_s1 + $0x8] sm:$0xff]   ;;  %v322_v5 = vld [vmem:[%s421_s1 + $0x10] sm:$0xff]  }
   0x3   :  { %273 = vmatpush3.bf16.msra.mxu0 %v318_v1  ;;  %308 = vmatpush3.bf16.msra.mxu1 %v318_v1  ;;  %v323_v6 = vld [vmem:[%s421_s1 + $0x58] sm:$0xff]   ;;  %v325_v8 = vld [vmem:[%s421_s1 + $0x60] sm:$0xff]   ;;  %v327_v10 = vld [vmem:[%s421_s1 + $0x68] sm:$0xff]  }
   0x4   :  { %274 = vmatprep.subr.bf16.mxu0 %v319_v2  ;;  %301 = vmatprep.subr.bf16.mxu1 %v319_v2  ;;  %v324_v7 = vld [vmem:[%s421_s1 + $0x18] sm:$0xff]   ;;  %v326_v9 = vld [vmem:[%s421_s1 + $0x20] sm:$0xff]   ;;  %v21_v12 = vld [vmem:[%s422_s0 + $0x8] sm:$0xff] }
   0x5   :  { %v20_v11 = vld [vmem:[%s422_s0] sm:$0xff]  ;;  %v22_v13 = vld [vmem:[%s422_s0 + $0x10] sm:$0xff]  ;;  %v25_v16 = vmax.bf16 %v333_v14, %v21_v12  ;;  %v23_v17 = vld [vmem:[%s422_s0 + $0x18] sm:$0xff] }
   0x6   :  { %v24_v15 = vmax.bf16 %v333_v14, %v20_v11  ;;  %v26_v18 = vmax.bf16 %v333_v14, %v22_v13  ;;  %v27_v19 = vmax.bf16 %v333_v14, %v23_v17  ;;  %v328_v20 = vld [vmem:[%s421_s1 + $0x28] sm:$0xff]   ;;  %v329_v22 = vld [vmem:[%s421_s1 + $0x70] sm:$0xff]   ;;  %v331_v25 = vld [vmem:[%s421_s1 + $0x78] sm:$0xff]  }
   0x7   :  { %275 = vmatpush3.bf16.msra.mxu0 %v320_v3  ;;  %309 = vmatpush3.bf16.msra.mxu1 %v320_v3  ;;  %v330_v24 = vld [vmem:[%s421_s1 + $0x30] sm:$0xff]   ;;  %v332_v26 = vld [vmem:[%s421_s1 + $0x38] sm:$0xff]  }
   0x8   :  { %276 = vmatprep.subr.bf16.mxu0 %v321_v4  ;;  %302 = vmatprep.subr.bf16.mxu1 %v321_v4  ;;  %v253_v21 = vcombine.high %v24_v15, %v25_v16  ;;  %v255_v23 = vcombine.high %v26_v18, %v27_v19  ;;  %v252_v27 = vcombine.low %v24_v15, %v25_v16 }
   0x9   :  { %v254_v28 = vcombine.low %v26_v18, %v27_v19 }
   0xa   :  { %212 = vmatprep.mubr.bf16.mxu0 %v253_v21  ;;  %220 = vmatprep.mubr.bf16.mxu1 %v255_v23 }
   0xb   :  { %277 = vmatpush3.bf16.msra.mxu0 %v322_v5  ;;  %310 = vmatpush3.bf16.msra.mxu1 %v322_v5 }
   0xc   :  { %278 = vmatprep.subr.bf16.mxu0 %v323_v6  ;;  %303 = vmatprep.subr.bf16.mxu1 %v323_v6 }
   0xf   :  { %279 = vmatpush3.bf16.msra.mxu0 %v324_v7  ;;  %311 = vmatpush3.bf16.msra.mxu1 %v324_v7 }
  0x10   :  { %280 = vmatprep.subr.bf16.mxu0 %v325_v8  ;;  %304 = vmatprep.subr.bf16.mxu1 %v325_v8 }
  0x13   :  { %281 = vmatpush3.bf16.msra.mxu0 %v326_v9  ;;  %312 = vmatpush3.bf16.msra.mxu1 %v326_v9 }
  0x14   :  { %282 = vmatprep.subr.bf16.mxu0 %v327_v10  ;;  %305 = vmatprep.subr.bf16.mxu1 %v327_v10 }
  0x17   :  { %283 = vmatpush3.bf16.msra.mxu0 %v328_v20  ;;  %313 = vmatpush3.bf16.msra.mxu1 %v328_v20 }
  0x18   :  { %284 = vmatprep.subr.bf16.mxu0 %v329_v22  ;;  %306 = vmatprep.subr.bf16.mxu1 %v329_v22 }
  0x1b   :  { %285 = vmatpush3.bf16.msra.mxu0 %v330_v24  ;;  %314 = vmatpush3.bf16.msra.mxu1 %v330_v24 }
  0x1c   :  { %286 = vmatprep.subr.bf16.mxu0 %v331_v25  ;;  %307 = vmatprep.subr.bf16.mxu1 %v331_v25 }
  0x1f   :  { %287 = vmatpush3.bf16.msra.mxu0 %v332_v26  ;;  %315 = vmatpush3.bf16.msra.mxu1 %v332_v26 }
  0x22   :  { %213 = vmatmul.mubr.bf16.vlgmr.msra.gmra.mrb[0].mxu0 %v252_v27  ;;  %221 = vmatmul.mubr.bf16.vlgmr.msra.gmra.mrb[0].mxu1 %v254_v28 }
  0xf5   :  { %v288_v29 = vpop.f32.mrb[0].mxu0  ;;  %v294_v30 = vpop.f32.mrb[0].mxu1 }
  0xf6   :  { %v289_v31 = vpop.f32.mrb[1].mxu0  ;;  %v295_v32 = vpop.f32.mrb[1].mxu1 }
  0xf7   :  { %v290_v33 = vadd.f32 %v289_v31, %v288_v29  ;;  %v296_v34 = vadd.f32 %v295_v32, %v294_v30  ;;  %v291_v35 = vpop.f32.mrb[2].mxu0  ;;  %v297_v36 = vpop.f32.mrb[2].mxu1 }
  0xf8   :  { %v292_v37 = vpop.f32.mrb[3].mxu0  ;;  %v298_v38 = vpop.f32.mrb[3].mxu1 }
  0xf9   :  { %244 = vst [vmem:[%s423_s2] sm:$0xff] %v290_v33  ;;  %246 = vst [vmem:[%s423_s2 + $0x10] sm:$0xff] %v296_v34  ;;  %v293_v39 = vadd.f32 %v292_v37, %v291_v35  ;;  %v299_v40 = vadd.f32 %v298_v38, %v297_v36 }
  0xfb   :  { %245 = vst [vmem:[%s423_s2 + $0x8] sm:$0xff] %v293_v39  ;;  %247 = vst [vmem:[%s423_s2 + $0x18] sm:$0xff] %v299_v40 }

// kernel: _lambda_.68
= control target key start
LH: loop header
LB: loop body
LE: loop exit
PB: predicated region body
PF: predicated region fallthrough
CT: control target
= control target key end

     0   :  { %v449_v7 = vmov 0   ;;  %s601_s1 = inlined_call_operand.vmem [shape: bf16[128,128], index: 1, kind: input, shape index: {}]   ;;  %s602_s0 = inlined_call_operand.vmem [shape: bf16[128,128], index: 0, kind: input, shape index: {}]   ;;  %s603_s2 = inlined_call_operand.vmem [shape: f32[128,128], index: 2, kind: output, shape index: {}]  }
   0x1   :  { %v441_v0 = vld [vmem:[%s601_s1] sm:$0xff]   ;;  %v442_v1 = vld [vmem:[%s601_s1 + $0x8] sm:$0xff]   ;;  %v443_v2 = vld [vmem:[%s601_s1 + $0x10] sm:$0xff]  }
   0x2   :  { %392 = vmatprep.subr.bf16.mxu0 %v441_v0  ;;  %424 = vmatprep.subr.bf16.mxu1 %v441_v0  ;;  %v444_v3 = vld [vmem:[%s601_s1 + $0x18] sm:$0xff]   ;;  %v32_v4 = vld [vmem:[%s602_s0] sm:$0xf]  ;;  %v33_v5 = vld [vmem:[%s602_s0 + $0x4] sm:$0xf] }
   0x3   :  { %393 = vmatpush3.bf16.msra.mxu0 %v441_v0  ;;  %432 = vmatpush3.bf16.msra.mxu1 %v441_v0  ;;  %v40_v6 = vld [vmem:[%s602_s0 + $0x20] sm:$0xf]  ;;  %v48_v8 = vmax.bf16 %v449_v7, %v32_v4  ;;  %v49_v9 = vmax.bf16 %v449_v7, %v33_v5  ;;  %v41_v10 = vld [vmem:[%s602_s0 + $0x24] sm:$0xf]  ;;  %v446_v16 = vld [vmem:[%s601_s1 + $0x28] sm:$0xff]  }
   0x4   :  { %394 = vmatprep.subr.bf16.mxu0 %v442_v1  ;;  %425 = vmatprep.subr.bf16.mxu1 %v442_v1  ;;  %v56_v11 = vmax.bf16 %v449_v7, %v40_v6  ;;  %v57_v12 = vmax.bf16 %v449_v7, %v41_v10  ;;  %v445_v14 = vld [vmem:[%s601_s1 + $0x20] sm:$0xff]   ;;  %v447_v17 = vld [vmem:[%s601_s1 + $0x30] sm:$0xff]   ;;  %v448_v18 = vld [vmem:[%s601_s1 + $0x38] sm:$0xff]  }
   0x5   :  { %v360_v13 = vcombine.low %v48_v8, %v49_v9  ;;  %v34_v19 = vld [vmem:[%s602_s0 + $0x8] sm:$0xf]  ;;  %v35_v20 = vld [vmem:[%s602_s0 + $0xc] sm:$0xf]  ;;  %v36_v23 = vld [vmem:[%s602_s0 + $0x10] sm:$0xf] }
   0x6   :  { %v364_v15 = vcombine.low %v56_v11, %v57_v12  ;;  %v42_v21 = vld [vmem:[%s602_s0 + $0x28] sm:$0xf]  ;;  %v43_v22 = vld [vmem:[%s602_s0 + $0x2c] sm:$0xf]  ;;  %v37_v24 = vld [vmem:[%s602_s0 + $0x14] sm:$0xf]  ;;  %v50_v27 = vmax.bf16 %v449_v7, %v34_v19  ;;  %v51_v28 = vmax.bf16 %v449_v7, %v35_v20  ;;  %v52_v31 = vmax.bf16 %v449_v7, %v36_v23 }
   0x7   :  { %395 = vmatpush3.bf16.msra.mxu0 %v442_v1  ;;  %433 = vmatpush3.bf16.msra.mxu1 %v442_v1  ;;  %v44_v25 = vld [vmem:[%s602_s0 + $0x30] sm:$0xf]  ;;  %v45_v26 = vld [vmem:[%s602_s0 + $0x34] sm:$0xf]  ;;  %v58_v29 = vmax.bf16 %v449_v7, %v42_v21  ;;  %v59_v30 = vmax.bf16 %v449_v7, %v43_v22  ;;  %v53_v32 = vmax.bf16 %v449_v7, %v37_v24  ;;  %v38_v37 = vld [vmem:[%s602_s0 + $0x18] sm:$0xf] }
   0x8   :  { %396 = vmatprep.subr.bf16.mxu0 %v443_v2  ;;  %426 = vmatprep.subr.bf16.mxu1 %v443_v2  ;;  %v60_v33 = vmax.bf16 %v449_v7, %v44_v25  ;;  %v61_v34 = vmax.bf16 %v449_v7, %v45_v26  ;;  %v361_v35 = vcombine.low %v50_v27, %v51_v28  ;;  %v39_v40 = vld [vmem:[%s602_s0 + $0x1c] sm:$0xf]  ;;  %v46_v41 = vld [vmem:[%s602_s0 + $0x38] sm:$0xf] }
   0x9   :  { %408 = vmatprep.mubr.bf16.mxu0 %v360_v13  ;;  %416 = vmatprep.mubr.bf16.mxu1 %v364_v15  ;;  %v365_v36 = vcombine.low %v58_v29, %v59_v30  ;;  %v362_v38 = vcombine.low %v52_v31, %v53_v32  ;;  %v47_v42 = vld [vmem:[%s602_s0 + $0x3c] sm:$0xf]  ;;  %v54_v43 = vmax.bf16 %v449_v7, %v38_v37 }
   0xa   :  { %v366_v39 = vcombine.low %v60_v33, %v61_v34  ;;  %v55_v44 = vmax.bf16 %v449_v7, %v39_v40  ;;  %v62_v45 = vmax.bf16 %v449_v7, %v46_v41  ;;  %v63_v46 = vmax.bf16 %v449_v7, %v47_v42 }
   0xb   :  { %397 = vmatpush3.bf16.msra.mxu0 %v443_v2  ;;  %434 = vmatpush3.bf16.msra.mxu1 %v443_v2 }
   0xc   :  { %398 = vmatprep.subr.bf16.mxu0 %v444_v3  ;;  %427 = vmatprep.subr.bf16.mxu1 %v444_v3  ;;  %v363_v47 = vcombine.low %v54_v43, %v55_v44  ;;  %v367_v48 = vcombine.low %v62_v45, %v63_v46 }
   0xf   :  { %399 = vmatpush3.bf16.msra.mxu0 %v444_v3  ;;  %435 = vmatpush3.bf16.msra.mxu1 %v444_v3 }
  0x10   :  { %400 = vmatprep.subr.bf16.mxu0 %v445_v14  ;;  %428 = vmatprep.subr.bf16.mxu1 %v445_v14 }
  0x13   :  { %401 = vmatpush3.bf16.msra.mxu0 %v445_v14  ;;  %436 = vmatpush3.bf16.msra.mxu1 %v445_v14 }
  0x14   :  { %402 = vmatprep.subr.bf16.mxu0 %v446_v16  ;;  %429 = vmatprep.subr.bf16.mxu1 %v446_v16 }
  0x17   :  { %403 = vmatpush3.bf16.msra.mxu0 %v446_v16  ;;  %437 = vmatpush3.bf16.msra.mxu1 %v446_v16 }
  0x18   :  { %404 = vmatprep.subr.bf16.mxu0 %v447_v17  ;;  %430 = vmatprep.subr.bf16.mxu1 %v447_v17 }
  0x1b   :  { %405 = vmatpush3.bf16.msra.mxu0 %v447_v17  ;;  %438 = vmatpush3.bf16.msra.mxu1 %v447_v17 }
  0x1c   :  { %406 = vmatprep.subr.bf16.mxu0 %v448_v18  ;;  %431 = vmatprep.subr.bf16.mxu1 %v448_v18 }
  0x1f   :  { %407 = vmatpush3.bf16.msra.mxu0 %v448_v18  ;;  %439 = vmatpush3.bf16.msra.mxu1 %v448_v18 }
  0x22   :  { %409 = vmatmul.mubr.bf16.vlgmr.msra.gmra.mrb[0].mxu0 %v361_v35  ;;  %417 = vmatmul.mubr.bf16.vlgmr.msra.gmra.mrb[0].mxu1 %v365_v36 }
  0x23   :  { %412 = vmatprep.mubr.bf16.mxu0 %v362_v38  ;;  %420 = vmatprep.mubr.bf16.mxu1 %v366_v39 }
  0x2a   :  { %413 = vmatmul.mubr.bf16.gmra.mrb[4].mxu0 %v363_v47  ;;  %421 = vmatmul.mubr.bf16.gmra.mrb[4].mxu1 %v367_v48 }
  0xf5   :  { %v410_v49 = vpop.f32.mrb[0].mxu0  ;;  %v418_v50 = vpop.f32.mrb[0].mxu1 }
  0xf6   :  { %342 = vst [vmem:[%s603_s2 + $0x10] sm:$0xff] %v410_v49  ;;  %350 = vst [vmem:[%s603_s2 + $0x50] sm:$0xff] %v418_v50  ;;  %v226_v51 = vpop.f32.mrb[1].mxu0  ;;  %v258_v52 = vpop.f32.mrb[1].mxu1 }
  0xf7   :  { %340 = vst [vmem:[%s603_s2] sm:$0xff] %v226_v51  ;;  %348 = vst [vmem:[%s603_s2 + $0x40] sm:$0xff] %v258_v52  ;;  %v411_v53 = vpop.f32.mrb[2].mxu0  ;;  %v419_v54 = vpop.f32.mrb[2].mxu1 }
  0xf8   :  { %343 = vst [vmem:[%s603_s2 + $0x18] sm:$0xff] %v411_v53  ;;  %351 = vst [vmem:[%s603_s2 + $0x58] sm:$0xff] %v419_v54  ;;  %v229_v55 = vpop.f32.mrb[3].mxu0  ;;  %v261_v56 = vpop.f32.mrb[3].mxu1 }
  0xf9   :  { %341 = vst [vmem:[%s603_s2 + $0x8] sm:$0xff] %v229_v55  ;;  %349 = vst [vmem:[%s603_s2 + $0x48] sm:$0xff] %v261_v56 }
  0xfd   :  { %v414_v57 = vpop.f32.mrb[4].mxu0  ;;  %v422_v58 = vpop.f32.mrb[4].mxu1 }
  0xfe   :  { %346 = vst [vmem:[%s603_s2 + $0x30] sm:$0xff] %v414_v57  ;;  %354 = vst [vmem:[%s603_s2 + $0x70] sm:$0xff] %v422_v58  ;;  %v242_v59 = vpop.f32.mrb[5].mxu0  ;;  %v274_v60 = vpop.f32.mrb[5].mxu1 }
  0xff   :  { %344 = vst [vmem:[%s603_s2 + $0x20] sm:$0xff] %v242_v59  ;;  %352 = vst [vmem:[%s603_s2 + $0x60] sm:$0xff] %v274_v60  ;;  %v415_v61 = vpop.f32.mrb[6].mxu0  ;;  %v423_v62 = vpop.f32.mrb[6].mxu1 }
 0x100   :  { %347 = vst [vmem:[%s603_s2 + $0x38] sm:$0xff] %v415_v61  ;;  %355 = vst [vmem:[%s603_s2 + $0x78] sm:$0xff] %v423_v62  ;;  %v245_v63 = vpop.f32.mrb[7].mxu0  ;;  %v277_v0 = vpop.f32.mrb[7].mxu1 }
 0x101   :  { %345 = vst [vmem:[%s603_s2 + $0x28] sm:$0xff] %v245_v63  ;;  %353 = vst [vmem:[%s603_s2 + $0x68] sm:$0xff] %v277_v0 }

// kernel: _lambda_.72
= control target key start
LH: loop header
LB: loop body
LE: loop exit
PB: predicated region body
PF: predicated region fallthrough
CT: control target
= control target key end

     0   :  { %v289_v0 = vmov 0.0   ;;  %vm280_vm0 = vcmask 1040384   ;;  %s501_s0 = inlined_call_operand.vmem [shape: f32[512,128], index: 0, kind: input, shape index: {}]   ;;  %s502_s1 = inlined_call_operand.vmem [shape: f32[2,128], index: 1, kind: output, shape index: {}]  }
   0x1   :  { %12 = vst [vmem:[%s502_s1] sm:$0x3] %v289_v0  ;;  %v13_v1 = vld [vmem:[%s501_s0] sm:$0xff]  ;;  %v14_v2 = vld [vmem:[%s501_s0 + $0x8] sm:$0xff]  ;;  %v15_v3 = vld [vmem:[%s501_s0 + $0x10] sm:$0xff] }
   0x2   :  { %v16_v4 = vld [vmem:[%s501_s0 + $0x18] sm:$0xff]  ;;  %v78_v5 = vadd.f32 %v14_v2, %v13_v1  ;;  %v147_v6 = vmul.f32 %v13_v1, %v13_v1  ;;  %v148_v7 = vmul.f32 %v14_v2, %v14_v2  ;;  %v149_v8 = vmul.f32 %v15_v3, %v15_v3  ;;  %v17_v9 = vld [vmem:[%s501_s0 + $0x20] sm:$0xff]  ;;  %v18_v13 = vld [vmem:[%s501_s0 + $0x28] sm:$0xff] }
   0x3   :  { %v150_v11 = vmul.f32 %v16_v4, %v16_v4  ;;  %v151_v15 = vmul.f32 %v17_v9, %v17_v9  ;;  %v19_v17 = vld [vmem:[%s501_s0 + $0x30] sm:$0xff]  ;;  %v152_v19 = vmul.f32 %v18_v13, %v18_v13  ;;  %v20_v21 = vld [vmem:[%s501_s0 + $0x38] sm:$0xff]  ;;  %v21_v25 = vld [vmem:[%s501_s0 + $0x40] sm:$0xff] }
   0x4   :  { %v79_v10 = vadd.f32 %v78_v5, %v15_v3  ;;  %v211_v12 = vadd.f32 %v148_v7, %v147_v6  ;;  %v153_v23 = vmul.f32 %v19_v17, %v19_v17  ;;  %v154_v27 = vmul.f32 %v20_v21, %v20_v21  ;;  %v22_v29 = vld [vmem:[%s501_s0 + $0x48] sm:$0xff]  ;;  %v23_v33 = vld [vmem:[%s501_s0 + $0x50] sm:$0xff]  ;;  %v24_v37 = vld [vmem:[%s501_s0 + $0x58] sm:$0xff] }
   0x5   :  { %v155_v31 = vmul.f32 %v21_v25, %v21_v25  ;;  %v156_v35 = vmul.f32 %v22_v29, %v22_v29  ;;  %v157_v39 = vmul.f32 %v23_v33, %v23_v33  ;;  %v25_v41 = vld [vmem:[%s501_s0 + $0x60] sm:$0xff]  ;;  %v158_v43 = vmul.f32 %v24_v37, %v24_v37  ;;  %v26_v45 = vld [vmem:[%s501_s0 + $0x68] sm:$0xff]  ;;  %v27_v49 = vld [vmem:[%s501_s0 + $0x70] sm:$0xff] }
   0x6   :  { %v80_v14 = vadd.f32 %v79_v10, %v16_v4  ;;  %v212_v16 = vadd.f32 %v211_v12, %v149_v8  ;;  %v159_v47 = vmul.f32 %v25_v41, %v25_v41  ;;  %v160_v51 = vmul.f32 %v26_v45, %v26_v45  ;;  %v28_v53 = vld [vmem:[%s501_s0 + $0x78] sm:$0xff]  ;;  %v29_v57 = vld [vmem:[%s501_s0 + $0x80] sm:$0xff]  ;;  %v30_v61 = vld [vmem:[%s501_s0 + $0x88] sm:$0xff] }
   0x7   :  { %v161_v55 = vmul.f32 %v27_v49, %v27_v49  ;;  %v162_v59 = vmul.f32 %v28_v53, %v28_v53  ;;  %v163_v63 = vmul.f32 %v29_v57, %v29_v57  ;;  %v31_v1 = vld [vmem:[%s501_s0 + $0x90] sm:$0xff]  ;;  %v164_v3 = vmul.f32 %v30_v61, %v30_v61  ;;  %v32_v5 = vld [vmem:[%s501_s0 + $0x98] sm:$0xff] }
   0x8   :  { %v81_v18 = vadd.f32 %v80_v14, %v17_v9  ;;  %v213_v20 = vadd.f32 %v212_v16, %v150_v11  ;;  %v165_v7 = vmul.f32 %v31_v1, %v31_v1  ;;  %v33_v9 = vld [vmem:[%s501_s0 + $0xa0] sm:$0xff]  ;;  %v166_v11 = vmul.f32 %v32_v5, %v32_v5 }
   0xa   :  { %v82_v22 = vadd.f32 %v81_v18, %v18_v13  ;;  %v214_v24 = vadd.f32 %v213_v20, %v151_v15  ;;  %v34_v13 = vld [vmem:[%s501_s0 + $0xa8] sm:$0xff]  ;;  %v167_v15 = vmul.f32 %v33_v9, %v33_v9 }
   0xc   :  { %v83_v26 = vadd.f32 %v82_v22, %v19_v17  ;;  %v215_v28 = vadd.f32 %v214_v24, %v152_v19  ;;  %v35_v17 = vld [vmem:[%s501_s0 + $0xb0] sm:$0xff]  ;;  %v168_v19 = vmul.f32 %v34_v13, %v34_v13 }
   0xe   :  { %v84_v30 = vadd.f32 %v83_v26, %v20_v21  ;;  %v216_v32 = vadd.f32 %v215_v28, %v153_v23  ;;  %v36_v21 = vld [vmem:[%s501_s0 + $0xb8] sm:$0xff]  ;;  %v169_v23 = vmul.f32 %v35_v17, %v35_v17 }
  0x10   :  { %v85_v34 = vadd.f32 %v84_v30, %v21_v25  ;;  %v217_v36 = vadd.f32 %v216_v32, %v154_v27  ;;  %v37_v25 = vld [vmem:[%s501_s0 + $0xc0] sm:$0xff]  ;;  %v170_v27 = vmul.f32 %v36_v21, %v36_v21 }
  0x12   :  { %v86_v38 = vadd.f32 %v85_v34, %v22_v29  ;;  %v218_v40 = vadd.f32 %v217_v36, %v155_v31  ;;  %v38_v29 = vld [vmem:[%s501_s0 + $0xc8] sm:$0xff]  ;;  %v171_v31 = vmul.f32 %v37_v25, %v37_v25 }
  0x14   :  { %v87_v42 = vadd.f32 %v86_v38, %v23_v33  ;;  %v219_v44 = vadd.f32 %v218_v40, %v156_v35  ;;  %v39_v33 = vld [vmem:[%s501_s0 + $0xd0] sm:$0xff]  ;;  %v172_v35 = vmul.f32 %v38_v29, %v38_v29 }
  0x16   :  { %v88_v46 = vadd.f32 %v87_v42, %v24_v37  ;;  %v220_v48 = vadd.f32 %v219_v44, %v157_v39  ;;  %v40_v37 = vld [vmem:[%s501_s0 + $0xd8] sm:$0xff]  ;;  %v173_v39 = vmul.f32 %v39_v33, %v39_v33 }
  0x18   :  { %v89_v50 = vadd.f32 %v88_v46, %v25_v41  ;;  %v221_v52 = vadd.f32 %v220_v48, %v158_v43  ;;  %v41_v41 = vld [vmem:[%s501_s0 + $0xe0] sm:$0xff]  ;;  %v174_v43 = vmul.f32 %v40_v37, %v40_v37 }
  0x1a   :  { %v90_v54 = vadd.f32 %v89_v50, %v26_v45  ;;  %v222_v56 = vadd.f32 %v221_v52, %v159_v47  ;;  %v42_v45 = vld [vmem:[%s501_s0 + $0xe8] sm:$0xff]  ;;  %v175_v47 = vmul.f32 %v41_v41, %v41_v41 }
  0x1c   :  { %v91_v58 = vadd.f32 %v90_v54, %v27_v49  ;;  %v223_v60 = vadd.f32 %v222_v56, %v160_v51  ;;  %v43_v49 = vld [vmem:[%s501_s0 + $0xf0] sm:$0xff]  ;;  %v176_v51 = vmul.f32 %v42_v45, %v42_v45 }
  0x1e   :  { %v92_v62 = vadd.f32 %v91_v58, %v28_v53  ;;  %v224_v0 = vadd.f32 %v223_v60, %v161_v55  ;;  %v44_v53 = vld [vmem:[%s501_s0 + $0xf8] sm:$0xff]  ;;  %v177_v55 = vmul.f32 %v43_v49, %v43_v49 }
  0x20   :  { %v93_v2 = vadd.f32 %v92_v62, %v29_v57  ;;  %v225_v4 = vadd.f32 %v224_v0, %v162_v59  ;;  %v45_v57 = vld [vmem:[%s501_s0 + $0x100] sm:$0xff]  ;;  %v178_v59 = vmul.f32 %v44_v53, %v44_v53 }
  0x22   :  { %v94_v6 = vadd.f32 %v93_v2, %v30_v61  ;;  %v226_v8 = vadd.f32 %v225_v4, %v163_v63  ;;  %v46_v61 = vld [vmem:[%s501_s0 + $0x108] sm:$0xff]  ;;  %v179_v63 = vmul.f32 %v45_v57, %v45_v57 }
  0x24   :  { %v95_v10 = vadd.f32 %v94_v6, %v31_v1  ;;  %v227_v12 = vadd.f32 %v226_v8, %v164_v3  ;;  %v47_v1 = vld [vmem:[%s501_s0 + $0x110] sm:$0xff]  ;;  %v180_v3 = vmul.f32 %v46_v61, %v46_v61 }
  0x26   :  { %v96_v14 = vadd.f32 %v95_v10, %v32_v5  ;;  %v228_v16 = vadd.f32 %v227_v12, %v165_v7  ;;  %v48_v5 = vld [vmem:[%s501_s0 + $0x118] sm:$0xff]  ;;  %v181_v7 = vmul.f32 %v47_v1, %v47_v1 }
  0x28   :  { %v97_v18 = vadd.f32 %v96_v14, %v33_v9  ;;  %v229_v20 = vadd.f32 %v228_v16, %v166_v11  ;;  %v49_v9 = vld [vmem:[%s501_s0 + $0x120] sm:$0xff]  ;;  %v182_v11 = vmul.f32 %v48_v5, %v48_v5 }
  0x2a   :  { %v98_v22 = vadd.f32 %v97_v18, %v34_v13  ;;  %v230_v24 = vadd.f32 %v229_v20, %v167_v15  ;;  %v50_v13 = vld [vmem:[%s501_s0 + $0x128] sm:$0xff]  ;;  %v183_v15 = vmul.f32 %v49_v9, %v49_v9 }
  0x2c   :  { %v99_v26 = vadd.f32 %v98_v22, %v35_v17  ;;  %v231_v28 = vadd.f32 %v230_v24, %v168_v19  ;;  %v51_v17 = vld [vmem:[%s501_s0 + $0x130] sm:$0xff]  ;;  %v184_v19 = vmul.f32 %v50_v13, %v50_v13 }
  0x2e   :  { %v100_v30 = vadd.f32 %v99_v26, %v36_v21  ;;  %v232_v32 = vadd.f32 %v231_v28, %v169_v23  ;;  %v52_v21 = vld [vmem:[%s501_s0 + $0x138] sm:$0xff]  ;;  %v185_v23 = vmul.f32 %v51_v17, %v51_v17 }
  0x30   :  { %v101_v34 = vadd.f32 %v100_v30, %v37_v25  ;;  %v233_v36 = vadd.f32 %v232_v32, %v170_v27  ;;  %v53_v25 = vld [vmem:[%s501_s0 + $0x140] sm:$0xff]  ;;  %v186_v27 = vmul.f32 %v52_v21, %v52_v21 }
  0x32   :  { %v102_v38 = vadd.f32 %v101_v34, %v38_v29  ;;  %v234_v40 = vadd.f32 %v233_v36, %v171_v31  ;;  %v54_v29 = vld [vmem:[%s501_s0 + $0x148] sm:$0xff]  ;;  %v187_v31 = vmul.f32 %v53_v25, %v53_v25 }
  0x34   :  { %v103_v42 = vadd.f32 %v102_v38, %v39_v33  ;;  %v235_v44 = vadd.f32 %v234_v40, %v172_v35  ;;  %v55_v33 = vld [vmem:[%s501_s0 + $0x150] sm:$0xff]  ;;  %v188_v35 = vmul.f32 %v54_v29, %v54_v29 }
  0x36   :  { %v104_v46 = vadd.f32 %v103_v42, %v40_v37  ;;  %v236_v48 = vadd.f32 %v235_v44, %v173_v39  ;;  %v56_v37 = vld [vmem:[%s501_s0 + $0x158] sm:$0xff]  ;;  %v189_v39 = vmul.f32 %v55_v33, %v55_v33 }
  0x38   :  { %v105_v50 = vadd.f32 %v104_v46, %v41_v41  ;;  %v237_v52 = vadd.f32 %v236_v48, %v174_v43  ;;  %v57_v41 = vld [vmem:[%s501_s0 + $0x160] sm:$0xff]  ;;  %v190_v43 = vmul.f32 %v56_v37, %v56_v37 }
  0x3a   :  { %v106_v54 = vadd.f32 %v105_v50, %v42_v45  ;;  %v238_v56 = vadd.f32 %v237_v52, %v175_v47  ;;  %v58_v45 = vld [vmem:[%s501_s0 + $0x168] sm:$0xff]  ;;  %v191_v47 = vmul.f32 %v57_v41, %v57_v41 }
  0x3c   :  { %v107_v58 = vadd.f32 %v106_v54, %v43_v49  ;;  %v239_v60 = vadd.f32 %v238_v56, %v176_v51  ;;  %v59_v49 = vld [vmem:[%s501_s0 + $0x170] sm:$0xff]  ;;  %v192_v51 = vmul.f32 %v58_v45, %v58_v45 }
  0x3e   :  { %v108_v62 = vadd.f32 %v107_v58, %v44_v53  ;;  %v240_v0 = vadd.f32 %v239_v60, %v177_v55  ;;  %v60_v53 = vld [vmem:[%s501_s0 + $0x178] sm:$0xff]  ;;  %v193_v55 = vmul.f32 %v59_v49, %v59_v49 }
  0x40   :  { %v109_v2 = vadd.f32 %v108_v62, %v45_v57  ;;  %v241_v4 = vadd.f32 %v240_v0, %v178_v59  ;;  %v61_v57 = vld [vmem:[%s501_s0 + $0x180] sm:$0xff]  ;;  %v194_v59 = vmul.f32 %v60_v53, %v60_v53 }
  0x42   :  { %v110_v6 = vadd.f32 %v109_v2, %v46_v61  ;;  %v242_v8 = vadd.f32 %v241_v4, %v179_v63  ;;  %v62_v61 = vld [vmem:[%s501_s0 + $0x188] sm:$0xff]  ;;  %v195_v63 = vmul.f32 %v61_v57, %v61_v57 }
  0x44   :  { %v111_v10 = vadd.f32 %v110_v6, %v47_v1  ;;  %v243_v12 = vadd.f32 %v242_v8, %v180_v3  ;;  %v63_v1 = vld [vmem:[%s501_s0 + $0x190] sm:$0xff]  ;;  %v196_v3 = vmul.f32 %v62_v61, %v62_v61 }
  0x46   :  { %v112_v14 = vadd.f32 %v111_v10, %v48_v5  ;;  %v244_v16 = vadd.f32 %v243_v12, %v181_v7  ;;  %v64_v5 = vld [vmem:[%s501_s0 + $0x198] sm:$0xff]  ;;  %v197_v7 = vmul.f32 %v63_v1, %v63_v1 }
  0x48   :  { %v113_v18 = vadd.f32 %v112_v14, %v49_v9  ;;  %v245_v20 = vadd.f32 %v244_v16, %v182_v11  ;;  %v65_v9 = vld [vmem:[%s501_s0 + $0x1a0] sm:$0xff]  ;;  %v198_v11 = vmul.f32 %v64_v5, %v64_v5 }
  0x4a   :  { %v114_v22 = vadd.f32 %v113_v18, %v50_v13  ;;  %v246_v24 = vadd.f32 %v245_v20, %v183_v15  ;;  %v66_v13 = vld [vmem:[%s501_s0 + $0x1a8] sm:$0xff]  ;;  %v199_v15 = vmul.f32 %v65_v9, %v65_v9 }
  0x4c   :  { %v115_v26 = vadd.f32 %v114_v22, %v51_v17  ;;  %v247_v28 = vadd.f32 %v246_v24, %v184_v19  ;;  %v67_v17 = vld [vmem:[%s501_s0 + $0x1b0] sm:$0xff]  ;;  %v200_v19 = vmul.f32 %v66_v13, %v66_v13 }
  0x4e   :  { %v116_v30 = vadd.f32 %v115_v26, %v52_v21  ;;  %v248_v32 = vadd.f32 %v247_v28, %v185_v23  ;;  %v68_v21 = vld [vmem:[%s501_s0 + $0x1b8] sm:$0xff]  ;;  %v201_v23 = vmul.f32 %v67_v17, %v67_v17 }
  0x50   :  { %v117_v34 = vadd.f32 %v116_v30, %v53_v25  ;;  %v249_v36 = vadd.f32 %v248_v32, %v186_v27  ;;  %v69_v25 = vld [vmem:[%s501_s0 + $0x1c0] sm:$0xff]  ;;  %v202_v27 = vmul.f32 %v68_v21, %v68_v21 }
  0x52   :  { %v118_v38 = vadd.f32 %v117_v34, %v54_v29  ;;  %v250_v40 = vadd.f32 %v249_v36, %v187_v31  ;;  %v70_v29 = vld [vmem:[%s501_s0 + $0x1c8] sm:$0xff]  ;;  %v203_v31 = vmul.f32 %v69_v25, %v69_v25 }
  0x54   :  { %v119_v42 = vadd.f32 %v118_v38, %v55_v33  ;;  %v251_v44 = vadd.f32 %v250_v40, %v188_v35  ;;  %v71_v33 = vld [vmem:[%s501_s0 + $0x1d0] sm:$0xff]  ;;  %v204_v35 = vmul.f32 %v70_v29, %v70_v29 }
  0x56   :  { %v120_v46 = vadd.f32 %v119_v42, %v56_v37  ;;  %v252_v48 = vadd.f32 %v251_v44, %v189_v39  ;;  %v72_v37 = vld [vmem:[%s501_s0 + $0x1d8] sm:$0xff]  ;;  %v205_v39 = vmul.f32 %v71_v33, %v71_v33 }
  0x58   :  { %v121_v50 = vadd.f32 %v120_v46, %v57_v41  ;;  %v253_v52 = vadd.f32 %v252_v48, %v190_v43  ;;  %v73_v41 = vld [vmem:[%s501_s0 + $0x1e0] sm:$0xff]  ;;  %v206_v43 = vmul.f32 %v72_v37, %v72_v37 }
  0x5a   :  { %v122_v54 = vadd.f32 %v121_v50, %v58_v45  ;;  %v254_v56 = vadd.f32 %v253_v52, %v191_v47  ;;  %v74_v45 = vld [vmem:[%s501_s0 + $0x1e8] sm:$0xff]  ;;  %v207_v47 = vmul.f32 %v73_v41, %v73_v41 }
  0x5c   :  { %v123_v58 = vadd.f32 %v122_v54, %v59_v49  ;;  %v255_v60 = vadd.f32 %v254_v56, %v192_v51  ;;  %v75_v49 = vld [vmem:[%s501_s0 + $0x1f0] sm:$0xff]  ;;  %v208_v51 = vmul.f32 %v74_v45, %v74_v45 }
  0x5e   :  { %v124_v62 = vadd.f32 %v123_v58, %v60_v53  ;;  %v256_v0 = vadd.f32 %v255_v60, %v193_v55  ;;  %v76_v53 = vld [vmem:[%s501_s0 + $0x1f8] sm:$0xff]  ;;  %v209_v55 = vmul.f32 %v75_v49, %v75_v49 }
  0x5f   :  { %v210_v58 = vmul.f32 %v76_v53, %v76_v53 }
  0x60   :  { %v125_v2 = vadd.f32 %v124_v62, %v61_v57  ;;  %v257_v4 = vadd.f32 %v256_v0, %v194_v59 }
  0x62   :  { %v126_v6 = vadd.f32 %v125_v2, %v62_v61  ;;  %v258_v8 = vadd.f32 %v257_v4, %v195_v63 }
  0x64   :  { %v127_v10 = vadd.f32 %v126_v6, %v63_v1  ;;  %v259_v12 = vadd.f32 %v258_v8, %v196_v3 }
  0x66   :  { %v128_v14 = vadd.f32 %v127_v10, %v64_v5  ;;  %v260_v16 = vadd.f32 %v259_v12, %v197_v7  ;;  %v77_v10 = vld [vmem:[%s502_s1] sm:$0x3] }
  0x68   :  { %v129_v18 = vadd.f32 %v128_v14, %v65_v9  ;;  %v261_v20 = vadd.f32 %v260_v16, %v198_v11 }
  0x6a   :  { %v130_v22 = vadd.f32 %v129_v18, %v66_v13  ;;  %v262_v24 = vadd.f32 %v261_v20, %v199_v15 }
  0x6c   :  { %v131_v26 = vadd.f32 %v130_v22, %v67_v17  ;;  %v263_v28 = vadd.f32 %v262_v24, %v200_v19 }
  0x6e   :  { %v132_v30 = vadd.f32 %v131_v26, %v68_v21  ;;  %v264_v32 = vadd.f32 %v263_v28, %v201_v23 }
  0x70   :  { %v133_v34 = vadd.f32 %v132_v30, %v69_v25  ;;  %v265_v36 = vadd.f32 %v264_v32, %v202_v27 }
  0x72   :  { %v134_v38 = vadd.f32 %v133_v34, %v70_v29  ;;  %v266_v40 = vadd.f32 %v265_v36, %v203_v31 }
  0x74   :  { %v135_v42 = vadd.f32 %v134_v38, %v71_v33  ;;  %v267_v44 = vadd.f32 %v266_v40, %v204_v35 }
  0x76   :  { %v136_v46 = vadd.f32 %v135_v42, %v72_v37  ;;  %v268_v48 = vadd.f32 %v267_v44, %v205_v39 }
  0x78   :  { %v137_v50 = vadd.f32 %v136_v46, %v73_v41  ;;  %v269_v52 = vadd.f32 %v268_v48, %v206_v43 }
  0x7a   :  { %v138_v54 = vadd.f32 %v137_v50, %v74_v45  ;;  %v270_v56 = vadd.f32 %v269_v52, %v207_v47 }
  0x7c   :  { %v139_v57 = vadd.f32 %v138_v54, %v75_v49  ;;  %v271_v59 = vadd.f32 %v270_v56, %v208_v51 }
  0x7e   :  { %v140_v60 = vadd.f32 %v139_v57, %v76_v53  ;;  %v272_v61 = vadd.f32 %v271_v59, %v209_v55 }
  0x80   :  { %v141_v62 = vrot.slane %v140_v60, 4  ;;  %v273_v63 = vadd.f32 %v272_v61, %v210_v58 }
  0x82   :  { %v142_v0 = vadd.f32 %v141_v62, %v140_v60  ;;  %v274_v1 = vrot.slane %v273_v63, 4 }
  0x84   :  { %v143_v2 = vrot.slane %v142_v0, 2  ;;  %v275_v3 = vadd.f32 %v274_v1, %v273_v63 }
  0x86   :  { %v144_v4 = vadd.f32 %v143_v2, %v142_v0  ;;  %v276_v5 = vrot.slane %v275_v3, 2 }
  0x88   :  { %v145_v6 = vrot.slane %v144_v4, 1  ;;  %v277_v7 = vadd.f32 %v276_v5, %v275_v3 }
  0x8a   :  { %v146_v8 = vadd.f32 %v145_v6, %v144_v4  ;;  %v278_v9 = vrot.slane %v277_v7, 1 }
  0x8c   :  { %v279_v11 = vadd.f32 %v278_v9, %v277_v7 }
  0x8e   :  { %v281_v12 = vsel %vm280_vm0, %v146_v8, %v279_v11 }
  0x8f   :  { %v282_v13 = vadd.f32 %v281_v12, %v77_v10 }
  0x91   :  { %283 = vst [vmem:[%s502_s1] sm:$0x3] %v282_v13 }

// kernel: _lambda_.73
= control target key start
LH: loop header
LB: loop body
LE: loop exit
PB: predicated region body
PF: predicated region fallthrough
CT: control target
= control target key end

     0   :  { %s832_s0 = inlined_call_operand.vmem [shape: f32[512,128], index: 0, kind: input, shape index: {}]   ;;  %s833_s1 = inlined_call_operand.vmem [shape: f32[1,128], index: 1, kind: input, shape index: {}]   ;;  %s834_s2 = inlined_call_operand.vmem [shape: f32[1,128], index: 2, kind: input, shape index: {}]   ;;  %s835_s3 = inlined_call_operand.vmem [shape: f32[512,128], index: 3, kind: output, shape index: {}]  }
   0x1   :  { %v14_v0 = vld [vmem:[%s832_s0] sm:$0xff]  ;;  %v15_v4 = vld [vmem:[%s832_s0 + $0x8] sm:$0xff]  ;;  %v16_v5 = vld [vmem:[%s832_s0 + $0x10] sm:$0xff] }
   0x2   :  { %v316_v1 = vld [vmem:[%s833_s1] ss:$0 sm:$0xff]  ;;  %v17_v6 = vld [vmem:[%s832_s0 + $0x18] sm:$0xff]  ;;  %v19_v11 = vld [vmem:[%s832_s0 + $0x28] sm:$0xff] }
   0x3   :  { %v321_v2 = vld [vmem:[%s834_s2] ss:$0 sm:$0xff]  ;;  %v85_v3 = vmul.f32 %v316_v1, %v14_v0  ;;  %v86_v7 = vmul.f32 %v316_v1, %v15_v4  ;;  %v87_v8 = vmul.f32 %v316_v1, %v16_v5  ;;  %v88_v9 = vmul.f32 %v316_v1, %v17_v6  ;;  %v20_v12 = vld [vmem:[%s832_s0 + $0x30] sm:$0xff]  ;;  %v21_v17 = vld [vmem:[%s832_s0 + $0x38] sm:$0xff] }
   0x4   :  { %v18_v10 = vld [vmem:[%s832_s0 + $0x20] sm:$0xff]  ;;  %v90_v15 = vmul.f32 %v316_v1, %v19_v11  ;;  %v91_v16 = vmul.f32 %v316_v1, %v20_v12  ;;  %v23_v19 = vld [vmem:[%s832_s0 + $0x48] sm:$0xff]  ;;  %v92_v23 = vmul.f32 %v316_v1, %v21_v17  ;;  %v24_v24 = vld [vmem:[%s832_s0 + $0x50] sm:$0xff] }
   0x5   :  { %v156_v13 = vadd.f32 %v321_v2, %v85_v3  ;;  %v89_v14 = vmul.f32 %v316_v1, %v18_v10  ;;  %v22_v18 = vld [vmem:[%s832_s0 + $0x40] sm:$0xff]  ;;  %v157_v20 = vadd.f32 %v321_v2, %v86_v7  ;;  %v158_v21 = vadd.f32 %v321_v2, %v87_v8  ;;  %v25_v25 = vld [vmem:[%s832_s0 + $0x58] sm:$0xff]  ;;  %v27_v31 = vld [vmem:[%s832_s0 + $0x68] sm:$0xff] }
   0x6   :  { %v159_v22 = vadd.f32 %v321_v2, %v88_v9  ;;  %v26_v26 = vld [vmem:[%s832_s0 + $0x60] sm:$0xff]  ;;  %v161_v28 = vadd.f32 %v321_v2, %v90_v15  ;;  %v162_v29 = vadd.f32 %v321_v2, %v91_v16  ;;  %v93_v30 = vmul.f32 %v316_v1, %v22_v18  ;;  %v28_v32 = vld [vmem:[%s832_s0 + $0x70] sm:$0xff]  ;;  %v29_v33 = vld [vmem:[%s832_s0 + $0x78] sm:$0xff] }
   0x7   :  { %220 = vst [vmem:[%s835_s3] sm:$0xff] %v156_v13  ;;  %v160_v27 = vadd.f32 %v321_v2, %v89_v14  ;;  %221 = vst [vmem:[%s835_s3 + $0x8] sm:$0xff] %v157_v20  ;;  %v163_v34 = vadd.f32 %v321_v2, %v92_v23  ;;  %v94_v35 = vmul.f32 %v316_v1, %v23_v19  ;;  %v30_v38 = vld [vmem:[%s832_s0 + $0x80] sm:$0xff]  ;;  %v31_v43 = vld [vmem:[%s832_s0 + $0x88] sm:$0xff] }
   0x8   :  { %222 = vst [vmem:[%s835_s3 + $0x10] sm:$0xff] %v158_v21  ;;  %223 = vst [vmem:[%s835_s3 + $0x18] sm:$0xff] %v159_v22  ;;  %v95_v36 = vmul.f32 %v316_v1, %v24_v24  ;;  %v96_v37 = vmul.f32 %v316_v1, %v25_v25  ;;  %v164_v39 = vadd.f32 %v321_v2, %v93_v30  ;;  %v32_v44 = vld [vmem:[%s832_s0 + $0x90] sm:$0xff]  ;;  %v33_v45 = vld [vmem:[%s832_s0 + $0x98] sm:$0xff] }
   0x9   :  { %224 = vst [vmem:[%s835_s3 + $0x20] sm:$0xff] %v160_v27  ;;  %225 = vst [vmem:[%s835_s3 + $0x28] sm:$0xff] %v161_v28  ;;  %v97_v40 = vmul.f32 %v316_v1, %v26_v26  ;;  %v98_v41 = vmul.f32 %v316_v1, %v27_v31  ;;  %v99_v42 = vmul.f32 %v316_v1, %v28_v32  ;;  %v34_v50 = vld [vmem:[%s832_s0 + $0xa0] sm:$0xff]  ;;  %v35_v51 = vld [vmem:[%s832_s0 + $0xa8] sm:$0xff] }
   0xa   :  { %226 = vst [vmem:[%s835_s3 + $0x30] sm:$0xff] %v162_v29  ;;  %227 = vst [vmem:[%s835_s3 + $0x38] sm:$0xff] %v163_v34  ;;  %v165_v46 = vadd.f32 %v321_v2, %v94_v35  ;;  %v166_v47 = vadd.f32 %v321_v2, %v95_v36  ;;  %v167_v48 = vadd.f32 %v321_v2, %v96_v37  ;;  %v36_v52 = vld [vmem:[%s832_s0 + $0xb0] sm:$0xff]  ;;  %v37_v57 = vld [vmem:[%s832_s0 + $0xb8] sm:$0xff] }
   0xb   :  { %v100_v49 = vmul.f32 %v316_v1, %v29_v33  ;;  %228 = vst [vmem:[%s835_s3 + $0x40] sm:$0xff] %v164_v39  ;;  %v168_v53 = vadd.f32 %v321_v2, %v97_v40  ;;  %v169_v54 = vadd.f32 %v321_v2, %v98_v41  ;;  %v170_v55 = vadd.f32 %v321_v2, %v99_v42  ;;  %v38_v62 = vld [vmem:[%s832_s0 + $0xc0] sm:$0xff]  ;;  %v39_v5 = vld [vmem:[%s832_s0 + $0xc8] sm:$0xff]  ;;  %v40_v6 = vld [vmem:[%s832_s0 + $0xd0] sm:$0xff] }
   0xc   :  { %v101_v56 = vmul.f32 %v316_v1, %v30_v38  ;;  %229 = vst [vmem:[%s835_s3 + $0x48] sm:$0xff] %v165_v46  ;;  %230 = vst [vmem:[%s835_s3 + $0x50] sm:$0xff] %v166_v47  ;;  %v102_v59 = vmul.f32 %v316_v1, %v31_v43  ;;  %v103_v60 = vmul.f32 %v316_v1, %v32_v44  ;;  %v41_v7 = vld [vmem:[%s832_s0 + $0xd8] sm:$0xff]  ;;  %v42_v12 = vld [vmem:[%s832_s0 + $0xe0] sm:$0xff] }
   0xd   :  { %231 = vst [vmem:[%s835_s3 + $0x58] sm:$0xff] %v167_v48  ;;  %v171_v58 = vadd.f32 %v321_v2, %v100_v49  ;;  %v104_v61 = vmul.f32 %v316_v1, %v33_v45  ;;  %232 = vst [vmem:[%s835_s3 + $0x60] sm:$0xff] %v168_v53  ;;  %v105_v0 = vmul.f32 %v316_v1, %v34_v50  ;;  %v43_v13 = vld [vmem:[%s832_s0 + $0xe8] sm:$0xff]  ;;  %v44_v14 = vld [vmem:[%s832_s0 + $0xf0] sm:$0xff] }
   0xe   :  { %233 = vst [vmem:[%s835_s3 + $0x68] sm:$0xff] %v169_v54  ;;  %234 = vst [vmem:[%s835_s3 + $0x70] sm:$0xff] %v170_v55  ;;  %v172_v63 = vadd.f32 %v321_v2, %v101_v56  ;;  %v106_v3 = vmul.f32 %v316_v1, %v35_v51  ;;  %v107_v4 = vmul.f32 %v316_v1, %v36_v52  ;;  %v45_v19 = vld [vmem:[%s832_s0 + $0xf8] sm:$0xff]  ;;  %v46_v24 = vld [vmem:[%s832_s0 + $0x100] sm:$0xff] }
   0xf   :  { %235 = vst [vmem:[%s835_s3 + $0x78] sm:$0xff] %v171_v58  ;;  %v173_v8 = vadd.f32 %v321_v2, %v102_v59  ;;  %v174_v9 = vadd.f32 %v321_v2, %v103_v60  ;;  %v175_v10 = vadd.f32 %v321_v2, %v104_v61  ;;  %v108_v11 = vmul.f32 %v316_v1, %v37_v57  ;;  %v47_v29 = vld [vmem:[%s832_s0 + $0x108] sm:$0xff]  ;;  %v48_v30 = vld [vmem:[%s832_s0 + $0x110] sm:$0xff]  ;;  %v49_v31 = vld [vmem:[%s832_s0 + $0x118] sm:$0xff] }
  0x10   :  { %236 = vst [vmem:[%s835_s3 + $0x80] sm:$0xff] %v172_v63  ;;  %v176_v15 = vadd.f32 %v321_v2, %v105_v0  ;;  %v177_v16 = vadd.f32 %v321_v2, %v106_v3  ;;  %v178_v17 = vadd.f32 %v321_v2, %v107_v4  ;;  %v109_v18 = vmul.f32 %v316_v1, %v38_v62  ;;  %v50_v36 = vld [vmem:[%s832_s0 + $0x120] sm:$0xff]  ;;  %v51_v37 = vld [vmem:[%s832_s0 + $0x128] sm:$0xff]  ;;  %v52_v38 = vld [vmem:[%s832_s0 + $0x130] sm:$0xff] }
  0x11   :  { %237 = vst [vmem:[%s835_s3 + $0x88] sm:$0xff] %v173_v8  ;;  %238 = vst [vmem:[%s835_s3 + $0x90] sm:$0xff] %v174_v9  ;;  %v179_v20 = vadd.f32 %v321_v2, %v108_v11  ;;  %v110_v21 = vmul.f32 %v316_v1, %v39_v5  ;;  %v111_v22 = vmul.f32 %v316_v1, %v40_v6  ;;  %v53_v43 = vld [vmem:[%s832_s0 + $0x138] sm:$0xff]  ;;  %v54_v48 = vld [vmem:[%s832_s0 + $0x140] sm:$0xff] }
  0x12   :  { %239 = vst [vmem:[%s835_s3 + $0x98] sm:$0xff] %v175_v10  ;;  %v112_v23 = vmul.f32 %v316_v1, %v41_v7  ;;  %240 = vst [vmem:[%s835_s3 + $0xa0] sm:$0xff] %v176_v15  ;;  %v180_v25 = vadd.f32 %v321_v2, %v109_v18  ;;  %v113_v26 = vmul.f32 %v316_v1, %v42_v12  ;;  %v55_v53 = vld [vmem:[%s832_s0 + $0x148] sm:$0xff]  ;;  %v56_v54 = vld [vmem:[%s832_s0 + $0x150] sm:$0xff] }
  0x13   :  { %241 = vst [vmem:[%s835_s3 + $0xa8] sm:$0xff] %v177_v16  ;;  %242 = vst [vmem:[%s835_s3 + $0xb0] sm:$0xff] %v178_v17  ;;  %v114_v27 = vmul.f32 %v316_v1, %v43_v13  ;;  %v115_v28 = vmul.f32 %v316_v1, %v44_v14  ;;  %v181_v32 = vadd.f32 %v321_v2, %v110_v21  ;;  %v57_v55 = vld [vmem:[%s832_s0 + $0x158] sm:$0xff]  ;;  %v58_v60 = vld [vmem:[%s832_s0 + $0x160] sm:$0xff] }
  0x14   :  { %243 = vst [vmem:[%s835_s3 + $0xb8] sm:$0xff] %v179_v20  ;;  %v182_v33 = vadd.f32 %v321_v2, %v111_v22  ;;  %v183_v34 = vadd.f32 %v321_v2, %v112_v23  ;;  %v116_v35 = vmul.f32 %v316_v1, %v45_v19  ;;  %244 = vst [vmem:[%s835_s3 + $0xc0] sm:$0xff] %v180_v25  ;;  %v59_v61 = vld [vmem:[%s832_s0 + $0x168] sm:$0xff]  ;;  %v60_v62 = vld [vmem:[%s832_s0 + $0x170] sm:$0xff] }
  0x15   :  { %v184_v39 = vadd.f32 %v321_v2, %v113_v26  ;;  %v185_v40 = vadd.f32 %v321_v2, %v114_v27  ;;  %v186_v41 = vadd.f32 %v321_v2, %v115_v28  ;;  %v117_v42 = vmul.f32 %v316_v1, %v46_v24  ;;  %245 = vst [vmem:[%s835_s3 + $0xc8] sm:$0xff] %v181_v32  ;;  %v61_v5 = vld [vmem:[%s832_s0 + $0x178] sm:$0xff]  ;;  %v62_v10 = vld [vmem:[%s832_s0 + $0x180] sm:$0xff]  ;;  %v63_v15 = vld [vmem:[%s832_s0 + $0x188] sm:$0xff] }
  0x16   :  { %246 = vst [vmem:[%s835_s3 + $0xd0] sm:$0xff] %v182_v33  ;;  %247 = vst [vmem:[%s835_s3 + $0xd8] sm:$0xff] %v183_v34  ;;  %v187_v44 = vadd.f32 %v321_v2, %v116_v35  ;;  %v118_v45 = vmul.f32 %v316_v1, %v47_v29  ;;  %v119_v46 = vmul.f32 %v316_v1, %v48_v30  ;;  %v64_v16 = vld [vmem:[%s832_s0 + $0x190] sm:$0xff]  ;;  %v65_v17 = vld [vmem:[%s832_s0 + $0x198] sm:$0xff] }
  0x17   :  { %v120_v47 = vmul.f32 %v316_v1, %v49_v31  ;;  %248 = vst [vmem:[%s835_s3 + $0xe0] sm:$0xff] %v184_v39  ;;  %249 = vst [vmem:[%s835_s3 + $0xe8] sm:$0xff] %v185_v40  ;;  %v188_v49 = vadd.f32 %v321_v2, %v117_v42  ;;  %v121_v50 = vmul.f32 %v316_v1, %v50_v36  ;;  %v66_v22 = vld [vmem:[%s832_s0 + $0x1a0] sm:$0xff]  ;;  %v67_v23 = vld [vmem:[%s832_s0 + $0x1a8] sm:$0xff] }
  0x18   :  { %250 = vst [vmem:[%s835_s3 + $0xf0] sm:$0xff] %v186_v41  ;;  %v122_v51 = vmul.f32 %v316_v1, %v51_v37  ;;  %v123_v52 = vmul.f32 %v316_v1, %v52_v38  ;;  %251 = vst [vmem:[%s835_s3 + $0xf8] sm:$0xff] %v187_v44  ;;  %v189_v56 = vadd.f32 %v321_v2, %v118_v45  ;;  %v68_v24 = vld [vmem:[%s832_s0 + $0x1b0] sm:$0xff]  ;;  %v69_v29 = vld [vmem:[%s832_s0 + $0x1b8] sm:$0xff] }
  0x19   :  { %v190_v57 = vadd.f32 %v321_v2, %v119_v46  ;;  %v191_v58 = vadd.f32 %v321_v2, %v120_v47  ;;  %v124_v59 = vmul.f32 %v316_v1, %v53_v43  ;;  %252 = vst [vmem:[%s835_s3 + $0x100] sm:$0xff] %v188_v49  ;;  %v192_v63 = vadd.f32 %v321_v2, %v121_v50  ;;  %v70_v34 = vld [vmem:[%s832_s0 + $0x1c0] sm:$0xff]  ;;  %v71_v39 = vld [vmem:[%s832_s0 + $0x1c8] sm:$0xff]  ;;  %v72_v40 = vld [vmem:[%s832_s0 + $0x1d0] sm:$0xff] }
  0x1a   :  { %v193_v0 = vadd.f32 %v321_v2, %v122_v51  ;;  %v194_v3 = vadd.f32 %v321_v2, %v123_v52  ;;  %v125_v4 = vmul.f32 %v316_v1, %v54_v48  ;;  %253 = vst [vmem:[%s835_s3 + $0x108] sm:$0xff] %v189_v56  ;;  %v126_v7 = vmul.f32 %v316_v1, %v55_v53  ;;  %v73_v41 = vld [vmem:[%s832_s0 + $0x1d8] sm:$0xff]  ;;  %v74_v46 = vld [vmem:[%s832_s0 + $0x1e0] sm:$0xff]  ;;  %v75_v47 = vld [vmem:[%s832_s0 + $0x1e8] sm:$0xff] }
  0x1b   :  { %254 = vst [vmem:[%s835_s3 + $0x110] sm:$0xff] %v190_v57  ;;  %255 = vst [vmem:[%s835_s3 + $0x118] sm:$0xff] %v191_v58  ;;  %v195_v6 = vadd.f32 %v321_v2, %v124_v59  ;;  %v127_v8 = vmul.f32 %v316_v1, %v56_v54  ;;  %v128_v9 = vmul.f32 %v316_v1, %v57_v55  ;;  %v76_v48 = vld [vmem:[%s832_s0 + $0x1f0] sm:$0xff]  ;;  %v77_v53 = vld [vmem:[%s832_s0 + $0x1f8] sm:$0xff] }
  0x1c   :  { %256 = vst [vmem:[%s835_s3 + $0x120] sm:$0xff] %v192_v63  ;;  %257 = vst [vmem:[%s835_s3 + $0x128] sm:$0xff] %v193_v0  ;;  %v196_v11 = vadd.f32 %v321_v2, %v125_v4  ;;  %v129_v12 = vmul.f32 %v316_v1, %v58_v60  ;;  %v130_v13 = vmul.f32 %v316_v1, %v59_v61 }
  0x1d   :  { %258 = vst [vmem:[%s835_s3 + $0x130] sm:$0xff] %v194_v3  ;;  %v131_v14 = vmul.f32 %v316_v1, %v60_v62  ;;  %259 = vst [vmem:[%s835_s3 + $0x138] sm:$0xff] %v195_v6  ;;  %v197_v18 = vadd.f32 %v321_v2, %v126_v7  ;;  %v198_v19 = vadd.f32 %v321_v2, %v127_v8 }
  0x1e   :  { %v199_v20 = vadd.f32 %v321_v2, %v128_v9  ;;  %v132_v21 = vmul.f32 %v316_v1, %v61_v5  ;;  %260 = vst [vmem:[%s835_s3 + $0x140] sm:$0xff] %v196_v11  ;;  %v200_v25 = vadd.f32 %v321_v2, %v129_v12  ;;  %v201_v26 = vadd.f32 %v321_v2, %v130_v13 }
  0x1f   :  { %v202_v27 = vadd.f32 %v321_v2, %v131_v14  ;;  %v133_v28 = vmul.f32 %v316_v1, %v62_v10  ;;  %261 = vst [vmem:[%s835_s3 + $0x148] sm:$0xff] %v197_v18  ;;  %262 = vst [vmem:[%s835_s3 + $0x150] sm:$0xff] %v198_v19  ;;  %v134_v31 = vmul.f32 %v316_v1, %v63_v15 }
  0x20   :  { %263 = vst [vmem:[%s835_s3 + $0x158] sm:$0xff] %v199_v20  ;;  %v203_v30 = vadd.f32 %v321_v2, %v132_v21  ;;  %v135_v32 = vmul.f32 %v316_v1, %v64_v16  ;;  %v136_v33 = vmul.f32 %v316_v1, %v65_v17  ;;  %264 = vst [vmem:[%s835_s3 + $0x160] sm:$0xff] %v200_v25 }
  0x21   :  { %265 = vst [vmem:[%s835_s3 + $0x168] sm:$0xff] %v201_v26  ;;  %266 = vst [vmem:[%s835_s3 + $0x170] sm:$0xff] %v202_v27  ;;  %v204_v35 = vadd.f32 %v321_v2, %v133_v28  ;;  %v137_v36 = vmul.f32 %v316_v1, %v66_v22  ;;  %v138_v37 = vmul.f32 %v316_v1, %v67_v23 }
  0x22   :  { %v139_v38 = vmul.f32 %v316_v1, %v68_v24  ;;  %267 = vst [vmem:[%s835_s3 + $0x178] sm:$0xff] %v203_v30  ;;  %v205_v42 = vadd.f32 %v321_v2, %v134_v31  ;;  %v206_v43 = vadd.f32 %v321_v2, %v135_v32  ;;  %v207_v44 = vadd.f32 %v321_v2, %v136_v33 }
  0x23   :  { %v140_v45 = vmul.f32 %v316_v1, %v69_v29  ;;  %268 = vst [vmem:[%s835_s3 + $0x180] sm:$0xff] %v204_v35  ;;  %v208_v49 = vadd.f32 %v321_v2, %v137_v36  ;;  %v209_v50 = vadd.f32 %v321_v2, %v138_v37  ;;  %v141_v52 = vmul.f32 %v316_v1, %v70_v34 }
  0x24   :  { %v210_v51 = vadd.f32 %v321_v2, %v139_v38  ;;  %269 = vst [vmem:[%s835_s3 + $0x188] sm:$0xff] %v205_v42  ;;  %270 = vst [vmem:[%s835_s3 + $0x190] sm:$0xff] %v206_v43  ;;  %v142_v55 = vmul.f32 %v316_v1, %v71_v39  ;;  %v143_v56 = vmul.f32 %v316_v1, %v72_v40 }
  0x25   :  { %271 = vst [vmem:[%s835_s3 + $0x198] sm:$0xff] %v207_v44  ;;  %v211_v54 = vadd.f32 %v321_v2, %v140_v45  ;;  %v144_v57 = vmul.f32 %v316_v1, %v73_v41  ;;  %272 = vst [vmem:[%s835_s3 + $0x1a0] sm:$0xff] %v208_v49  ;;  %v212_v58 = vadd.f32 %v321_v2, %v141_v52 }
  0x26   :  { %273 = vst [vmem:[%s835_s3 + $0x1a8] sm:$0xff] %v209_v50  ;;  %274 = vst [vmem:[%s835_s3 + $0x1b0] sm:$0xff] %v210_v51  ;;  %v145_v59 = vmul.f32 %v316_v1, %v74_v46  ;;  %v146_v60 = vmul.f32 %v316_v1, %v75_v47  ;;  %v147_v61 = vmul.f32 %v316_v1, %v76_v48 }
  0x27   :  { %275 = vst [vmem:[%s835_s3 + $0x1b8] sm:$0xff] %v211_v54  ;;  %v213_v62 = vadd.f32 %v321_v2, %v142_v55  ;;  %v214_v63 = vadd.f32 %v321_v2, %v143_v56  ;;  %v215_v0 = vadd.f32 %v321_v2, %v144_v57  ;;  %v148_v3 = vmul.f32 %v316_v1, %v77_v53 }
  0x28   :  { %276 = vst [vmem:[%s835_s3 + $0x1c0] sm:$0xff] %v212_v58  ;;  %v216_v4 = vadd.f32 %v321_v2, %v145_v59  ;;  %v217_v5 = vadd.f32 %v321_v2, %v146_v60  ;;  %v218_v6 = vadd.f32 %v321_v2, %v147_v61 }
  0x29   :  { %277 = vst [vmem:[%s835_s3 + $0x1c8] sm:$0xff] %v213_v62  ;;  %278 = vst [vmem:[%s835_s3 + $0x1d0] sm:$0xff] %v214_v63  ;;  %v219_v1 = vadd.f32 %v321_v2, %v148_v3 }
  0x2a   :  { %279 = vst [vmem:[%s835_s3 + $0x1d8] sm:$0xff] %v215_v0  ;;  %280 = vst [vmem:[%s835_s3 + $0x1e0] sm:$0xff] %v216_v4 }
  0x2b   :  { %281 = vst [vmem:[%s835_s3 + $0x1e8] sm:$0xff] %v217_v5  ;;  %282 = vst [vmem:[%s835_s3 + $0x1f0] sm:$0xff] %v218_v6 }
  0x2c   :  { %283 = vst [vmem:[%s835_s3 + $0x1f8] sm:$0xff] %v219_v1 }

// kernel: _lambda_.74
= control target key start
LH: loop header
LB: loop body
LE: loop exit
PB: predicated region body
PF: predicated region fallthrough
CT: control target
= control target key end

     0   :  { %s1294_s12 = smov 0   ;;  %s1296_s13 = smov 0   ;;  %s1492_s0 = inlined_call_operand.vmem [shape: bf16[512,128], index: 0, kind: input, shape index: {}]   ;;  %s1493_s1 = inlined_call_operand.vmem [shape: bf16[128,128], index: 1, kind: input, shape index: {}]   ;;  %s1494_s2 = inlined_call_operand.vmem [shape: f32[1,128], index: 2, kind: input, shape index: {}]   ;;  %s1495_s3 = inlined_call_operand.vmem [shape: f32[512,128], index: 3, kind: output, shape index: {}]  }
   0x1   :  { %s1298_s14 = smov 0  }
   0x2 LB: > { %s32_s15 = sadd.s32 1, %s1267_s13  ;;  %p1032_p0 = scmp.ge.s32.totalorder %s1271_s14, 1  ;;  %s1271_s14 = sphi %s1298_s14, %s13_s14   ;;  %s1267_s13 = sphi %s1296_s13, %s1497_s13   ;;  %s1263_s12 = sphi %s1294_s12, %s1496_s12  }
   0x3   : > { %p34_p1 = scmp.ge.s32.totalorder %s32_s15, 2  ;;  %p188_p2 = scmp.lt.s32.totalorder %s1271_s14, 3 }
   0x5   : > { %s1499_s15 = smov (%p34_p1, %s32_s15), 0  ;;  %p189_p3 = pnand %p1032_p0, %p188_p2 }
   0x6   : > { %v1177_v0 = vld [vmem:[%s1493_s1] sm:$0xff] (!%p189_p3)   ;;  %s1033_s18 = sshll.u32 (!%p189_p3), %s1263_s12, 5  ;;  %v1178_v1 = vld [vmem:[%s1493_s1 + $0x8] sm:$0xff] (!%p189_p3)   ;;  %v1179_v2 = vld [vmem:[%s1493_s1 + $0x10] sm:$0xff] (!%p189_p3)   ;;  %v1273_v7 = vmov (!%p189_p3), 0  }
   0x7   : > { %192 = sbr.rel (%p189_p3) target bundleno = 299 (0x12b), region = 32  ;;  %p230_p4 = scmp.lt.s32.totalorder (!%p189_p3), %s1033_s18, 63  ;;  %1088 = vmatprep.subr.bf16.mxu0 (!%p189_p3), %v1177_v0  ;;  %1136 = vmatprep.subr.bf16.mxu1 (!%p189_p3), %v1177_v0  ;;  %v1180_v3 = vld [vmem:[%s1493_s1 + $0x18] sm:$0xff] (!%p189_p3)   ;;  %v1181_v14 = vld [vmem:[%s1493_s1 + $0x20] sm:$0xff] (!%p189_p3)   ;;  %v1182_v16 = vld [vmem:[%s1493_s1 + $0x28] sm:$0xff] (!%p189_p3)  }
   0x8   : > { %1089 = vmatpush3.bf16.msra.mxu0 (!%p189_p3), %v1177_v0  ;;  %1144 = vmatpush3.bf16.msra.mxu1 (!%p189_p3), %v1177_v0  ;;  %v1183_v17 = vld [vmem:[%s1493_s1 + $0x30] sm:$0xff] (!%p189_p3)   ;;  %v1184_v18 = vld [vmem:[%s1493_s1 + $0x38] sm:$0xff] (!%p189_p3)  }
   0x9   : > { %1090 = vmatprep.subr.bf16.mxu0 (!%p189_p3), %v1178_v1  ;;  %1137 = vmatprep.subr.bf16.mxu1 (!%p189_p3), %v1178_v1 }
   0xc   : > { %1091 = vmatpush3.bf16.msra.mxu0 (!%p189_p3), %v1178_v1  ;;  %1145 = vmatpush3.bf16.msra.mxu1 (!%p189_p3), %v1178_v1 }
   0xd   : > { %1092 = vmatprep.subr.bf16.mxu0 (!%p189_p3), %v1179_v2  ;;  %1138 = vmatprep.subr.bf16.mxu1 (!%p189_p3), %v1179_v2 }
   0xe   : > { %s1501_s18 = smov (!%p230_p4, %s1033_s18), 63 }
   0xf   : > { %s1034_s23 = sshll.u32 %s1501_s18, 2  ;;  %s1036_s12 = sshll.u32 %s1501_s18, 3 }
  0x10   : > { %s1327_s26 = scalar_lea.vmem %s1492_s0, %s1034_s23  ;;  %1093 = vmatpush3.bf16.msra.mxu0 %v1179_v2  ;;  %1146 = vmatpush3.bf16.msra.mxu1 %v1179_v2  ;;  %s1429_s18 = scalar_lea.vmem %s1495_s3, %s1036_s12 }
  0x11   : > { %v296_v4 = vld [vmem:[%s1327_s26] sm:$0xf]  ;;  %v297_v5 = vld [vmem:[%s1327_s26 + $0x4] sm:$0xf]  ;;  %1094 = vmatprep.subr.bf16.mxu0 %v1180_v3  ;;  %1139 = vmatprep.subr.bf16.mxu1 %v1180_v3  ;;  %v298_v19 = vld [vmem:[%s1327_s26 + $0x8] sm:$0xf] }
  0x12   : > { %v312_v6 = vld [vmem:[%s1327_s26 + $0x40] sm:$0xf]  ;;  %v328_v8 = vmax.bf16 %v1273_v7, %v296_v4  ;;  %v329_v9 = vmax.bf16 %v1273_v7, %v297_v5  ;;  %v313_v10 = vld [vmem:[%s1327_s26 + $0x44] sm:$0xf]  ;;  %v299_v20 = vld [vmem:[%s1327_s26 + $0xc] sm:$0xf]  ;;  %v330_v27 = vmax.bf16 %v1273_v7, %v298_v19 }
  0x13   : > { %v344_v11 = vmax.bf16 %v1273_v7, %v312_v6  ;;  %v345_v12 = vmax.bf16 %v1273_v7, %v313_v10  ;;  %v314_v21 = vld [vmem:[%s1327_s26 + $0x48] sm:$0xf]  ;;  %v315_v22 = vld [vmem:[%s1327_s26 + $0x4c] sm:$0xf]  ;;  %v300_v23 = vld [vmem:[%s1327_s26 + $0x10] sm:$0xf]  ;;  %v331_v28 = vmax.bf16 %v1273_v7, %v299_v20 }
  0x14   : > { %v1037_v13 = vcombine.low %v328_v8, %v329_v9  ;;  %1095 = vmatpush3.bf16.msra.mxu0 %v1180_v3  ;;  %1147 = vmatpush3.bf16.msra.mxu1 %v1180_v3  ;;  %v301_v24 = vld [vmem:[%s1327_s26 + $0x14] sm:$0xf]  ;;  %v316_v25 = vld [vmem:[%s1327_s26 + $0x50] sm:$0xf]  ;;  %v346_v29 = vmax.bf16 %v1273_v7, %v314_v21  ;;  %v347_v30 = vmax.bf16 %v1273_v7, %v315_v22  ;;  %v302_v37 = vld [vmem:[%s1327_s26 + $0x18] sm:$0xf] }
  0x15   : > { %v1045_v15 = vcombine.low %v344_v11, %v345_v12  ;;  %1096 = vmatprep.subr.bf16.mxu0 %v1181_v14  ;;  %1140 = vmatprep.subr.bf16.mxu1 %v1181_v14  ;;  %v317_v26 = vld [vmem:[%s1327_s26 + $0x54] sm:$0xf]  ;;  %v332_v31 = vmax.bf16 %v1273_v7, %v300_v23  ;;  %v333_v32 = vmax.bf16 %v1273_v7, %v301_v24  ;;  %v303_v38 = vld [vmem:[%s1327_s26 + $0x1c] sm:$0xf]  ;;  %v318_v41 = vld [vmem:[%s1327_s26 + $0x58] sm:$0xf] }
  0x16   : > { %1104 = vmatprep.mubr.bf16.mxu0 %v1037_v13  ;;  %v348_v33 = vmax.bf16 %v1273_v7, %v316_v25  ;;  %v349_v34 = vmax.bf16 %v1273_v7, %v317_v26  ;;  %v1038_v35 = vcombine.low %v330_v27, %v331_v28  ;;  %v1046_v36 = vcombine.low %v346_v29, %v347_v30  ;;  %v319_v42 = vld [vmem:[%s1327_s26 + $0x5c] sm:$0xf]  ;;  %v304_v43 = vld [vmem:[%s1327_s26 + $0x20] sm:$0xf]  ;;  %v305_v44 = vld [vmem:[%s1327_s26 + $0x24] sm:$0xf] }
  0x17   : > { %1120 = vmatprep.mubr.bf16.mxu1 %v1045_v15  ;;  %v1039_v39 = vcombine.low %v332_v31, %v333_v32  ;;  %v320_v45 = vld [vmem:[%s1327_s26 + $0x60] sm:$0xf]  ;;  %v321_v46 = vld [vmem:[%s1327_s26 + $0x64] sm:$0xf]  ;;  %v334_v47 = vmax.bf16 %v1273_v7, %v302_v37  ;;  %v335_v48 = vmax.bf16 %v1273_v7, %v303_v38  ;;  %v350_v49 = vmax.bf16 %v1273_v7, %v318_v41  ;;  %v306_v57 = vld [vmem:[%s1327_s26 + $0x28] sm:$0xf] }
  0x18   : > { %1097 = vmatpush3.bf16.msra.mxu0 %v1181_v14  ;;  %1148 = vmatpush3.bf16.msra.mxu1 %v1181_v14  ;;  %v1047_v40 = vcombine.low %v348_v33, %v349_v34  ;;  %v351_v50 = vmax.bf16 %v1273_v7, %v319_v42  ;;  %v336_v51 = vmax.bf16 %v1273_v7, %v304_v43  ;;  %v307_v58 = vld [vmem:[%s1327_s26 + $0x2c] sm:$0xf]  ;;  %v322_v61 = vld [vmem:[%s1327_s26 + $0x68] sm:$0xf]  ;;  %v308_v63 = vld [vmem:[%s1327_s26 + $0x30] sm:$0xf] }
  0x19   : > { %1098 = vmatprep.subr.bf16.mxu0 %v1182_v16  ;;  %1141 = vmatprep.subr.bf16.mxu1 %v1182_v16  ;;  %v337_v52 = vmax.bf16 %v1273_v7, %v305_v44  ;;  %v352_v53 = vmax.bf16 %v1273_v7, %v320_v45  ;;  %v353_v54 = vmax.bf16 %v1273_v7, %v321_v46  ;;  %v323_v62 = vld [vmem:[%s1327_s26 + $0x6c] sm:$0xf]  ;;  %v309_v0 = vld [vmem:[%s1327_s26 + $0x34] sm:$0xf]  ;;  %v324_v1 = vld [vmem:[%s1327_s26 + $0x70] sm:$0xf] }
  0x1a   : > { %v1040_v55 = vcombine.low %v334_v47, %v335_v48  ;;  %v1048_v56 = vcombine.low %v350_v49, %v351_v50  ;;  %v325_v2 = vld [vmem:[%s1327_s26 + $0x74] sm:$0xf]  ;;  %v338_v3 = vmax.bf16 %v1273_v7, %v306_v57  ;;  %v339_v4 = vmax.bf16 %v1273_v7, %v307_v58  ;;  %v310_v14 = vld [vmem:[%s1327_s26 + $0x38] sm:$0xf]  ;;  %v327_v19 = vld [vmem:[%s1327_s26 + $0x7c] sm:$0xf] }
  0x1b   : > { %v1041_v59 = vcombine.low %v336_v51, %v337_v52  ;;  %v1049_v60 = vcombine.low %v352_v53, %v353_v54  ;;  %v354_v5 = vmax.bf16 %v1273_v7, %v322_v61  ;;  %v355_v6 = vmax.bf16 %v1273_v7, %v323_v62  ;;  %v1411_v26 = vld [vmem:[%s1494_s2] ss:$0 sm:$0xff] }
  0x1c   : > { %1099 = vmatpush3.bf16.msra.mxu0 %v1182_v16  ;;  %1149 = vmatpush3.bf16.msra.mxu1 %v1182_v16  ;;  %v340_v8 = vmax.bf16 %v1273_v7, %v308_v63  ;;  %v341_v9 = vmax.bf16 %v1273_v7, %v309_v0  ;;  %v356_v10 = vmax.bf16 %v1273_v7, %v324_v1 }
  0x1d   : > { %1100 = vmatprep.subr.bf16.mxu0 %v1183_v17  ;;  %1142 = vmatprep.subr.bf16.mxu1 %v1183_v17  ;;  %v357_v11 = vmax.bf16 %v1273_v7, %v325_v2  ;;  %v1042_v12 = vcombine.low %v338_v3, %v339_v4  ;;  %v1050_v13 = vcombine.low %v354_v5, %v355_v6 }
  0x1e   : > { %v1043_v15 = vcombine.low %v340_v8, %v341_v9  ;;  %v342_v20 = vmax.bf16 %v1273_v7, %v310_v14  ;;  %v359_v23 = vmax.bf16 %v1273_v7, %v327_v19 }
  0x1f   : > { %v1051_v16 = vcombine.low %v356_v10, %v357_v11 }
  0x20   : > { %1101 = vmatpush3.bf16.msra.mxu0 %v1183_v17  ;;  %1150 = vmatpush3.bf16.msra.mxu1 %v1183_v17  ;;  %v311_v17 = vld [vmem:[%s1327_s26 + $0x3c] sm:$0xf] }
  0x21   : > { %1102 = vmatprep.subr.bf16.mxu0 %v1184_v18  ;;  %1143 = vmatprep.subr.bf16.mxu1 %v1184_v18  ;;  %v343_v21 = vmax.bf16 %v1273_v7, %v311_v17 }
  0x23   : > { %v1044_v24 = vcombine.low %v342_v20, %v343_v21 }
  0x24   : > { %1103 = vmatpush3.bf16.msra.mxu0 %v1184_v18  ;;  %1151 = vmatpush3.bf16.msra.mxu1 %v1184_v18  ;;  %v326_v18 = vld [vmem:[%s1327_s26 + $0x78] sm:$0xf] }
  0x25   : > { %v358_v22 = vmax.bf16 %v1273_v7, %v326_v18 }
  0x27   : > { %1105 = vmatmul.mubr.bf16.vlgmr.msra.gmra.mrb[0].mxu0 %v1038_v35  ;;  %1121 = vmatmul.mubr.bf16.vlgmr.msra.gmra.mrb[0].mxu1 %v1046_v36  ;;  %v1052_v25 = vcombine.low %v358_v22, %v359_v23 }
  0x28   : > { %1108 = vmatprep.mubr.bf16.mxu0 %v1039_v39  ;;  %1124 = vmatprep.mubr.bf16.mxu1 %v1047_v40 }
  0x2f   : > { %1109 = vmatmul.mubr.bf16.gmra.mrb[4].mxu0 %v1040_v55  ;;  %1125 = vmatmul.mubr.bf16.gmra.mrb[4].mxu1 %v1048_v56 }
  0x30   : > { %1112 = vmatprep.mubr.bf16.mxu0 %v1041_v59  ;;  %1128 = vmatprep.mubr.bf16.mxu1 %v1049_v60 }
  0x37   : > { %1113 = vmatmul.mubr.bf16.gmra.mrb[8].mxu0 %v1042_v12  ;;  %1129 = vmatmul.mubr.bf16.gmra.mrb[8].mxu1 %v1050_v13 }
  0x38   : > { %1116 = vmatprep.mubr.bf16.mxu0 %v1043_v15  ;;  %1132 = vmatprep.mubr.bf16.mxu1 %v1051_v16 }
  0x3f   : > { %1117 = vmatmul.mubr.bf16.gmra.mrb[12].mxu0 %v1044_v24  ;;  %1133 = vmatmul.mubr.bf16.gmra.mrb[12].mxu1 %v1052_v25 }
  0xfa   : > { %v1106_v27 = vpop.f32.mrb[0].mxu0  ;;  %v1122_v28 = vpop.f32.mrb[0].mxu1 }
  0xfb   : > { %v821_v29 = vadd.f32 %v1106_v27, %v1411_v26  ;;  %v837_v30 = vadd.f32 %v1122_v28, %v1411_v26  ;;  %v586_v31 = vpop.f32.mrb[1].mxu0  ;;  %v650_v32 = vpop.f32.mrb[1].mxu1 }
  0xfc   : > { %v819_v7 = vadd.f32 %v1411_v26, %v586_v31  ;;  %v835_v33 = vadd.f32 %v1411_v26, %v650_v32  ;;  %v1107_v34 = vpop.f32.mrb[2].mxu0  ;;  %v1123_v35 = vpop.f32.mrb[2].mxu1 }
  0xfd   : > { %1185 = vtanh.f32 %v821_v29  ;;  %v822_v36 = vadd.f32 %v1107_v34, %v1411_v26  ;;  %v589_v37 = vpop.f32.mrb[3].mxu0  ;;  %v653_v38 = vpop.f32.mrb[3].mxu1  ;;  %v838_v39 = vadd.f32 %v1123_v35, %v1411_v26 }
  0xfe   : > { %1187 = vtanh.f32 %v837_v30  ;;  %v820_v40 = vadd.f32 %v1411_v26, %v589_v37  ;;  %v836_v41 = vadd.f32 %v1411_v26, %v653_v38 }
  0xff   : > { %1189 = vtanh.f32 %v819_v7 }
 0x100   : > { %1191 = vtanh.f32 %v835_v33 }
 0x101   : > { %1193 = vtanh.f32 %v822_v36 }
 0x102   : > { %1195 = vtanh.f32 %v838_v39  ;;  %v1110_v42 = vpop.f32.mrb[4].mxu0  ;;  %v1126_v43 = vpop.f32.mrb[4].mxu1 }
 0x103   : > { %1197 = vtanh.f32 %v820_v40  ;;  %v825_v44 = vadd.f32 %v1110_v42, %v1411_v26  ;;  %v841_v45 = vadd.f32 %v1126_v43, %v1411_v26  ;;  %v602_v46 = vpop.f32.mrb[5].mxu0  ;;  %v666_v47 = vpop.f32.mrb[5].mxu1 }
 0x104   : > { %1199 = vtanh.f32 %v836_v41  ;;  %v823_v48 = vadd.f32 %v1411_v26, %v602_v46  ;;  %v839_v49 = vadd.f32 %v1411_v26, %v666_v47  ;;  %v1111_v50 = vpop.f32.mrb[6].mxu0  ;;  %v1127_v51 = vpop.f32.mrb[6].mxu1 }
 0x105   : > { %1201 = vtanh.f32 %v825_v44  ;;  %v826_v52 = vadd.f32 %v1111_v50, %v1411_v26  ;;  %v605_v53 = vpop.f32.mrb[7].mxu0  ;;  %v669_v54 = vpop.f32.mrb[7].mxu1  ;;  %v842_v55 = vadd.f32 %v1127_v51, %v1411_v26 }
 0x106   : > { %1203 = vtanh.f32 %v841_v45  ;;  %v824_v57 = vadd.f32 %v1411_v26, %v605_v53  ;;  %v840_v59 = vadd.f32 %v1411_v26, %v669_v54 }
 0x107   : > { %v1186_v56 = vpop.eup %1185  ;;  %1205 = vtanh.f32 %v823_v48 }
 0x108   : > { %v1188_v58 = vpop.eup %1187  ;;  %885 = vst [vmem:[%s1429_s18 + $0x10] sm:$0xff] %v1186_v56  ;;  %1207 = vtanh.f32 %v839_v49 }
 0x109   : > { %v1190_v60 = vpop.eup %1189  ;;  %901 = vst [vmem:[%s1429_s18 + $0x90] sm:$0xff] %v1188_v58  ;;  %1209 = vtanh.f32 %v826_v52 }
 0x10a   : > { %v1192_v61 = vpop.eup %1191  ;;  %883 = vst [vmem:[%s1429_s18] sm:$0xff] %v1190_v60  ;;  %1211 = vtanh.f32 %v842_v55  ;;  %v1114_v62 = vpop.f32.mrb[8].mxu0 }
 0x10b   : > { %v1130_v63 = vpop.f32.mrb[8].mxu1  ;;  %v1194_v0 = vpop.eup %1193  ;;  %899 = vst [vmem:[%s1429_s18 + $0x80] sm:$0xff] %v1192_v61  ;;  %1213 = vtanh.f32 %v824_v57  ;;  %v829_v1 = vadd.f32 %v1114_v62, %v1411_v26 }
 0x10c   : > { %v845_v2 = vadd.f32 %v1130_v63, %v1411_v26  ;;  %v618_v3 = vpop.f32.mrb[9].mxu0  ;;  %v682_v4 = vpop.f32.mrb[9].mxu1  ;;  %886 = vst [vmem:[%s1429_s18 + $0x18] sm:$0xff] %v1194_v0  ;;  %1215 = vtanh.f32 %v840_v59 }
 0x10d   : > { %v1196_v5 = vpop.eup %1195  ;;  %v827_v6 = vadd.f32 %v1411_v26, %v618_v3  ;;  %v843_v8 = vadd.f32 %v1411_v26, %v682_v4  ;;  %v1115_v9 = vpop.f32.mrb[10].mxu0  ;;  %1217 = vtanh.f32 %v829_v1 }
 0x10e   : > { %v1131_v10 = vpop.f32.mrb[10].mxu1  ;;  %v1198_v11 = vpop.eup %1197  ;;  %902 = vst [vmem:[%s1429_s18 + $0x98] sm:$0xff] %v1196_v5  ;;  %v830_v12 = vadd.f32 %v1115_v9, %v1411_v26  ;;  %1219 = vtanh.f32 %v845_v2 }
 0x10f   : > { %v621_v13 = vpop.f32.mrb[11].mxu0  ;;  %v685_v14 = vpop.f32.mrb[11].mxu1  ;;  %884 = vst [vmem:[%s1429_s18 + $0x8] sm:$0xff] %v1198_v11  ;;  %v846_v16 = vadd.f32 %v1131_v10, %v1411_v26  ;;  %1221 = vtanh.f32 %v827_v6 }
 0x110   : > { %v1200_v15 = vpop.eup %1199  ;;  %v828_v18 = vadd.f32 %v1411_v26, %v621_v13  ;;  %1223 = vtanh.f32 %v843_v8  ;;  %v844_v20 = vadd.f32 %v1411_v26, %v685_v14 }
 0x111   : > { %v1202_v17 = vpop.eup %1201  ;;  %900 = vst [vmem:[%s1429_s18 + $0x88] sm:$0xff] %v1200_v15  ;;  %1225 = vtanh.f32 %v830_v12 }
 0x112   : > { %v1204_v19 = vpop.eup %1203  ;;  %889 = vst [vmem:[%s1429_s18 + $0x30] sm:$0xff] %v1202_v17  ;;  %1227 = vtanh.f32 %v846_v16  ;;  %v1118_v23 = vpop.f32.mrb[12].mxu0 }
 0x113   : > { %v1206_v21 = vpop.eup %1205  ;;  %905 = vst [vmem:[%s1429_s18 + $0xb0] sm:$0xff] %v1204_v19  ;;  %v1134_v24 = vpop.f32.mrb[12].mxu1  ;;  %1229 = vtanh.f32 %v828_v18  ;;  %v833_v27 = vadd.f32 %v1118_v23, %v1411_v26 }
 0x114   : > { %v1208_v22 = vpop.eup %1207  ;;  %887 = vst [vmem:[%s1429_s18 + $0x20] sm:$0xff] %v1206_v21  ;;  %v849_v28 = vadd.f32 %v1134_v24, %v1411_v26  ;;  %v634_v29 = vpop.f32.mrb[13].mxu0  ;;  %1231 = vtanh.f32 %v844_v20 }
 0x115   : > { %v1210_v25 = vpop.eup %1209  ;;  %903 = vst [vmem:[%s1429_s18 + $0xa0] sm:$0xff] %v1208_v22  ;;  %v698_v30 = vpop.f32.mrb[13].mxu1  ;;  %v831_v32 = vadd.f32 %v1411_v26, %v634_v29  ;;  %1233 = vtanh.f32 %v833_v27 }
 0x116   : > { %v1212_v31 = vpop.eup %1211  ;;  %890 = vst [vmem:[%s1429_s18 + $0x38] sm:$0xff] %v1210_v25  ;;  %v847_v7 = vadd.f32 %v1411_v26, %v698_v30  ;;  %v1119_v33 = vpop.f32.mrb[14].mxu0  ;;  %1235 = vtanh.f32 %v849_v28 }
 0x117   : > { %v1135_v34 = vpop.f32.mrb[14].mxu1  ;;  %v1214_v35 = vpop.eup %1213  ;;  %906 = vst [vmem:[%s1429_s18 + $0xb8] sm:$0xff] %v1212_v31  ;;  %v834_v36 = vadd.f32 %v1119_v33, %v1411_v26  ;;  %1237 = vtanh.f32 %v831_v32 }
 0x118   : > { %v637_v37 = vpop.f32.mrb[15].mxu0  ;;  %v701_v38 = vpop.f32.mrb[15].mxu1  ;;  %888 = vst [vmem:[%s1429_s18 + $0x28] sm:$0xff] %v1214_v35  ;;  %v850_v40 = vadd.f32 %v1135_v34, %v1411_v26  ;;  %1239 = vtanh.f32 %v847_v7 }
 0x119   : > { %v1216_v39 = vpop.eup %1215  ;;  %v832_v42 = vadd.f32 %v1411_v26, %v637_v37  ;;  %v848_v44 = vadd.f32 %v1411_v26, %v701_v38  ;;  %1241 = vtanh.f32 %v834_v36 }
 0x11a   : > { %v1218_v41 = vpop.eup %1217  ;;  %904 = vst [vmem:[%s1429_s18 + $0xa8] sm:$0xff] %v1216_v39  ;;  %1243 = vtanh.f32 %v850_v40 }
 0x11b   : > { %v1220_v43 = vpop.eup %1219  ;;  %893 = vst [vmem:[%s1429_s18 + $0x50] sm:$0xff] %v1218_v41  ;;  %1245 = vtanh.f32 %v832_v42 }
 0x11c   : > { %v1222_v45 = vpop.eup %1221  ;;  %909 = vst [vmem:[%s1429_s18 + $0xd0] sm:$0xff] %v1220_v43  ;;  %1247 = vtanh.f32 %v848_v44 }
 0x11d   : > { %v1224_v46 = vpop.eup %1223  ;;  %891 = vst [vmem:[%s1429_s18 + $0x40] sm:$0xff] %v1222_v45 }
 0x11e   : > { %v1226_v47 = vpop.eup %1225  ;;  %907 = vst [vmem:[%s1429_s18 + $0xc0] sm:$0xff] %v1224_v46 }
 0x11f   : > { %v1228_v48 = vpop.eup %1227  ;;  %894 = vst [vmem:[%s1429_s18 + $0x58] sm:$0xff] %v1226_v47 }
 0x120   : > { %v1230_v26 = vpop.eup %1229  ;;  %910 = vst [vmem:[%s1429_s18 + $0xd8] sm:$0xff] %v1228_v48 }
 0x121   : > { %v1232_v49 = vpop.eup %1231  ;;  %892 = vst [vmem:[%s1429_s18 + $0x48] sm:$0xff] %v1230_v26 }
 0x122   : > { %v1234_v50 = vpop.eup %1233  ;;  %908 = vst [vmem:[%s1429_s18 + $0xc8] sm:$0xff] %v1232_v49 }
 0x123   : > { %v1236_v51 = vpop.eup %1235  ;;  %897 = vst [vmem:[%s1429_s18 + $0x70] sm:$0xff] %v1234_v50 }
 0x124   : > { %v1238_v52 = vpop.eup %1237  ;;  %913 = vst [vmem:[%s1429_s18 + $0xf0] sm:$0xff] %v1236_v51 }
 0x125   : > { %v1240_v53 = vpop.eup %1239  ;;  %895 = vst [vmem:[%s1429_s18 + $0x60] sm:$0xff] %v1238_v52 }
 0x126   : > { %v1242_v54 = vpop.eup %1241  ;;  %911 = vst [vmem:[%s1429_s18 + $0xe0] sm:$0xff] %v1240_v53 }
 0x127   : > { %v1244_v55 = vpop.eup %1243  ;;  %898 = vst [vmem:[%s1429_s18 + $0x78] sm:$0xff] %v1242_v54 }
 0x128   : > { %v1246_v56 = vpop.eup %1245  ;;  %914 = vst [vmem:[%s1429_s18 + $0xf8] sm:$0xff] %v1244_v55 }
 0x129   : > { %v1248_v57 = vpop.eup %1247  ;;  %896 = vst [vmem:[%s1429_s18 + $0x68] sm:$0xff] %v1246_v56 }
 0x12a   : > { %912 = vst [vmem:[%s1429_s18 + $0xe8] sm:$0xff] %v1248_v57 }
 0x12b PF: > { %s13_s14 = sadd.s32 1, %s1271_s14   ;;  %s1496_s12 = smov %s1267_s13 }
 0x12c   : > { %p10_p5 = scmp.ge.s32.totalorder %s13_s14, 4   ;;  %s1497_s13 = smov %s1499_s15 }
 0x12e   :  { %12 = sbr.rel (!%p10_p5) target bundleno = 2 (0x2), region = 76 }

</bundles_post_ra>
